<compile_context>
chip_gen: v5e
topology: v5e:2x2
jax: 0.10.0
libtpu: 0.0.40
codegen_flags: <defaults>
</compile_context>

<pallas_src>
import functools

import jax
import jax.numpy as jnp
from jax.experimental import pallas as pl
from jax.experimental.pallas import tpu as pltpu


# ---------------------------------------------------------------------------
# parameters + one-time folding of each ConvTranspose2d into a dense operator
# ---------------------------------------------------------------------------
def init_decoder_params(key, nz=16, ngf=16, nc=3):
    k1, k2, k3 = jax.random.split(key, 3)
    std = 0.02  # DCGAN-style init, deterministic from the key
    return {
        "w1": std * jax.random.normal(k1, (nz, ngf * 2, 4, 4), jnp.float32),
        "w2": std * jax.random.normal(k2, (ngf * 2, ngf, 4, 4), jnp.float32),
        "w3": std * jax.random.normal(k3, (ngf, nc, 4, 4), jnp.float32),
    }


def _convt_dense(w, stride, padding, hw_in):
    """Dense matrix of ConvTranspose2d(bias=False): (Cin*H*W, Cout*Hout*Wout).

    Built once at init by pushing the identity basis through the exact
    transposed-conv (flipped-kernel + input-dilation) formulation.
    """
    cin, cout, kh, kw = w.shape
    h, wd = hw_in
    basis = jnp.eye(cin * h * wd, dtype=w.dtype).reshape(cin * h * wd, cin, h, wd)
    wk = jnp.transpose(jnp.flip(w, axis=(2, 3)), (1, 0, 2, 3))  # OIHW
    y = jax.lax.conv_general_dilated(
        basis, wk, window_strides=(1, 1),
        padding=[(kh - 1 - padding,) * 2, (kw - 1 - padding,) * 2],
        lhs_dilation=(stride, stride),
        dimension_numbers=("NCHW", "OIHW", "NCHW"))
    hout = (h - 1) * stride - 2 * padding + kh
    wout = (wd - 1) * stride - 2 * padding + kw
    return y.reshape(cin * h * wd, cout * hout * wout), (cout, hout, wout)


def prepare_netg_operators(params):
    """Fold the decoder weights into three matmul operands (done once at init)."""
    w1m, _ = _convt_dense(params["w1"], stride=1, padding=0, hw_in=(1, 1))  # (nz, 512)
    w2m, _ = _convt_dense(params["w2"], stride=2, padding=1, hw_in=(4, 4))  # (512, 1024)
    w3m, img_chw = _convt_dense(params["w3"], stride=2, padding=1, hw_in=(8, 8))  # (1024, 768)
    mats = {"w1m": w1m, "w2m": w2m, "w3m": w3m}
    return mats, img_chw  # img_chw == (nc, 16, 16)


# ---------------------------------------------------------------------------
# fused decoder kernel: 3 lane-dense matmuls + activations, one grid step
# ---------------------------------------------------------------------------
def _decoder_kernel(z_ref, w1_ref, w2_ref, w3_ref, o_ref):
    # layer 1: (tm, nz)   @ (nz, 512)    -> ReLU
    h = jnp.dot(z_ref[...], w1_ref[...], preferred_element_type=jnp.float32)
    h = jnp.maximum(h, 0.0)
    # layer 2: (tm, 512)  @ (512, 1024)  -> ReLU
    h = jnp.dot(h, w2_ref[...], preferred_element_type=jnp.float32)
    h = jnp.maximum(h, 0.0)
    # layer 3: (tm, 1024) @ (1024, 768)  -> Tanh (EUP)
    h = jnp.dot(h, w3_ref[...], preferred_element_type=jnp.float32)
    o_ref[...] = jnp.tanh(h).astype(o_ref.dtype)


def _round_up(x, m):
    return ((x + m - 1) // m) * m


@functools.partial(jax.jit, static_argnames=("img_chw",))
def netg_forward(mats, z, *, img_chw):
    """NetG.forward: output = decoder(input).   z: (N, nz, 1, 1), NCHW."""
    n, nz = z.shape[0], z.shape[1]
    zf = z.reshape(n, nz)  # 1x1 spatial -> plain (N, nz)

    d1 = mats["w1m"].shape[1]
    d2 = mats["w2m"].shape[1]
    d3 = mats["w3m"].shape[1]

    # row tile: single grid step for small batches, 128-row tiles otherwise
    tm = _round_up(n, 8) if n <= 128 else 128
    mp = _round_up(n, tm)
    if mp != n:
        zf = jnp.pad(zf, ((0, mp - n), (0, 0)))

    out = pl.pallas_call(
        _decoder_kernel,
        out_shape=jax.ShapeDtypeStruct((mp, d3), jnp.float32),
        grid=(pl.cdiv(mp, tm),),
        in_specs=[
            pl.BlockSpec((tm, nz), lambda i: (i, 0)),
            pl.BlockSpec((nz, d1), lambda i: (0, 0)),   # weights resident in VMEM
            pl.BlockSpec((d1, d2), lambda i: (0, 0)),
            pl.BlockSpec((d2, d3), lambda i: (0, 0)),
        ],
        out_specs=pl.BlockSpec((tm, d3), lambda i: (i, 0)),
        compiler_params=pltpu.CompilerParams(
            dimension_semantics=("parallel",),
            vmem_limit_bytes=32 * 1024 * 1024,
        ),
    )(zf, mats["w1m"], mats["w2m"], mats["w3m"])

    c, hh, ww = img_chw
    # each output row is already the NCHW-flattened image of one sample
    return out[:n].reshape(n, c, hh, ww)


# ---------------- reference (pure JAX) for a correctness check ----------------
def _ref_convT(x, w, stride, padding, act):
    kh, kw = w.shape[2], w.shape[3]
    wk = jnp.transpose(jnp.flip(w, axis=(2, 3)), (1, 0, 2, 3))  # OIHW
    y = jax.lax.conv_general_dilated(
        x, wk, window_strides=(1, 1),
        padding=[(kh - 1 - padding, kh - 1 - padding),
                 (kw - 1 - padding, kw - 1 - padding)],
        lhs_dilation=(stride, stride),
        dimension_numbers=("NCHW", "OIHW", "NCHW"))
    return jnp.maximum(y, 0.0) if act == "relu" else jnp.tanh(y)


def _ref_forward(params, z):
    h = _ref_convT(z, params["w1"], 1, 0, "relu")
    h = _ref_convT(h, params["w2"], 2, 1, "relu")
    return _ref_convT(h, params["w3"], 2, 1, "tanh")


if __name__ == "__main__":
    key = jax.random.PRNGKey(0)
    kp, kz = jax.random.split(key)
    params = init_decoder_params(kp, nz=16, ngf=16, nc=3)
    mats, img_chw = prepare_netg_operators(params)  # one-time weight folding

    # latent input, PyTorch convention (N, nz, 1, 1)
    z = jax.random.normal(kz, (2, 16, 1, 1), jnp.float32)

    out = jax.block_until_ready(netg_forward(mats, z, img_chw=img_chw))
    assert out.shape == (2, 3, 16, 16), out.shape

    ref = jax.block_until_ready(_ref_forward(params, z))
    assert jnp.allclose(out, ref, rtol=1e-3, atol=1e-4), float(
        jnp.max(jnp.abs(out - ref)))

    # ragged batch (not a multiple of 8 / 128) must also work
    z3 = jax.random.normal(kz, (3, 16, 1, 1), jnp.float32)
    out3 = jax.block_until_ready(netg_forward(mats, z3, img_chw=img_chw))
    assert out3.shape == (3, 3, 16, 16), out3.shape
    ref3 = jax.block_until_ready(_ref_forward(params, z3))
    assert jnp.allclose(out3, ref3, rtol=1e-3, atol=1e-4), float(
        jnp.max(jnp.abs(out3 - ref3)))

    print("KERNEL_OK")
</pallas_src>

<mosaic_0001>
module attributes {stable_mosaic.version = 11 : i64} {
  func.func @_decoder_kernel(%arg0: i32, %arg1: memref<8x16xf32, #tpu.memory_space<vmem>>, %arg2: memref<16x512xf32, #tpu.memory_space<vmem>>, %arg3: memref<512x1024xf32, #tpu.memory_space<vmem>>, %arg4: memref<1024x768xf32, #tpu.memory_space<vmem>>, %arg5: memref<8x768xf32, #tpu.memory_space<vmem>>) attributes {dimension_semantics = [#tpu.dimension_semantics<parallel>], iteration_bounds = array<i64: 1>, scalar_prefetch = 0 : i64, scratch_operands = 0 : i64, tpu.core_type = #tpu.core_type<tc>, window_params = [{transform_indices = @transform_0, window_bounds = array<i64: 8, 16>}, {pipeline_mode = #tpu.pipeline_mode<synchronous>, transform_indices = @transform_1, window_bounds = array<i64: 16, 512>}, {pipeline_mode = #tpu.pipeline_mode<synchronous>, transform_indices = @transform_2, window_bounds = array<i64: 512, 1024>}, {pipeline_mode = #tpu.pipeline_mode<synchronous>, transform_indices = @transform_3, window_bounds = array<i64: 1024, 768>}, {transform_indices = @transform_4, window_bounds = array<i64: 8, 768>}]} {
    %c0 = arith.constant 0 : index
    %c0_0 = arith.constant 0 : index
    %0 = vector.load %arg1[%c0, %c0_0] : memref<8x16xf32, #tpu.memory_space<vmem>>, vector<8x16xf32>
    %c0_1 = arith.constant 0 : index
    %c0_2 = arith.constant 0 : index
    %1 = vector.load %arg2[%c0_1, %c0_2] : memref<16x512xf32, #tpu.memory_space<vmem>>, vector<16x512xf32>
    %cst = arith.constant dense<0.000000e+00> : vector<8x512xf32>
    %2 = tpu.matmul %0, %1, %cst {dimension_numbers = #tpu.dot_dimension_numbers<[1], [0], [0], [1], [0, 0, 1, 1], [], []>} : vector<8x16xf32>, vector<16x512xf32>, vector<8x512xf32> -> vector<8x512xf32>
    %cst_3 = arith.constant 0.000000e+00 : f32
    %3 = vector.broadcast %cst_3 : f32 to vector<8x512xf32>
    %4 = arith.maximumf %2, %3 : vector<8x512xf32>
    %c0_4 = arith.constant 0 : index
    %c0_5 = arith.constant 0 : index
    %5 = vector.load %arg3[%c0_4, %c0_5] : memref<512x1024xf32, #tpu.memory_space<vmem>>, vector<512x1024xf32>
    %cst_6 = arith.constant dense<0.000000e+00> : vector<8x1024xf32>
    %6 = tpu.matmul %4, %5, %cst_6 {dimension_numbers = #tpu.dot_dimension_numbers<[1], [0], [0], [1], [0, 0, 1, 1], [], []>} : vector<8x512xf32>, vector<512x1024xf32>, vector<8x1024xf32> -> vector<8x1024xf32>
    %cst_7 = arith.constant 0.000000e+00 : f32
    %7 = vector.broadcast %cst_7 : f32 to vector<8x1024xf32>
    %8 = arith.maximumf %6, %7 : vector<8x1024xf32>
    %c0_8 = arith.constant 0 : index
    %c0_9 = arith.constant 0 : index
    %9 = vector.load %arg4[%c0_8, %c0_9] : memref<1024x768xf32, #tpu.memory_space<vmem>>, vector<1024x768xf32>
    %cst_10 = arith.constant dense<0.000000e+00> : vector<8x768xf32>
    %10 = tpu.matmul %8, %9, %cst_10 {dimension_numbers = #tpu.dot_dimension_numbers<[1], [0], [0], [1], [0, 0, 1, 1], [], []>} : vector<8x1024xf32>, vector<1024x768xf32>, vector<8x768xf32> -> vector<8x768xf32>
    %11 = math.tanh %10 : vector<8x768xf32>
    %c0_11 = arith.constant 0 : index
    %c0_12 = arith.constant 0 : index
    %12 = vector.load %arg5[%c0_11, %c0_12] : memref<8x768xf32, #tpu.memory_space<vmem>>, vector<8x768xf32>
    tpu.vector_store %arg5[%c0_11, %c0_12], %11 {strides = array<i32>} : memref<8x768xf32, #tpu.memory_space<vmem>>, vector<8x768xf32>,
    return
  }
  func.func @transform_0(%arg0: i32) -> (i32, i32) {
    %c0_i32 = arith.constant 0 : i32
    %c0_i32_0 = arith.constant 0 : i32
    return %arg0, %c0_i32 : i32, i32
  }
  func.func @transform_1(%arg0: i32) -> (i32, i32) {
    %c0_i32 = arith.constant 0 : i32
    %c0_i32_0 = arith.constant 0 : i32
    %c0_i32_1 = arith.constant 0 : i32
    return %c0_i32, %c0_i32_0 : i32, i32
  }
  func.func @transform_2(%arg0: i32) -> (i32, i32) {
    %c0_i32 = arith.constant 0 : i32
    %c0_i32_0 = arith.constant 0 : i32
    %c0_i32_1 = arith.constant 0 : i32
    return %c0_i32, %c0_i32_0 : i32, i32
  }
  func.func @transform_3(%arg0: i32) -> (i32, i32) {
    %c0_i32 = arith.constant 0 : i32
    %c0_i32_0 = arith.constant 0 : i32
    %c0_i32_1 = arith.constant 0 : i32
    return %c0_i32, %c0_i32_0 : i32, i32
  }
  func.func @transform_4(%arg0: i32) -> (i32, i32) {
    %c0_i32 = arith.constant 0 : i32
    %c0_i32_0 = arith.constant 0 : i32
    return %arg0, %c0_i32 : i32, i32
  }
}

</mosaic_0001>

<bundles_post_ra>
// kernel: netg_forward.1
= control target key start
LH: loop header
LB: loop body
LE: loop exit
PB: predicated region body
PF: predicated region fallthrough
CT: control target
= control target key end

     0   :  { %9 = vsyncpa [#allocation3], 0  ;;  %s3348_s0 = inlined_call_operand.vmem [shape: f32[8,16], index: 0, kind: input, shape index: {}]   ;;  %s3349_s1 = inlined_call_operand.hbm [shape: f32[16,512], index: 1, kind: input, shape index: {}]   ;;  %s3350_s2 = inlined_call_operand.hbm [shape: f32[512,1024], index: 2, kind: input, shape index: {}]   ;;  %s3351_s3 = inlined_call_operand.hbm [shape: f32[1024,768], index: 3, kind: input, shape index: {}]   ;;  %s3352_s4 = inlined_call_operand.vmem [shape: f32[8,768], index: 4, kind: output, shape index: {}]  }
   0x1   :  { %10 = vsyncpa [#allocation5], 0  ;;  %s30_s17 = sshll.u32 %s3350_s2, 4  ;;  %s3168_s18 = smov [#allocation4]   ;;  %s31_s17 = int_to_ptr.hbm [resolvable:$true] %s30_s17 }
   0x2   :  { %s32_s19 = sshll.u32 %s3168_s18, 4  ;;  %s17_s22 = sshll.u32 %s3349_s1, 4  ;;  %s33_s19 = int_to_ptr.vmem [resolvable:$true] %s32_s19  ;;  %s18_s22 = int_to_ptr.hbm [resolvable:$true] %s17_s22 }
   0x3   :  { %s3169_s23 = smov 1024   ;;  %s3170_s24 = smov 64  }
   0x4   :  { %38 = dma.hbm_to_vmem [thread:$0]  %s31_s17, 65536, %s33_s19, [#allocation5], %s3169_s23, %s3169_s23, %s3170_s24  }
   0x5   :  { %s3171_s25 = smov [#allocation2]   ;;  %s3172_s27 = smov 512  }
   0x6   :  { %s19_s26 = sshll.u32 %s3171_s25, 4  ;;  %s3173_s28 = smov 32   ;;  %s20_s26 = int_to_ptr.vmem [resolvable:$true] %s19_s26 }
   0x7   :  { %25 = dma.hbm_to_vmem [thread:$0]  %s18_s22, 1024, %s20_s26, [#allocation3], %s3172_s27, %s3172_s27, %s3173_s28  }
   0x8   :  { %s43_s30 = sshll.u32 %s3351_s3, 4  ;;  %s3174_s5 = smov [#allocation6]   ;;  %s44_s30 = int_to_ptr.hbm [resolvable:$true] %s43_s30 }
   0x9   :  { %s45_s6 = sshll.u32 %s3174_s5, 4  ;;  %s3175_s7 = smov 768   ;;  %s46_s6 = int_to_ptr.vmem [resolvable:$true] %s45_s6 }
   0xa   :  { %s3176_s1 = smov 48  }
   0xb   :  { %51 = dma.hbm_to_vmem [thread:$0]  %s44_s30, 98304, %s46_s6, [#allocation5], %s3175_s7, %s3175_s7, %s3176_s1  }
   0xc   :  { %3164 = dma.done.wait [#allocation3], 1024  }
   0xd   :  { %3165 = vsyncadd [#allocation3], 4294966272 }
   0xe   :  { %3166 = dma.done.wait [#allocation5], 163840  }
   0xf   :  { %3167 = vsyncadd [#allocation5], 4294803456  ;;  %v69_v0 = vld [vmem:[#allocation2 + $0x20] sm:$0xff]  ;;  %v70_v1 = vld [vmem:[#allocation2 + $0x28] sm:$0xff]  ;;  %vm73_vm0 = vcmask 130048  }
  0x10   :  { %v71_v2 = vld [vmem:[#allocation2 + $0x30] sm:$0xff]  ;;  %91 = vmatpush.msra.mxu0 %v69_v0  ;;  %111 = vmatpush.msra.mxu1 %v70_v1  ;;  %v72_v3 = vld [vmem:[#allocation2 + $0x38] sm:$0xff]  ;;  %v65_v4 = vld [vmem:[#allocation2] sm:$0xff] }
  0x11   :  { %v66_v5 = vld [vmem:[#allocation2 + $0x8] sm:$0xff]  ;;  %131 = vmatpush.msra.mxu2 %v71_v2  ;;  %151 = vmatpush.msra.mxu3 %v72_v3  ;;  %v67_v6 = vld [vmem:[#allocation2 + $0x10] sm:$0xff]  ;;  %v68_v7 = vld [vmem:[#allocation2 + $0x18] sm:$0xff] }
  0x12   :  { %v64_v8 = vld [vmem:[%s3348_s0] sm:$0xff]  ;;  %92 = vmatpush.msra.mxu0 %v65_v4  ;;  %112 = vmatpush.msra.mxu1 %v66_v5 }
  0x13   :  { %132 = vmatpush.msra.mxu2 %v67_v6  ;;  %152 = vmatpush.msra.mxu3 %v68_v7  ;;  %v281_v9 = vld [vmem:[#allocation4 + $0x3c0] sm:$0xff]  ;;  %v282_v7 = vld [vmem:[#allocation4 + $0x3c8] sm:$0xff] }
  0x14   :  { %v409_v10 = vld [vmem:[#allocation4 + $0x7c0] sm:$0xff]  ;;  %3067 = vmatmul.msk.f32.vlgmr.msra.gmra.mxu0 %vm73_vm0, %v64_v8  ;;  %3068 = vmatmul.msk.f32.vlgmr.msra.gmra.mxu1 %vm73_vm0, %v64_v8 }
  0x15   :  { %v537_v11 = vld [vmem:[#allocation4 + $0xbc0] sm:$0xff]  ;;  %3069 = vmatmul.msk.f32.vlgmr.msra.gmra.mxu2 %vm73_vm0, %v64_v8  ;;  %3070 = vmatmul.msk.f32.vlgmr.msra.gmra.mxu3 %vm73_vm0, %v64_v8  ;;  %v410_v8 = vld [vmem:[#allocation4 + $0x7c8] sm:$0xff] }
  0x16   :  { %v273_v12 = vld [vmem:[#allocation4 + $0x380] sm:$0xff]  ;;  %673 = vmatpush.msrb.mxu0 %v281_v9  ;;  %693 = vmatpush.msrb.mxu1 %v409_v10 }
  0x17   :  { %v401_v13 = vld [vmem:[#allocation4 + $0x780] sm:$0xff]  ;;  %713 = vmatpush.msrb.mxu2 %v537_v11  ;;  %v274_v11 = vld [vmem:[#allocation4 + $0x388] sm:$0xff] }
  0x18   :  { %v665_v14 = vld [vmem:[#allocation4 + $0xfc0] sm:$0xff]  ;;  %674 = vmatpush.msrb.mxu0 %v273_v12  ;;  %694 = vmatpush.msrb.mxu1 %v401_v13  ;;  %v402_v12 = vld [vmem:[#allocation4 + $0x788] sm:$0xff] }
  0x19   :  { %v529_v15 = vld [vmem:[#allocation4 + $0xb80] sm:$0xff]  ;;  %733 = vmatpush.msrb.mxu3 %v665_v14  ;;  %v538_v13 = vld [vmem:[#allocation4 + $0xbc8] sm:$0xff] }
  0x1a   :  { %v657_v16 = vld [vmem:[#allocation4 + $0xf80] sm:$0xff]  ;;  %714 = vmatpush.msrb.mxu2 %v529_v15  ;;  %v666_v14 = vld [vmem:[#allocation4 + $0xfc8] sm:$0xff] }
  0x1b   :  { %v265_v17 = vld [vmem:[#allocation4 + $0x340] sm:$0xff]  ;;  %734 = vmatpush.msrb.mxu3 %v657_v16  ;;  %v266_v15 = vld [vmem:[#allocation4 + $0x348] sm:$0xff] }
  0x1c   :  { %v393_v18 = vld [vmem:[#allocation4 + $0x740] sm:$0xff]  ;;  %675 = vmatpush.msrb.mxu0 %v265_v17  ;;  %v394_v16 = vld [vmem:[#allocation4 + $0x748] sm:$0xff] }
  0x1d   :  { %v521_v19 = vld [vmem:[#allocation4 + $0xb40] sm:$0xff]  ;;  %695 = vmatpush.msrb.mxu1 %v393_v18  ;;  %v530_v17 = vld [vmem:[#allocation4 + $0xb88] sm:$0xff] }
  0x1e   :  { %v649_v20 = vld [vmem:[#allocation4 + $0xf40] sm:$0xff]  ;;  %715 = vmatpush.msrb.mxu2 %v521_v19  ;;  %v658_v18 = vld [vmem:[#allocation4 + $0xf88] sm:$0xff] }
  0x1f   :  { %v257_v21 = vld [vmem:[#allocation4 + $0x300] sm:$0xff]  ;;  %735 = vmatpush.msrb.mxu3 %v649_v20  ;;  %v258_v19 = vld [vmem:[#allocation4 + $0x308] sm:$0xff] }
  0x20   :  { %v385_v22 = vld [vmem:[#allocation4 + $0x700] sm:$0xff]  ;;  %676 = vmatpush.msrb.mxu0 %v257_v21  ;;  %v386_v20 = vld [vmem:[#allocation4 + $0x708] sm:$0xff] }
  0x21   :  { %v513_v23 = vld [vmem:[#allocation4 + $0xb00] sm:$0xff]  ;;  %696 = vmatpush.msrb.mxu1 %v385_v22  ;;  %v522_v21 = vld [vmem:[#allocation4 + $0xb48] sm:$0xff] }
  0x22   :  { %v641_v24 = vld [vmem:[#allocation4 + $0xf00] sm:$0xff]  ;;  %716 = vmatpush.msrb.mxu2 %v513_v23  ;;  %v650_v22 = vld [vmem:[#allocation4 + $0xf48] sm:$0xff] }
  0x23   :  { %v249_v25 = vld [vmem:[#allocation4 + $0x2c0] sm:$0xff]  ;;  %736 = vmatpush.msrb.mxu3 %v641_v24  ;;  %v250_v23 = vld [vmem:[#allocation4 + $0x2c8] sm:$0xff] }
  0x24   :  { %v377_v26 = vld [vmem:[#allocation4 + $0x6c0] sm:$0xff]  ;;  %677 = vmatpush.msrb.mxu0 %v249_v25  ;;  %v378_v24 = vld [vmem:[#allocation4 + $0x6c8] sm:$0xff] }
  0x25   :  { %v505_v27 = vld [vmem:[#allocation4 + $0xac0] sm:$0xff]  ;;  %697 = vmatpush.msrb.mxu1 %v377_v26  ;;  %v514_v25 = vld [vmem:[#allocation4 + $0xb08] sm:$0xff] }
  0x26   :  { %v633_v28 = vld [vmem:[#allocation4 + $0xec0] sm:$0xff]  ;;  %717 = vmatpush.msrb.mxu2 %v505_v27  ;;  %v642_v26 = vld [vmem:[#allocation4 + $0xf08] sm:$0xff] }
  0x27   :  { %v241_v29 = vld [vmem:[#allocation4 + $0x280] sm:$0xff]  ;;  %737 = vmatpush.msrb.mxu3 %v633_v28  ;;  %v242_v27 = vld [vmem:[#allocation4 + $0x288] sm:$0xff] }
  0x28   :  { %v369_v30 = vld [vmem:[#allocation4 + $0x680] sm:$0xff]  ;;  %678 = vmatpush.msrb.mxu0 %v241_v29  ;;  %v370_v28 = vld [vmem:[#allocation4 + $0x688] sm:$0xff] }
  0x29   :  { %v497_v31 = vld [vmem:[#allocation4 + $0xa80] sm:$0xff]  ;;  %698 = vmatpush.msrb.mxu1 %v369_v30  ;;  %v506_v29 = vld [vmem:[#allocation4 + $0xac8] sm:$0xff] }
  0x2a   :  { %v625_v32 = vld [vmem:[#allocation4 + $0xe80] sm:$0xff]  ;;  %718 = vmatpush.msrb.mxu2 %v497_v31  ;;  %v634_v30 = vld [vmem:[#allocation4 + $0xec8] sm:$0xff] }
  0x2b   :  { %v233_v33 = vld [vmem:[#allocation4 + $0x240] sm:$0xff]  ;;  %738 = vmatpush.msrb.mxu3 %v625_v32  ;;  %v234_v31 = vld [vmem:[#allocation4 + $0x248] sm:$0xff] }
  0x2c   :  { %v361_v34 = vld [vmem:[#allocation4 + $0x640] sm:$0xff]  ;;  %679 = vmatpush.msrb.mxu0 %v233_v33  ;;  %v362_v32 = vld [vmem:[#allocation4 + $0x648] sm:$0xff] }
  0x2d   :  { %v489_v35 = vld [vmem:[#allocation4 + $0xa40] sm:$0xff]  ;;  %699 = vmatpush.msrb.mxu1 %v361_v34  ;;  %v498_v33 = vld [vmem:[#allocation4 + $0xa88] sm:$0xff] }
  0x2e   :  { %v617_v36 = vld [vmem:[#allocation4 + $0xe40] sm:$0xff]  ;;  %719 = vmatpush.msrb.mxu2 %v489_v35  ;;  %v626_v34 = vld [vmem:[#allocation4 + $0xe88] sm:$0xff] }
  0x2f   :  { %v225_v37 = vld [vmem:[#allocation4 + $0x200] sm:$0xff]  ;;  %739 = vmatpush.msrb.mxu3 %v617_v36  ;;  %v226_v35 = vld [vmem:[#allocation4 + $0x208] sm:$0xff] }
  0x30   :  { %v353_v38 = vld [vmem:[#allocation4 + $0x600] sm:$0xff]  ;;  %680 = vmatpush.msrb.mxu0 %v225_v37  ;;  %v354_v36 = vld [vmem:[#allocation4 + $0x608] sm:$0xff] }
  0x31   :  { %v481_v39 = vld [vmem:[#allocation4 + $0xa00] sm:$0xff]  ;;  %700 = vmatpush.msrb.mxu1 %v353_v38  ;;  %v490_v37 = vld [vmem:[#allocation4 + $0xa48] sm:$0xff] }
  0x32   :  { %v609_v40 = vld [vmem:[#allocation4 + $0xe00] sm:$0xff]  ;;  %720 = vmatpush.msrb.mxu2 %v481_v39  ;;  %v618_v38 = vld [vmem:[#allocation4 + $0xe48] sm:$0xff] }
  0x33   :  { %v217_v41 = vld [vmem:[#allocation4 + $0x1c0] sm:$0xff]  ;;  %740 = vmatpush.msrb.mxu3 %v609_v40  ;;  %v218_v39 = vld [vmem:[#allocation4 + $0x1c8] sm:$0xff] }
  0x34   :  { %v345_v42 = vld [vmem:[#allocation4 + $0x5c0] sm:$0xff]  ;;  %681 = vmatpush.msrb.mxu0 %v217_v41  ;;  %v346_v40 = vld [vmem:[#allocation4 + $0x5c8] sm:$0xff] }
  0x35   :  { %v473_v43 = vld [vmem:[#allocation4 + $0x9c0] sm:$0xff]  ;;  %701 = vmatpush.msrb.mxu1 %v345_v42  ;;  %v482_v41 = vld [vmem:[#allocation4 + $0xa08] sm:$0xff] }
  0x36   :  { %v601_v44 = vld [vmem:[#allocation4 + $0xdc0] sm:$0xff]  ;;  %721 = vmatpush.msrb.mxu2 %v473_v43  ;;  %v610_v42 = vld [vmem:[#allocation4 + $0xe08] sm:$0xff] }
  0x37   :  { %v209_v45 = vld [vmem:[#allocation4 + $0x180] sm:$0xff]  ;;  %741 = vmatpush.msrb.mxu3 %v601_v44  ;;  %v210_v43 = vld [vmem:[#allocation4 + $0x188] sm:$0xff] }
  0x38   :  { %v337_v46 = vld [vmem:[#allocation4 + $0x580] sm:$0xff]  ;;  %682 = vmatpush.msrb.mxu0 %v209_v45  ;;  %v338_v44 = vld [vmem:[#allocation4 + $0x588] sm:$0xff] }
  0x39   :  { %v465_v47 = vld [vmem:[#allocation4 + $0x980] sm:$0xff]  ;;  %702 = vmatpush.msrb.mxu1 %v337_v46  ;;  %v474_v45 = vld [vmem:[#allocation4 + $0x9c8] sm:$0xff] }
  0x3a   :  { %v593_v48 = vld [vmem:[#allocation4 + $0xd80] sm:$0xff]  ;;  %722 = vmatpush.msrb.mxu2 %v465_v47  ;;  %v602_v46 = vld [vmem:[#allocation4 + $0xdc8] sm:$0xff] }
  0x3b   :  { %v201_v49 = vld [vmem:[#allocation4 + $0x140] sm:$0xff]  ;;  %742 = vmatpush.msrb.mxu3 %v593_v48  ;;  %v202_v47 = vld [vmem:[#allocation4 + $0x148] sm:$0xff] }
  0x3c   :  { %v329_v50 = vld [vmem:[#allocation4 + $0x540] sm:$0xff]  ;;  %683 = vmatpush.msrb.mxu0 %v201_v49  ;;  %v330_v48 = vld [vmem:[#allocation4 + $0x548] sm:$0xff] }
  0x3d   :  { %v457_v51 = vld [vmem:[#allocation4 + $0x940] sm:$0xff]  ;;  %703 = vmatpush.msrb.mxu1 %v329_v50  ;;  %v466_v49 = vld [vmem:[#allocation4 + $0x988] sm:$0xff] }
  0x3e   :  { %v585_v52 = vld [vmem:[#allocation4 + $0xd40] sm:$0xff]  ;;  %723 = vmatpush.msrb.mxu2 %v457_v51  ;;  %v594_v50 = vld [vmem:[#allocation4 + $0xd88] sm:$0xff] }
  0x3f   :  { %v193_v53 = vld [vmem:[#allocation4 + $0x100] sm:$0xff]  ;;  %743 = vmatpush.msrb.mxu3 %v585_v52  ;;  %v194_v51 = vld [vmem:[#allocation4 + $0x108] sm:$0xff] }
  0x40   :  { %v321_v54 = vld [vmem:[#allocation4 + $0x500] sm:$0xff]  ;;  %684 = vmatpush.msrb.mxu0 %v193_v53  ;;  %v322_v52 = vld [vmem:[#allocation4 + $0x508] sm:$0xff] }
  0x41   :  { %v449_v55 = vld [vmem:[#allocation4 + $0x900] sm:$0xff]  ;;  %704 = vmatpush.msrb.mxu1 %v321_v54  ;;  %v458_v53 = vld [vmem:[#allocation4 + $0x948] sm:$0xff] }
  0x42   :  { %v577_v56 = vld [vmem:[#allocation4 + $0xd00] sm:$0xff]  ;;  %724 = vmatpush.msrb.mxu2 %v449_v55  ;;  %v586_v54 = vld [vmem:[#allocation4 + $0xd48] sm:$0xff] }
  0x43   :  { %v185_v57 = vld [vmem:[#allocation4 + $0xc0] sm:$0xff]  ;;  %744 = vmatpush.msrb.mxu3 %v577_v56  ;;  %v186_v55 = vld [vmem:[#allocation4 + $0xc8] sm:$0xff] }
  0x44   :  { %v313_v58 = vld [vmem:[#allocation4 + $0x4c0] sm:$0xff]  ;;  %685 = vmatpush.msrb.mxu0 %v185_v57  ;;  %v314_v56 = vld [vmem:[#allocation4 + $0x4c8] sm:$0xff] }
  0x45   :  { %v441_v59 = vld [vmem:[#allocation4 + $0x8c0] sm:$0xff]  ;;  %705 = vmatpush.msrb.mxu1 %v313_v58  ;;  %v178_v57 = vld [vmem:[#allocation4 + $0x88] sm:$0xff] }
  0x46   :  { %v569_v60 = vld [vmem:[#allocation4 + $0xcc0] sm:$0xff]  ;;  %725 = vmatpush.msrb.mxu2 %v441_v59  ;;  %v306_v58 = vld [vmem:[#allocation4 + $0x488] sm:$0xff] }
  0x47   :  { %v177_v61 = vld [vmem:[#allocation4 + $0x80] sm:$0xff]  ;;  %745 = vmatpush.msrb.mxu3 %v569_v60  ;;  %v170_v59 = vld [vmem:[#allocation4 + $0x48] sm:$0xff] }
  0x48   :  { %v305_v62 = vld [vmem:[#allocation4 + $0x480] sm:$0xff]  ;;  %686 = vmatpush.msrb.mxu0 %v177_v61  ;;  %v298_v60 = vld [vmem:[#allocation4 + $0x448] sm:$0xff] }
  0x49   :  { %v433_v63 = vld [vmem:[#allocation4 + $0x880] sm:$0xff]  ;;  %706 = vmatpush.msrb.mxu1 %v305_v62  ;;  %v450_v61 = vld [vmem:[#allocation4 + $0x908] sm:$0xff] }
  0x4a   :  { %v561_v0 = vld [vmem:[#allocation4 + $0xc80] sm:$0xff]  ;;  %726 = vmatpush.msrb.mxu2 %v433_v63  ;;  %v578_v62 = vld [vmem:[#allocation4 + $0xd08] sm:$0xff] }
  0x4b   :  { %v169_v1 = vld [vmem:[#allocation4 + $0x40] sm:$0xff]  ;;  %746 = vmatpush.msrb.mxu3 %v561_v0  ;;  %v162_v63 = vld [vmem:[#allocation4 + $0x8] sm:$0xff] }
  0x4c   :  { %v297_v2 = vld [vmem:[#allocation4 + $0x440] sm:$0xff]  ;;  %687 = vmatpush.msrb.mxu0 %v169_v1  ;;  %v290_v0 = vld [vmem:[#allocation4 + $0x408] sm:$0xff] }
  0x4d   :  { %v425_v3 = vld [vmem:[#allocation4 + $0x840] sm:$0xff]  ;;  %707 = vmatpush.msrb.mxu1 %v297_v2  ;;  %v442_v1 = vld [vmem:[#allocation4 + $0x8c8] sm:$0xff] }
  0x4e   :  { %v553_v4 = vld [vmem:[#allocation4 + $0xc40] sm:$0xff]  ;;  %727 = vmatpush.msrb.mxu2 %v425_v3  ;;  %v570_v2 = vld [vmem:[#allocation4 + $0xcc8] sm:$0xff] }
  0x4f   :  { %v161_v5 = vld [vmem:[#allocation4] sm:$0xff]  ;;  %747 = vmatpush.msrb.mxu3 %v553_v4  ;;  %v434_v3 = vld [vmem:[#allocation4 + $0x888] sm:$0xff] }
  0x50   :  { %v289_v6 = vld [vmem:[#allocation4 + $0x400] sm:$0xff]  ;;  %688 = vmatpush.msrb.mxu0 %v161_v5  ;;  %v562_v4 = vld [vmem:[#allocation4 + $0xc88] sm:$0xff] }
  0x51   :  { %v417_v9 = vld [vmem:[#allocation4 + $0x800] sm:$0xff]  ;;  %708 = vmatpush.msrb.mxu1 %v289_v6  ;;  %v426_v5 = vld [vmem:[#allocation4 + $0x848] sm:$0xff] }
  0x52   :  { %v545_v10 = vld [vmem:[#allocation4 + $0xc00] sm:$0xff]  ;;  %753 = vmatpush.msra.mxu0 %v282_v7  ;;  %728 = vmatpush.msrb.mxu2 %v417_v9  ;;  %v554_v6 = vld [vmem:[#allocation4 + $0xc48] sm:$0xff] }
  0x53   :  { %773 = vmatpush.msra.mxu1 %v410_v8  ;;  %748 = vmatpush.msrb.mxu3 %v545_v10  ;;  %v418_v7 = vld [vmem:[#allocation4 + $0x808] sm:$0xff] }
  0x54   :  { %754 = vmatpush.msra.mxu0 %v274_v11  ;;  %793 = vmatpush.msra.mxu2 %v538_v13  ;;  %v546_v8 = vld [vmem:[#allocation4 + $0xc08] sm:$0xff]  ;;  %v283_v13 = vld [vmem:[#allocation4 + $0x3d0] sm:$0xff] }
  0x55   :  { %774 = vmatpush.msra.mxu1 %v402_v12  ;;  %813 = vmatpush.msra.mxu3 %v666_v14  ;;  %v411_v14 = vld [vmem:[#allocation4 + $0x7d0] sm:$0xff] }
  0x56   :  { %755 = vmatpush.msra.mxu0 %v266_v15  ;;  %794 = vmatpush.msra.mxu2 %v530_v17  ;;  %v275_v15 = vld [vmem:[#allocation4 + $0x390] sm:$0xff] }
  0x57   :  { %775 = vmatpush.msra.mxu1 %v394_v16  ;;  %814 = vmatpush.msra.mxu3 %v658_v18  ;;  %v403_v16 = vld [vmem:[#allocation4 + $0x790] sm:$0xff] }
  0x58   :  { %756 = vmatpush.msra.mxu0 %v258_v19  ;;  %795 = vmatpush.msra.mxu2 %v522_v21  ;;  %v267_v17 = vld [vmem:[#allocation4 + $0x350] sm:$0xff] }
  0x59   :  { %776 = vmatpush.msra.mxu1 %v386_v20  ;;  %815 = vmatpush.msra.mxu3 %v650_v22  ;;  %v395_v18 = vld [vmem:[#allocation4 + $0x750] sm:$0xff] }
  0x5a   :  { %757 = vmatpush.msra.mxu0 %v250_v23  ;;  %796 = vmatpush.msra.mxu2 %v514_v25  ;;  %v259_v23 = vld [vmem:[#allocation4 + $0x310] sm:$0xff] }
  0x5b   :  { %777 = vmatpush.msra.mxu1 %v378_v24  ;;  %816 = vmatpush.msra.mxu3 %v642_v26  ;;  %v387_v24 = vld [vmem:[#allocation4 + $0x710] sm:$0xff] }
  0x5c   :  { %758 = vmatpush.msra.mxu0 %v242_v27  ;;  %797 = vmatpush.msra.mxu2 %v506_v29  ;;  %v539_v25 = vld [vmem:[#allocation4 + $0xbd0] sm:$0xff] }
  0x5d   :  { %778 = vmatpush.msra.mxu1 %v370_v28  ;;  %817 = vmatpush.msra.mxu3 %v634_v30  ;;  %v667_v26 = vld [vmem:[#allocation4 + $0xfd0] sm:$0xff] }
  0x5e   :  { %759 = vmatpush.msra.mxu0 %v234_v31  ;;  %798 = vmatpush.msra.mxu2 %v498_v33  ;;  %v251_v27 = vld [vmem:[#allocation4 + $0x2d0] sm:$0xff] }
  0x5f   :  { %779 = vmatpush.msra.mxu1 %v362_v32  ;;  %818 = vmatpush.msra.mxu3 %v626_v34  ;;  %v379_v28 = vld [vmem:[#allocation4 + $0x6d0] sm:$0xff] }
  0x60   :  { %760 = vmatpush.msra.mxu0 %v226_v35  ;;  %799 = vmatpush.msra.mxu2 %v490_v37  ;;  %v531_v29 = vld [vmem:[#allocation4 + $0xb90] sm:$0xff] }
  0x61   :  { %780 = vmatpush.msra.mxu1 %v354_v36  ;;  %819 = vmatpush.msra.mxu3 %v618_v38  ;;  %v659_v30 = vld [vmem:[#allocation4 + $0xf90] sm:$0xff] }
  0x62   :  { %761 = vmatpush.msra.mxu0 %v218_v39  ;;  %800 = vmatpush.msra.mxu2 %v482_v41  ;;  %v243_v31 = vld [vmem:[#allocation4 + $0x290] sm:$0xff] }
  0x63   :  { %781 = vmatpush.msra.mxu1 %v346_v40  ;;  %820 = vmatpush.msra.mxu3 %v610_v42  ;;  %v371_v32 = vld [vmem:[#allocation4 + $0x690] sm:$0xff] }
  0x64   :  { %762 = vmatpush.msra.mxu0 %v210_v43  ;;  %801 = vmatpush.msra.mxu2 %v474_v45  ;;  %v523_v33 = vld [vmem:[#allocation4 + $0xb50] sm:$0xff] }
  0x65   :  { %782 = vmatpush.msra.mxu1 %v338_v44  ;;  %821 = vmatpush.msra.mxu3 %v602_v46  ;;  %v651_v34 = vld [vmem:[#allocation4 + $0xf50] sm:$0xff] }
  0x66   :  { %763 = vmatpush.msra.mxu0 %v202_v47  ;;  %802 = vmatpush.msra.mxu2 %v466_v49  ;;  %v235_v35 = vld [vmem:[#allocation4 + $0x250] sm:$0xff] }
  0x67   :  { %783 = vmatpush.msra.mxu1 %v330_v48  ;;  %822 = vmatpush.msra.mxu3 %v594_v50  ;;  %v363_v36 = vld [vmem:[#allocation4 + $0x650] sm:$0xff] }
  0x68   :  { %764 = vmatpush.msra.mxu0 %v194_v51  ;;  %803 = vmatpush.msra.mxu2 %v458_v53  ;;  %v515_v37 = vld [vmem:[#allocation4 + $0xb10] sm:$0xff] }
  0x69   :  { %784 = vmatpush.msra.mxu1 %v322_v52  ;;  %823 = vmatpush.msra.mxu3 %v586_v54  ;;  %v643_v38 = vld [vmem:[#allocation4 + $0xf10] sm:$0xff] }
  0x6a   :  { %765 = vmatpush.msra.mxu0 %v186_v55  ;;  %804 = vmatpush.msra.mxu2 %v450_v61  ;;  %v227_v39 = vld [vmem:[#allocation4 + $0x210] sm:$0xff] }
  0x6b   :  { %785 = vmatpush.msra.mxu1 %v314_v56  ;;  %824 = vmatpush.msra.mxu3 %v578_v62  ;;  %v355_v40 = vld [vmem:[#allocation4 + $0x610] sm:$0xff] }
  0x6c   :  { %766 = vmatpush.msra.mxu0 %v178_v57  ;;  %805 = vmatpush.msra.mxu2 %v442_v1  ;;  %v507_v41 = vld [vmem:[#allocation4 + $0xad0] sm:$0xff] }
  0x6d   :  { %786 = vmatpush.msra.mxu1 %v306_v58  ;;  %825 = vmatpush.msra.mxu3 %v570_v2  ;;  %v635_v42 = vld [vmem:[#allocation4 + $0xed0] sm:$0xff] }
  0x6e   :  { %767 = vmatpush.msra.mxu0 %v170_v59  ;;  %806 = vmatpush.msra.mxu2 %v434_v3  ;;  %v219_v43 = vld [vmem:[#allocation4 + $0x1d0] sm:$0xff] }
  0x6f   :  { %787 = vmatpush.msra.mxu1 %v298_v60  ;;  %826 = vmatpush.msra.mxu3 %v562_v4  ;;  %v347_v44 = vld [vmem:[#allocation4 + $0x5d0] sm:$0xff] }
  0x70   :  { %768 = vmatpush.msra.mxu0 %v162_v63  ;;  %807 = vmatpush.msra.mxu2 %v426_v5  ;;  %v499_v45 = vld [vmem:[#allocation4 + $0xa90] sm:$0xff] }
  0x71   :  { %788 = vmatpush.msra.mxu1 %v290_v0  ;;  %827 = vmatpush.msra.mxu3 %v554_v6  ;;  %v627_v46 = vld [vmem:[#allocation4 + $0xe90] sm:$0xff] }
  0x72   :  { %808 = vmatpush.msra.mxu2 %v418_v7  ;;  %v211_v47 = vld [vmem:[#allocation4 + $0x190] sm:$0xff] }
  0x73   :  { %828 = vmatpush.msra.mxu3 %v546_v8  ;;  %v339_v48 = vld [vmem:[#allocation4 + $0x590] sm:$0xff] }
  0x74   :  { %v491_v49 = vld [vmem:[#allocation4 + $0xa50] sm:$0xff] }
  0x75   :  { %v619_v50 = vld [vmem:[#allocation4 + $0xe50] sm:$0xff] }
  0x76   :  { %v203_v51 = vld [vmem:[#allocation4 + $0x150] sm:$0xff] }
  0x77   :  { %v331_v52 = vld [vmem:[#allocation4 + $0x550] sm:$0xff] }
  0x78   :  { %v483_v53 = vld [vmem:[#allocation4 + $0xa10] sm:$0xff] }
  0x79   :  { %v611_v54 = vld [vmem:[#allocation4 + $0xe10] sm:$0xff] }
  0x7a   :  { %v195_v55 = vld [vmem:[#allocation4 + $0x110] sm:$0xff] }
  0x7b   :  { %v323_v56 = vld [vmem:[#allocation4 + $0x510] sm:$0xff] }
  0x7c   :  { %v475_v57 = vld [vmem:[#allocation4 + $0x9d0] sm:$0xff] }
  0x7d   :  { %v603_v58 = vld [vmem:[#allocation4 + $0xdd0] sm:$0xff] }
  0x7e   :  { %v187_v59 = vld [vmem:[#allocation4 + $0xd0] sm:$0xff] }
  0x7f   :  { %v315_v60 = vld [vmem:[#allocation4 + $0x4d0] sm:$0xff] }
  0x80   :  { %v467_v61 = vld [vmem:[#allocation4 + $0x990] sm:$0xff] }
  0x81   :  { %v595_v62 = vld [vmem:[#allocation4 + $0xd90] sm:$0xff] }
  0x82   :  { %v179_v63 = vld [vmem:[#allocation4 + $0x90] sm:$0xff] }
  0x83   :  { %v307_v0 = vld [vmem:[#allocation4 + $0x490] sm:$0xff] }
  0x84   :  { %v459_v1 = vld [vmem:[#allocation4 + $0x950] sm:$0xff] }
  0x85   :  { %v587_v2 = vld [vmem:[#allocation4 + $0xd50] sm:$0xff] }
  0x86   :  { %v171_v3 = vld [vmem:[#allocation4 + $0x50] sm:$0xff] }
  0x87   :  { %v299_v4 = vld [vmem:[#allocation4 + $0x450] sm:$0xff] }
  0x88   :  { %v451_v5 = vld [vmem:[#allocation4 + $0x910] sm:$0xff] }
  0x89   :  { %v579_v6 = vld [vmem:[#allocation4 + $0xd10] sm:$0xff] }
  0x8a   :  { %v163_v7 = vld [vmem:[#allocation4 + $0x10] sm:$0xff] }
  0x8b   :  { %v291_v8 = vld [vmem:[#allocation4 + $0x410] sm:$0xff] }
  0x91   :  { %v94_v9 = vpop.f32.mrf.mxu0  ;;  %v114_v10 = vpop.f32.mrf.mxu1 }
  0x92   :  { %v3214_v11 = vmax.f32 %v94_v9, 0.0  ;;  %v3216_v12 = vmax.f32 %v114_v10, 0.0  ;;  %v443_v9 = vld [vmem:[#allocation4 + $0x8d0] sm:$0xff] }
  0x93   :  { %v571_v10 = vld [vmem:[#allocation4 + $0xcd0] sm:$0xff] }
  0x94   :  { %689 = vmatmul.f32.vlgmr.msrb.gmra.mxu0 %v3214_v11  ;;  %709 = vmatmul.f32.vlgmr.msrb.gmra.mxu1 %v3216_v12 }
  0x95   :  { %833 = vmatpush.msrb.mxu0 %v283_v13  ;;  %853 = vmatpush.msrb.mxu1 %v411_v14  ;;  %v284_v13 = vld [vmem:[#allocation4 + $0x3d8] sm:$0xff] }
  0x96   :  { %v412_v14 = vld [vmem:[#allocation4 + $0x7d8] sm:$0xff] }
  0x97   :  { %834 = vmatpush.msrb.mxu0 %v275_v15  ;;  %854 = vmatpush.msrb.mxu1 %v403_v16  ;;  %v435_v15 = vld [vmem:[#allocation4 + $0x890] sm:$0xff] }
  0x98   :  { %v134_v19 = vpop.f32.mrf.mxu2  ;;  %v154_v20 = vpop.f32.mrf.mxu3  ;;  %v563_v16 = vld [vmem:[#allocation4 + $0xc90] sm:$0xff] }
  0x99   :  { %v3220_v21 = vmax.f32 %v134_v19, 0.0  ;;  %v3222_v22 = vmax.f32 %v154_v20, 0.0  ;;  %835 = vmatpush.msrb.mxu0 %v267_v17  ;;  %855 = vmatpush.msrb.mxu1 %v395_v18  ;;  %v276_v17 = vld [vmem:[#allocation4 + $0x398] sm:$0xff]  ;;  %v427_v19 = vld [vmem:[#allocation4 + $0x850] sm:$0xff] }
  0x9a   :  { %v404_v18 = vld [vmem:[#allocation4 + $0x798] sm:$0xff]  ;;  %v555_v20 = vld [vmem:[#allocation4 + $0xc50] sm:$0xff] }
  0x9b   :  { %729 = vmatmul.f32.vlgmr.msrb.gmra.mxu2 %v3220_v21  ;;  %749 = vmatmul.f32.vlgmr.msrb.gmra.mxu3 %v3222_v22 }
  0x9c   :  { %836 = vmatpush.msrb.mxu0 %v259_v23  ;;  %856 = vmatpush.msrb.mxu1 %v387_v24  ;;  %v268_v23 = vld [vmem:[#allocation4 + $0x358] sm:$0xff] }
  0x9d   :  { %873 = vmatpush.msrb.mxu2 %v539_v25  ;;  %893 = vmatpush.msrb.mxu3 %v667_v26  ;;  %v396_v24 = vld [vmem:[#allocation4 + $0x758] sm:$0xff]  ;;  %v419_v25 = vld [vmem:[#allocation4 + $0x810] sm:$0xff] }
  0x9e   :  { %837 = vmatpush.msrb.mxu0 %v251_v27  ;;  %857 = vmatpush.msrb.mxu1 %v379_v28  ;;  %v547_v26 = vld [vmem:[#allocation4 + $0xc10] sm:$0xff]  ;;  %v260_v27 = vld [vmem:[#allocation4 + $0x318] sm:$0xff] }
  0x9f   :  { %874 = vmatpush.msrb.mxu2 %v531_v29  ;;  %894 = vmatpush.msrb.mxu3 %v659_v30  ;;  %v388_v28 = vld [vmem:[#allocation4 + $0x718] sm:$0xff] }
  0xa0   :  { %769 = vmatmul.f32.vlgmr.msra.gmra.mxu0 %v3214_v11  ;;  %789 = vmatmul.f32.vlgmr.msra.gmra.mxu1 %v3216_v12  ;;  %v540_v29 = vld [vmem:[#allocation4 + $0xbd8] sm:$0xff] }
  0xa1   :  { %838 = vmatpush.msrb.mxu0 %v243_v31  ;;  %858 = vmatpush.msrb.mxu1 %v371_v32  ;;  %v668_v30 = vld [vmem:[#allocation4 + $0xfd8] sm:$0xff] }
  0xa2   :  { %875 = vmatpush.msrb.mxu2 %v523_v33  ;;  %895 = vmatpush.msrb.mxu3 %v651_v34  ;;  %v252_v31 = vld [vmem:[#allocation4 + $0x2d8] sm:$0xff] }
  0xa3   :  { %839 = vmatpush.msrb.mxu0 %v235_v35  ;;  %859 = vmatpush.msrb.mxu1 %v363_v36  ;;  %v380_v32 = vld [vmem:[#allocation4 + $0x6d8] sm:$0xff] }
  0xa4   :  { %876 = vmatpush.msrb.mxu2 %v515_v37  ;;  %896 = vmatpush.msrb.mxu3 %v643_v38  ;;  %v532_v33 = vld [vmem:[#allocation4 + $0xb98] sm:$0xff] }
  0xa5   :  { %809 = vmatmul.f32.vlgmr.msra.gmra.mxu2 %v3220_v21  ;;  %829 = vmatmul.f32.vlgmr.msra.gmra.mxu3 %v3222_v22  ;;  %v660_v34 = vld [vmem:[#allocation4 + $0xf98] sm:$0xff] }
  0xa6   :  { %840 = vmatpush.msrb.mxu0 %v227_v39  ;;  %860 = vmatpush.msrb.mxu1 %v355_v40  ;;  %v244_v35 = vld [vmem:[#allocation4 + $0x298] sm:$0xff] }
  0xa7   :  { %877 = vmatpush.msrb.mxu2 %v507_v41  ;;  %897 = vmatpush.msrb.mxu3 %v635_v42  ;;  %v372_v36 = vld [vmem:[#allocation4 + $0x698] sm:$0xff] }
  0xa8   :  { %841 = vmatpush.msrb.mxu0 %v219_v43  ;;  %861 = vmatpush.msrb.mxu1 %v347_v44  ;;  %v524_v37 = vld [vmem:[#allocation4 + $0xb58] sm:$0xff] }
  0xa9   :  { %878 = vmatpush.msrb.mxu2 %v499_v45  ;;  %898 = vmatpush.msrb.mxu3 %v627_v46  ;;  %v652_v38 = vld [vmem:[#allocation4 + $0xf58] sm:$0xff] }
  0xaa   :  { %842 = vmatpush.msrb.mxu0 %v211_v47  ;;  %862 = vmatpush.msrb.mxu1 %v339_v48  ;;  %v236_v39 = vld [vmem:[#allocation4 + $0x258] sm:$0xff] }
  0xab   :  { %879 = vmatpush.msrb.mxu2 %v491_v49  ;;  %899 = vmatpush.msrb.mxu3 %v619_v50  ;;  %v364_v40 = vld [vmem:[#allocation4 + $0x658] sm:$0xff] }
  0xac   :  { %843 = vmatpush.msrb.mxu0 %v203_v51  ;;  %863 = vmatpush.msrb.mxu1 %v331_v52  ;;  %v516_v41 = vld [vmem:[#allocation4 + $0xb18] sm:$0xff] }
  0xad   :  { %880 = vmatpush.msrb.mxu2 %v483_v53  ;;  %900 = vmatpush.msrb.mxu3 %v611_v54  ;;  %v644_v42 = vld [vmem:[#allocation4 + $0xf18] sm:$0xff] }
  0xae   :  { %844 = vmatpush.msrb.mxu0 %v195_v55  ;;  %864 = vmatpush.msrb.mxu1 %v323_v56  ;;  %v228_v43 = vld [vmem:[#allocation4 + $0x218] sm:$0xff] }
  0xaf   :  { %881 = vmatpush.msrb.mxu2 %v475_v57  ;;  %901 = vmatpush.msrb.mxu3 %v603_v58  ;;  %v356_v44 = vld [vmem:[#allocation4 + $0x618] sm:$0xff] }
  0xb0   :  { %845 = vmatpush.msrb.mxu0 %v187_v59  ;;  %865 = vmatpush.msrb.mxu1 %v315_v60  ;;  %v508_v45 = vld [vmem:[#allocation4 + $0xad8] sm:$0xff] }
  0xb1   :  { %882 = vmatpush.msrb.mxu2 %v467_v61  ;;  %902 = vmatpush.msrb.mxu3 %v595_v62  ;;  %v636_v46 = vld [vmem:[#allocation4 + $0xed8] sm:$0xff] }
  0xb2   :  { %846 = vmatpush.msrb.mxu0 %v179_v63  ;;  %866 = vmatpush.msrb.mxu1 %v307_v0  ;;  %v220_v47 = vld [vmem:[#allocation4 + $0x1d8] sm:$0xff] }
  0xb3   :  { %883 = vmatpush.msrb.mxu2 %v459_v1  ;;  %903 = vmatpush.msrb.mxu3 %v587_v2  ;;  %v348_v48 = vld [vmem:[#allocation4 + $0x5d8] sm:$0xff] }
  0xb4   :  { %847 = vmatpush.msrb.mxu0 %v171_v3  ;;  %867 = vmatpush.msrb.mxu1 %v299_v4  ;;  %v500_v49 = vld [vmem:[#allocation4 + $0xa98] sm:$0xff] }
  0xb5   :  { %884 = vmatpush.msrb.mxu2 %v451_v5  ;;  %904 = vmatpush.msrb.mxu3 %v579_v6  ;;  %v628_v50 = vld [vmem:[#allocation4 + $0xe98] sm:$0xff] }
  0xb6   :  { %848 = vmatpush.msrb.mxu0 %v163_v7  ;;  %868 = vmatpush.msrb.mxu1 %v291_v8  ;;  %v212_v51 = vld [vmem:[#allocation4 + $0x198] sm:$0xff] }
  0xb7   :  { %885 = vmatpush.msrb.mxu2 %v443_v9  ;;  %905 = vmatpush.msrb.mxu3 %v571_v10  ;;  %v340_v52 = vld [vmem:[#allocation4 + $0x598] sm:$0xff] }
  0xb8   :  { %849 = vmatmul.f32.vlgmr.msrb.gmra.mxu0 %v3214_v11  ;;  %869 = vmatmul.f32.vlgmr.msrb.gmra.mxu1 %v3216_v12  ;;  %v492_v53 = vld [vmem:[#allocation4 + $0xa58] sm:$0xff] }
  0xb9   :  { %913 = vmatpush.msra.mxu0 %v284_v13  ;;  %933 = vmatpush.msra.mxu1 %v412_v14  ;;  %v620_v54 = vld [vmem:[#allocation4 + $0xe58] sm:$0xff] }
  0xba   :  { %886 = vmatpush.msrb.mxu2 %v435_v15  ;;  %906 = vmatpush.msrb.mxu3 %v563_v16  ;;  %v204_v55 = vld [vmem:[#allocation4 + $0x158] sm:$0xff] }
  0xbb   :  { %914 = vmatpush.msra.mxu0 %v276_v17  ;;  %934 = vmatpush.msra.mxu1 %v404_v18  ;;  %v332_v56 = vld [vmem:[#allocation4 + $0x558] sm:$0xff]  ;;  %v285_v17 = vld [vmem:[#allocation4 + $0x3e0] sm:$0xff] }
  0xbc   :  { %887 = vmatpush.msrb.mxu2 %v427_v19  ;;  %907 = vmatpush.msrb.mxu3 %v555_v20  ;;  %v484_v57 = vld [vmem:[#allocation4 + $0xa18] sm:$0xff]  ;;  %v413_v18 = vld [vmem:[#allocation4 + $0x7e0] sm:$0xff] }
  0xbd   :  { %915 = vmatpush.msra.mxu0 %v268_v23  ;;  %935 = vmatpush.msra.mxu1 %v396_v24  ;;  %v612_v58 = vld [vmem:[#allocation4 + $0xe18] sm:$0xff]  ;;  %v277_v23 = vld [vmem:[#allocation4 + $0x3a0] sm:$0xff] }
  0xbe   :  { %888 = vmatpush.msrb.mxu2 %v419_v25  ;;  %908 = vmatpush.msrb.mxu3 %v547_v26  ;;  %v196_v59 = vld [vmem:[#allocation4 + $0x118] sm:$0xff]  ;;  %v405_v24 = vld [vmem:[#allocation4 + $0x7a0] sm:$0xff] }
  0xbf   :  { %889 = vmatmul.f32.vlgmr.msrb.gmra.mxu2 %v3220_v21  ;;  %909 = vmatmul.f32.vlgmr.msrb.gmra.mxu3 %v3222_v22  ;;  %v324_v60 = vld [vmem:[#allocation4 + $0x518] sm:$0xff] }
  0xc0   :  { %916 = vmatpush.msra.mxu0 %v260_v27  ;;  %936 = vmatpush.msra.mxu1 %v388_v28  ;;  %v476_v61 = vld [vmem:[#allocation4 + $0x9d8] sm:$0xff]  ;;  %v269_v27 = vld [vmem:[#allocation4 + $0x360] sm:$0xff] }
  0xc1   :  { %953 = vmatpush.msra.mxu2 %v540_v29  ;;  %973 = vmatpush.msra.mxu3 %v668_v30  ;;  %v604_v62 = vld [vmem:[#allocation4 + $0xdd8] sm:$0xff]  ;;  %v397_v28 = vld [vmem:[#allocation4 + $0x760] sm:$0xff] }
  0xc2   :  { %917 = vmatpush.msra.mxu0 %v252_v31  ;;  %937 = vmatpush.msra.mxu1 %v380_v32  ;;  %v188_v63 = vld [vmem:[#allocation4 + $0xd8] sm:$0xff]  ;;  %v261_v31 = vld [vmem:[#allocation4 + $0x320] sm:$0xff] }
  0xc3   :  { %954 = vmatpush.msra.mxu2 %v532_v33  ;;  %974 = vmatpush.msra.mxu3 %v660_v34  ;;  %v316_v0 = vld [vmem:[#allocation4 + $0x4d8] sm:$0xff]  ;;  %v389_v32 = vld [vmem:[#allocation4 + $0x720] sm:$0xff] }
  0xc4   :  { %918 = vmatpush.msra.mxu0 %v244_v35  ;;  %938 = vmatpush.msra.mxu1 %v372_v36  ;;  %v468_v1 = vld [vmem:[#allocation4 + $0x998] sm:$0xff]  ;;  %v541_v33 = vld [vmem:[#allocation4 + $0xbe0] sm:$0xff] }
  0xc5   :  { %955 = vmatpush.msra.mxu2 %v524_v37  ;;  %975 = vmatpush.msra.mxu3 %v652_v38  ;;  %v596_v2 = vld [vmem:[#allocation4 + $0xd98] sm:$0xff]  ;;  %v669_v34 = vld [vmem:[#allocation4 + $0xfe0] sm:$0xff] }
  0xc6   :  { %919 = vmatpush.msra.mxu0 %v236_v39  ;;  %939 = vmatpush.msra.mxu1 %v364_v40  ;;  %v180_v3 = vld [vmem:[#allocation4 + $0x98] sm:$0xff]  ;;  %v253_v35 = vld [vmem:[#allocation4 + $0x2e0] sm:$0xff] }
  0xc7   :  { %956 = vmatpush.msra.mxu2 %v516_v41  ;;  %976 = vmatpush.msra.mxu3 %v644_v42  ;;  %v308_v4 = vld [vmem:[#allocation4 + $0x498] sm:$0xff]  ;;  %v381_v36 = vld [vmem:[#allocation4 + $0x6e0] sm:$0xff] }
  0xc8   :  { %920 = vmatpush.msra.mxu0 %v228_v43  ;;  %940 = vmatpush.msra.mxu1 %v356_v44  ;;  %v460_v5 = vld [vmem:[#allocation4 + $0x958] sm:$0xff]  ;;  %v533_v37 = vld [vmem:[#allocation4 + $0xba0] sm:$0xff] }
  0xc9   :  { %957 = vmatpush.msra.mxu2 %v508_v45  ;;  %977 = vmatpush.msra.mxu3 %v636_v46  ;;  %v588_v6 = vld [vmem:[#allocation4 + $0xd58] sm:$0xff]  ;;  %v661_v38 = vld [vmem:[#allocation4 + $0xfa0] sm:$0xff] }
  0xca   :  { %921 = vmatpush.msra.mxu0 %v220_v47  ;;  %941 = vmatpush.msra.mxu1 %v348_v48  ;;  %v172_v7 = vld [vmem:[#allocation4 + $0x58] sm:$0xff]  ;;  %v245_v39 = vld [vmem:[#allocation4 + $0x2a0] sm:$0xff] }
  0xcb   :  { %958 = vmatpush.msra.mxu2 %v500_v49  ;;  %978 = vmatpush.msra.mxu3 %v628_v50  ;;  %v300_v8 = vld [vmem:[#allocation4 + $0x458] sm:$0xff]  ;;  %v373_v40 = vld [vmem:[#allocation4 + $0x6a0] sm:$0xff] }
  0xcc   :  { %922 = vmatpush.msra.mxu0 %v212_v51  ;;  %942 = vmatpush.msra.mxu1 %v340_v52  ;;  %v452_v9 = vld [vmem:[#allocation4 + $0x918] sm:$0xff]  ;;  %v525_v41 = vld [vmem:[#allocation4 + $0xb60] sm:$0xff] }
  0xcd   :  { %959 = vmatpush.msra.mxu2 %v492_v53  ;;  %979 = vmatpush.msra.mxu3 %v620_v54  ;;  %v580_v10 = vld [vmem:[#allocation4 + $0xd18] sm:$0xff]  ;;  %v653_v42 = vld [vmem:[#allocation4 + $0xf60] sm:$0xff] }
  0xce   :  { %923 = vmatpush.msra.mxu0 %v204_v55  ;;  %943 = vmatpush.msra.mxu1 %v332_v56  ;;  %v164_v13 = vld [vmem:[#allocation4 + $0x18] sm:$0xff]  ;;  %v237_v43 = vld [vmem:[#allocation4 + $0x260] sm:$0xff] }
  0xcf   :  { %960 = vmatpush.msra.mxu2 %v484_v57  ;;  %980 = vmatpush.msra.mxu3 %v612_v58  ;;  %v292_v14 = vld [vmem:[#allocation4 + $0x418] sm:$0xff]  ;;  %v365_v44 = vld [vmem:[#allocation4 + $0x660] sm:$0xff] }
  0xd0   :  { %924 = vmatpush.msra.mxu0 %v196_v59  ;;  %944 = vmatpush.msra.mxu1 %v324_v60  ;;  %v444_v15 = vld [vmem:[#allocation4 + $0x8d8] sm:$0xff]  ;;  %v517_v45 = vld [vmem:[#allocation4 + $0xb20] sm:$0xff] }
  0xd1   :  { %961 = vmatpush.msra.mxu2 %v476_v61  ;;  %981 = vmatpush.msra.mxu3 %v604_v62  ;;  %v572_v16 = vld [vmem:[#allocation4 + $0xcd8] sm:$0xff]  ;;  %v645_v46 = vld [vmem:[#allocation4 + $0xf20] sm:$0xff] }
  0xd2   :  { %925 = vmatpush.msra.mxu0 %v188_v63  ;;  %945 = vmatpush.msra.mxu1 %v316_v0  ;;  %v436_v19 = vld [vmem:[#allocation4 + $0x898] sm:$0xff]  ;;  %v229_v47 = vld [vmem:[#allocation4 + $0x220] sm:$0xff] }
  0xd3   :  { %962 = vmatpush.msra.mxu2 %v468_v1  ;;  %982 = vmatpush.msra.mxu3 %v596_v2  ;;  %v564_v20 = vld [vmem:[#allocation4 + $0xc98] sm:$0xff]  ;;  %v357_v48 = vld [vmem:[#allocation4 + $0x620] sm:$0xff] }
  0xd4   :  { %926 = vmatpush.msra.mxu0 %v180_v3  ;;  %946 = vmatpush.msra.mxu1 %v308_v4  ;;  %v428_v25 = vld [vmem:[#allocation4 + $0x858] sm:$0xff]  ;;  %v509_v49 = vld [vmem:[#allocation4 + $0xae0] sm:$0xff] }
  0xd5   :  { %963 = vmatpush.msra.mxu2 %v460_v5  ;;  %983 = vmatpush.msra.mxu3 %v588_v6  ;;  %v556_v26 = vld [vmem:[#allocation4 + $0xc58] sm:$0xff]  ;;  %v637_v50 = vld [vmem:[#allocation4 + $0xee0] sm:$0xff] }
  0xd6   :  { %927 = vmatpush.msra.mxu0 %v172_v7  ;;  %947 = vmatpush.msra.mxu1 %v300_v8  ;;  %v420_v29 = vld [vmem:[#allocation4 + $0x818] sm:$0xff]  ;;  %v221_v51 = vld [vmem:[#allocation4 + $0x1e0] sm:$0xff] }
  0xd7   :  { %964 = vmatpush.msra.mxu2 %v452_v9  ;;  %984 = vmatpush.msra.mxu3 %v580_v10  ;;  %v548_v30 = vld [vmem:[#allocation4 + $0xc18] sm:$0xff]  ;;  %v349_v52 = vld [vmem:[#allocation4 + $0x5e0] sm:$0xff] }
  0xd8   :  { %928 = vmatpush.msra.mxu0 %v164_v13  ;;  %948 = vmatpush.msra.mxu1 %v292_v14  ;;  %v501_v53 = vld [vmem:[#allocation4 + $0xaa0] sm:$0xff] }
  0xd9   :  { %965 = vmatpush.msra.mxu2 %v444_v15  ;;  %985 = vmatpush.msra.mxu3 %v572_v16  ;;  %v629_v54 = vld [vmem:[#allocation4 + $0xea0] sm:$0xff] }
  0xda   :  { %929 = vmatmul.f32.vlgmr.msra.gmra.mxu0 %v3214_v11  ;;  %949 = vmatmul.f32.vlgmr.msra.gmra.mxu1 %v3216_v12  ;;  %v213_v55 = vld [vmem:[#allocation4 + $0x1a0] sm:$0xff] }
  0xdb   :  { %993 = vmatpush.msrb.mxu0 %v285_v17  ;;  %1013 = vmatpush.msrb.mxu1 %v413_v18  ;;  %v341_v56 = vld [vmem:[#allocation4 + $0x5a0] sm:$0xff] }
  0xdc   :  { %966 = vmatpush.msra.mxu2 %v436_v19  ;;  %986 = vmatpush.msra.mxu3 %v564_v20  ;;  %v493_v57 = vld [vmem:[#allocation4 + $0xa60] sm:$0xff] }
  0xdd   :  { %994 = vmatpush.msrb.mxu0 %v277_v23  ;;  %1014 = vmatpush.msrb.mxu1 %v405_v24  ;;  %v621_v58 = vld [vmem:[#allocation4 + $0xe60] sm:$0xff]  ;;  %v286_v23 = vld [vmem:[#allocation4 + $0x3e8] sm:$0xff] }
  0xde   :  { %967 = vmatpush.msra.mxu2 %v428_v25  ;;  %987 = vmatpush.msra.mxu3 %v556_v26  ;;  %v205_v59 = vld [vmem:[#allocation4 + $0x160] sm:$0xff]  ;;  %v414_v24 = vld [vmem:[#allocation4 + $0x7e8] sm:$0xff] }
  0xdf   :  { %995 = vmatpush.msrb.mxu0 %v269_v27  ;;  %1015 = vmatpush.msrb.mxu1 %v397_v28  ;;  %v333_v60 = vld [vmem:[#allocation4 + $0x560] sm:$0xff]  ;;  %v278_v27 = vld [vmem:[#allocation4 + $0x3a8] sm:$0xff] }
  0xe0   :  { %968 = vmatpush.msra.mxu2 %v420_v29  ;;  %988 = vmatpush.msra.mxu3 %v548_v30  ;;  %v485_v61 = vld [vmem:[#allocation4 + $0xa20] sm:$0xff]  ;;  %v406_v28 = vld [vmem:[#allocation4 + $0x7a8] sm:$0xff] }
  0xe1   :  { %969 = vmatmul.f32.vlgmr.msra.gmra.mxu2 %v3220_v21  ;;  %989 = vmatmul.f32.vlgmr.msra.gmra.mxu3 %v3222_v22  ;;  %v613_v62 = vld [vmem:[#allocation4 + $0xe20] sm:$0xff] }
  0xe2   :  { %996 = vmatpush.msrb.mxu0 %v261_v31  ;;  %1016 = vmatpush.msrb.mxu1 %v389_v32  ;;  %v197_v63 = vld [vmem:[#allocation4 + $0x120] sm:$0xff]  ;;  %v270_v31 = vld [vmem:[#allocation4 + $0x368] sm:$0xff] }
  0xe3   :  { %1033 = vmatpush.msrb.mxu2 %v541_v33  ;;  %1053 = vmatpush.msrb.mxu3 %v669_v34  ;;  %v325_v0 = vld [vmem:[#allocation4 + $0x520] sm:$0xff]  ;;  %v398_v32 = vld [vmem:[#allocation4 + $0x768] sm:$0xff] }
  0xe4   :  { %997 = vmatpush.msrb.mxu0 %v253_v35  ;;  %1017 = vmatpush.msrb.mxu1 %v381_v36  ;;  %v477_v1 = vld [vmem:[#allocation4 + $0x9e0] sm:$0xff]  ;;  %v262_v35 = vld [vmem:[#allocation4 + $0x328] sm:$0xff] }
  0xe5   :  { %1034 = vmatpush.msrb.mxu2 %v533_v37  ;;  %1054 = vmatpush.msrb.mxu3 %v661_v38  ;;  %v605_v2 = vld [vmem:[#allocation4 + $0xde0] sm:$0xff]  ;;  %v390_v36 = vld [vmem:[#allocation4 + $0x728] sm:$0xff] }
  0xe6   :  { %998 = vmatpush.msrb.mxu0 %v245_v39  ;;  %1018 = vmatpush.msrb.mxu1 %v373_v40  ;;  %v189_v3 = vld [vmem:[#allocation4 + $0xe0] sm:$0xff]  ;;  %v542_v37 = vld [vmem:[#allocation4 + $0xbe8] sm:$0xff] }
  0xe7   :  { %1035 = vmatpush.msrb.mxu2 %v525_v41  ;;  %1055 = vmatpush.msrb.mxu3 %v653_v42  ;;  %v317_v4 = vld [vmem:[#allocation4 + $0x4e0] sm:$0xff]  ;;  %v670_v38 = vld [vmem:[#allocation4 + $0xfe8] sm:$0xff] }
  0xe8   :  { %999 = vmatpush.msrb.mxu0 %v237_v43  ;;  %1019 = vmatpush.msrb.mxu1 %v365_v44  ;;  %v469_v5 = vld [vmem:[#allocation4 + $0x9a0] sm:$0xff]  ;;  %v254_v39 = vld [vmem:[#allocation4 + $0x2e8] sm:$0xff] }
  0xe9   :  { %1036 = vmatpush.msrb.mxu2 %v517_v45  ;;  %1056 = vmatpush.msrb.mxu3 %v645_v46  ;;  %v597_v6 = vld [vmem:[#allocation4 + $0xda0] sm:$0xff]  ;;  %v382_v40 = vld [vmem:[#allocation4 + $0x6e8] sm:$0xff] }
  0xea   :  { %1000 = vmatpush.msrb.mxu0 %v229_v47  ;;  %1020 = vmatpush.msrb.mxu1 %v357_v48  ;;  %v181_v7 = vld [vmem:[#allocation4 + $0xa0] sm:$0xff]  ;;  %v534_v41 = vld [vmem:[#allocation4 + $0xba8] sm:$0xff] }
  0xeb   :  { %1037 = vmatpush.msrb.mxu2 %v509_v49  ;;  %1057 = vmatpush.msrb.mxu3 %v637_v50  ;;  %v309_v8 = vld [vmem:[#allocation4 + $0x4a0] sm:$0xff]  ;;  %v662_v42 = vld [vmem:[#allocation4 + $0xfa8] sm:$0xff] }
  0xec   :  { %1001 = vmatpush.msrb.mxu0 %v221_v51  ;;  %1021 = vmatpush.msrb.mxu1 %v349_v52  ;;  %v461_v9 = vld [vmem:[#allocation4 + $0x960] sm:$0xff]  ;;  %v246_v43 = vld [vmem:[#allocation4 + $0x2a8] sm:$0xff] }
  0xed   :  { %1038 = vmatpush.msrb.mxu2 %v501_v53  ;;  %1058 = vmatpush.msrb.mxu3 %v629_v54  ;;  %v589_v10 = vld [vmem:[#allocation4 + $0xd60] sm:$0xff]  ;;  %v374_v44 = vld [vmem:[#allocation4 + $0x6a8] sm:$0xff] }
  0xee   :  { %1002 = vmatpush.msrb.mxu0 %v213_v55  ;;  %1022 = vmatpush.msrb.mxu1 %v341_v56  ;;  %v173_v13 = vld [vmem:[#allocation4 + $0x60] sm:$0xff]  ;;  %v526_v45 = vld [vmem:[#allocation4 + $0xb68] sm:$0xff] }
  0xef   :  { %1039 = vmatpush.msrb.mxu2 %v493_v57  ;;  %1059 = vmatpush.msrb.mxu3 %v621_v58  ;;  %v301_v14 = vld [vmem:[#allocation4 + $0x460] sm:$0xff]  ;;  %v654_v46 = vld [vmem:[#allocation4 + $0xf68] sm:$0xff] }
  0xf0   :  { %1003 = vmatpush.msrb.mxu0 %v205_v59  ;;  %1023 = vmatpush.msrb.mxu1 %v333_v60  ;;  %v453_v15 = vld [vmem:[#allocation4 + $0x920] sm:$0xff]  ;;  %v238_v47 = vld [vmem:[#allocation4 + $0x268] sm:$0xff] }
  0xf1   :  { %1040 = vmatpush.msrb.mxu2 %v485_v61  ;;  %1060 = vmatpush.msrb.mxu3 %v613_v62  ;;  %v581_v16 = vld [vmem:[#allocation4 + $0xd20] sm:$0xff]  ;;  %v366_v48 = vld [vmem:[#allocation4 + $0x668] sm:$0xff] }
  0xf2   :  { %1004 = vmatpush.msrb.mxu0 %v197_v63  ;;  %1024 = vmatpush.msrb.mxu1 %v325_v0  ;;  %v165_v17 = vld [vmem:[#allocation4 + $0x20] sm:$0xff]  ;;  %v518_v49 = vld [vmem:[#allocation4 + $0xb28] sm:$0xff] }
  0xf3   :  { %1041 = vmatpush.msrb.mxu2 %v477_v1  ;;  %1061 = vmatpush.msrb.mxu3 %v605_v2  ;;  %v293_v18 = vld [vmem:[#allocation4 + $0x420] sm:$0xff]  ;;  %v646_v50 = vld [vmem:[#allocation4 + $0xf28] sm:$0xff] }
  0xf4   :  { %1005 = vmatpush.msrb.mxu0 %v189_v3  ;;  %1025 = vmatpush.msrb.mxu1 %v317_v4  ;;  %v445_v19 = vld [vmem:[#allocation4 + $0x8e0] sm:$0xff]  ;;  %v230_v51 = vld [vmem:[#allocation4 + $0x228] sm:$0xff] }
  0xf5   :  { %1042 = vmatpush.msrb.mxu2 %v469_v5  ;;  %1062 = vmatpush.msrb.mxu3 %v597_v6  ;;  %v573_v20 = vld [vmem:[#allocation4 + $0xce0] sm:$0xff]  ;;  %v358_v52 = vld [vmem:[#allocation4 + $0x628] sm:$0xff] }
  0xf6   :  { %1006 = vmatpush.msrb.mxu0 %v181_v7  ;;  %1026 = vmatpush.msrb.mxu1 %v309_v8  ;;  %v437_v25 = vld [vmem:[#allocation4 + $0x8a0] sm:$0xff]  ;;  %v510_v53 = vld [vmem:[#allocation4 + $0xae8] sm:$0xff] }
  0xf7   :  { %1043 = vmatpush.msrb.mxu2 %v461_v9  ;;  %1063 = vmatpush.msrb.mxu3 %v589_v10  ;;  %v565_v26 = vld [vmem:[#allocation4 + $0xca0] sm:$0xff]  ;;  %v638_v54 = vld [vmem:[#allocation4 + $0xee8] sm:$0xff] }
  0xf8   :  { %1007 = vmatpush.msrb.mxu0 %v173_v13  ;;  %1027 = vmatpush.msrb.mxu1 %v301_v14  ;;  %v429_v29 = vld [vmem:[#allocation4 + $0x860] sm:$0xff]  ;;  %v222_v55 = vld [vmem:[#allocation4 + $0x1e8] sm:$0xff] }
  0xf9   :  { %1044 = vmatpush.msrb.mxu2 %v453_v15  ;;  %1064 = vmatpush.msrb.mxu3 %v581_v16  ;;  %v557_v30 = vld [vmem:[#allocation4 + $0xc60] sm:$0xff]  ;;  %v350_v56 = vld [vmem:[#allocation4 + $0x5e8] sm:$0xff] }
  0xfa   :  { %1008 = vmatpush.msrb.mxu0 %v165_v17  ;;  %1028 = vmatpush.msrb.mxu1 %v293_v18  ;;  %v421_v33 = vld [vmem:[#allocation4 + $0x820] sm:$0xff]  ;;  %v502_v57 = vld [vmem:[#allocation4 + $0xaa8] sm:$0xff] }
  0xfb   :  { %1045 = vmatpush.msrb.mxu2 %v445_v19  ;;  %1065 = vmatpush.msrb.mxu3 %v573_v20  ;;  %v549_v34 = vld [vmem:[#allocation4 + $0xc20] sm:$0xff]  ;;  %v630_v58 = vld [vmem:[#allocation4 + $0xea8] sm:$0xff] }
  0xfc   :  { %1009 = vmatmul.f32.vlgmr.msrb.gmra.mxu0 %v3214_v11  ;;  %1029 = vmatmul.f32.vlgmr.msrb.gmra.mxu1 %v3216_v12  ;;  %v214_v59 = vld [vmem:[#allocation4 + $0x1a8] sm:$0xff] }
  0xfd   :  { %1073 = vmatpush.msra.mxu0 %v286_v23  ;;  %1093 = vmatpush.msra.mxu1 %v414_v24  ;;  %v342_v60 = vld [vmem:[#allocation4 + $0x5a8] sm:$0xff] }
  0xfe   :  { %1046 = vmatpush.msrb.mxu2 %v437_v25  ;;  %1066 = vmatpush.msrb.mxu3 %v565_v26  ;;  %v494_v61 = vld [vmem:[#allocation4 + $0xa68] sm:$0xff] }
  0xff   :  { %1074 = vmatpush.msra.mxu0 %v278_v27  ;;  %1094 = vmatpush.msra.mxu1 %v406_v28  ;;  %v622_v62 = vld [vmem:[#allocation4 + $0xe68] sm:$0xff]  ;;  %v287_v27 = vld [vmem:[#allocation4 + $0x3f0] sm:$0xff] }
 0x100   :  { %1047 = vmatpush.msrb.mxu2 %v429_v29  ;;  %1067 = vmatpush.msrb.mxu3 %v557_v30  ;;  %v206_v63 = vld [vmem:[#allocation4 + $0x168] sm:$0xff]  ;;  %v415_v28 = vld [vmem:[#allocation4 + $0x7f0] sm:$0xff] }
 0x101   :  { %1075 = vmatpush.msra.mxu0 %v270_v31  ;;  %1095 = vmatpush.msra.mxu1 %v398_v32  ;;  %v334_v0 = vld [vmem:[#allocation4 + $0x568] sm:$0xff]  ;;  %v279_v31 = vld [vmem:[#allocation4 + $0x3b0] sm:$0xff] }
 0x102   :  { %1048 = vmatpush.msrb.mxu2 %v421_v33  ;;  %1068 = vmatpush.msrb.mxu3 %v549_v34  ;;  %v486_v1 = vld [vmem:[#allocation4 + $0xa28] sm:$0xff]  ;;  %v407_v32 = vld [vmem:[#allocation4 + $0x7b0] sm:$0xff] }
 0x103   :  { %1049 = vmatmul.f32.vlgmr.msrb.gmra.mxu2 %v3220_v21  ;;  %1069 = vmatmul.f32.vlgmr.msrb.gmra.mxu3 %v3222_v22  ;;  %v614_v2 = vld [vmem:[#allocation4 + $0xe28] sm:$0xff] }
 0x104   :  { %1076 = vmatpush.msra.mxu0 %v262_v35  ;;  %1096 = vmatpush.msra.mxu1 %v390_v36  ;;  %v198_v3 = vld [vmem:[#allocation4 + $0x128] sm:$0xff]  ;;  %v271_v35 = vld [vmem:[#allocation4 + $0x370] sm:$0xff] }
 0x105   :  { %1113 = vmatpush.msra.mxu2 %v542_v37  ;;  %1133 = vmatpush.msra.mxu3 %v670_v38  ;;  %v326_v4 = vld [vmem:[#allocation4 + $0x528] sm:$0xff]  ;;  %v399_v36 = vld [vmem:[#allocation4 + $0x770] sm:$0xff] }
 0x106   :  { %1077 = vmatpush.msra.mxu0 %v254_v39  ;;  %1097 = vmatpush.msra.mxu1 %v382_v40  ;;  %v478_v5 = vld [vmem:[#allocation4 + $0x9e8] sm:$0xff]  ;;  %v263_v39 = vld [vmem:[#allocation4 + $0x330] sm:$0xff] }
 0x107   :  { %1114 = vmatpush.msra.mxu2 %v534_v41  ;;  %1134 = vmatpush.msra.mxu3 %v662_v42  ;;  %v606_v6 = vld [vmem:[#allocation4 + $0xde8] sm:$0xff]  ;;  %v391_v40 = vld [vmem:[#allocation4 + $0x730] sm:$0xff] }
 0x108   :  { %1078 = vmatpush.msra.mxu0 %v246_v43  ;;  %1098 = vmatpush.msra.mxu1 %v374_v44  ;;  %v190_v7 = vld [vmem:[#allocation4 + $0xe8] sm:$0xff]  ;;  %v543_v41 = vld [vmem:[#allocation4 + $0xbf0] sm:$0xff] }
 0x109   :  { %1115 = vmatpush.msra.mxu2 %v526_v45  ;;  %1135 = vmatpush.msra.mxu3 %v654_v46  ;;  %v318_v8 = vld [vmem:[#allocation4 + $0x4e8] sm:$0xff]  ;;  %v671_v42 = vld [vmem:[#allocation4 + $0xff0] sm:$0xff] }
 0x10a   :  { %1079 = vmatpush.msra.mxu0 %v238_v47  ;;  %1099 = vmatpush.msra.mxu1 %v366_v48  ;;  %v470_v9 = vld [vmem:[#allocation4 + $0x9a8] sm:$0xff]  ;;  %v255_v43 = vld [vmem:[#allocation4 + $0x2f0] sm:$0xff] }
 0x10b   :  { %1116 = vmatpush.msra.mxu2 %v518_v49  ;;  %1136 = vmatpush.msra.mxu3 %v646_v50  ;;  %v598_v10 = vld [vmem:[#allocation4 + $0xda8] sm:$0xff]  ;;  %v383_v44 = vld [vmem:[#allocation4 + $0x6f0] sm:$0xff] }
 0x10c   :  { %1080 = vmatpush.msra.mxu0 %v230_v51  ;;  %1100 = vmatpush.msra.mxu1 %v358_v52  ;;  %v182_v13 = vld [vmem:[#allocation4 + $0xa8] sm:$0xff]  ;;  %v535_v45 = vld [vmem:[#allocation4 + $0xbb0] sm:$0xff] }
 0x10d   :  { %1117 = vmatpush.msra.mxu2 %v510_v53  ;;  %1137 = vmatpush.msra.mxu3 %v638_v54  ;;  %v310_v14 = vld [vmem:[#allocation4 + $0x4a8] sm:$0xff]  ;;  %v663_v46 = vld [vmem:[#allocation4 + $0xfb0] sm:$0xff] }
 0x10e   :  { %1081 = vmatpush.msra.mxu0 %v222_v55  ;;  %1101 = vmatpush.msra.mxu1 %v350_v56  ;;  %v462_v15 = vld [vmem:[#allocation4 + $0x968] sm:$0xff]  ;;  %v247_v47 = vld [vmem:[#allocation4 + $0x2b0] sm:$0xff] }
 0x10f   :  { %1118 = vmatpush.msra.mxu2 %v502_v57  ;;  %1138 = vmatpush.msra.mxu3 %v630_v58  ;;  %v590_v16 = vld [vmem:[#allocation4 + $0xd68] sm:$0xff]  ;;  %v375_v48 = vld [vmem:[#allocation4 + $0x6b0] sm:$0xff] }
 0x110   :  { %1082 = vmatpush.msra.mxu0 %v214_v59  ;;  %1102 = vmatpush.msra.mxu1 %v342_v60  ;;  %v174_v17 = vld [vmem:[#allocation4 + $0x68] sm:$0xff]  ;;  %v527_v49 = vld [vmem:[#allocation4 + $0xb70] sm:$0xff] }
 0x111   :  { %1119 = vmatpush.msra.mxu2 %v494_v61  ;;  %1139 = vmatpush.msra.mxu3 %v622_v62  ;;  %v302_v18 = vld [vmem:[#allocation4 + $0x468] sm:$0xff]  ;;  %v655_v50 = vld [vmem:[#allocation4 + $0xf70] sm:$0xff] }
 0x112   :  { %1083 = vmatpush.msra.mxu0 %v206_v63  ;;  %1103 = vmatpush.msra.mxu1 %v334_v0  ;;  %v454_v19 = vld [vmem:[#allocation4 + $0x928] sm:$0xff]  ;;  %v239_v51 = vld [vmem:[#allocation4 + $0x270] sm:$0xff] }
 0x113   :  { %1120 = vmatpush.msra.mxu2 %v486_v1  ;;  %1140 = vmatpush.msra.mxu3 %v614_v2  ;;  %v582_v20 = vld [vmem:[#allocation4 + $0xd28] sm:$0xff]  ;;  %v367_v52 = vld [vmem:[#allocation4 + $0x670] sm:$0xff] }
 0x114   :  { %1084 = vmatpush.msra.mxu0 %v198_v3  ;;  %1104 = vmatpush.msra.mxu1 %v326_v4  ;;  %v166_v23 = vld [vmem:[#allocation4 + $0x28] sm:$0xff]  ;;  %v519_v53 = vld [vmem:[#allocation4 + $0xb30] sm:$0xff] }
 0x115   :  { %1121 = vmatpush.msra.mxu2 %v478_v5  ;;  %1141 = vmatpush.msra.mxu3 %v606_v6  ;;  %v294_v24 = vld [vmem:[#allocation4 + $0x428] sm:$0xff]  ;;  %v647_v54 = vld [vmem:[#allocation4 + $0xf30] sm:$0xff] }
 0x116   :  { %1085 = vmatpush.msra.mxu0 %v190_v7  ;;  %1105 = vmatpush.msra.mxu1 %v318_v8  ;;  %v446_v25 = vld [vmem:[#allocation4 + $0x8e8] sm:$0xff]  ;;  %v231_v55 = vld [vmem:[#allocation4 + $0x230] sm:$0xff] }
 0x117   :  { %1122 = vmatpush.msra.mxu2 %v470_v9  ;;  %1142 = vmatpush.msra.mxu3 %v598_v10  ;;  %v574_v26 = vld [vmem:[#allocation4 + $0xce8] sm:$0xff]  ;;  %v359_v56 = vld [vmem:[#allocation4 + $0x630] sm:$0xff] }
 0x118   :  { %1086 = vmatpush.msra.mxu0 %v182_v13  ;;  %1106 = vmatpush.msra.mxu1 %v310_v14  ;;  %v438_v29 = vld [vmem:[#allocation4 + $0x8a8] sm:$0xff]  ;;  %v511_v57 = vld [vmem:[#allocation4 + $0xaf0] sm:$0xff] }
 0x119   :  { %1123 = vmatpush.msra.mxu2 %v462_v15  ;;  %1143 = vmatpush.msra.mxu3 %v590_v16  ;;  %v566_v30 = vld [vmem:[#allocation4 + $0xca8] sm:$0xff]  ;;  %v639_v58 = vld [vmem:[#allocation4 + $0xef0] sm:$0xff] }
 0x11a   :  { %1087 = vmatpush.msra.mxu0 %v174_v17  ;;  %1107 = vmatpush.msra.mxu1 %v302_v18  ;;  %v430_v33 = vld [vmem:[#allocation4 + $0x868] sm:$0xff]  ;;  %v223_v59 = vld [vmem:[#allocation4 + $0x1f0] sm:$0xff] }
 0x11b   :  { %1124 = vmatpush.msra.mxu2 %v454_v19  ;;  %1144 = vmatpush.msra.mxu3 %v582_v20  ;;  %v558_v34 = vld [vmem:[#allocation4 + $0xc68] sm:$0xff]  ;;  %v351_v60 = vld [vmem:[#allocation4 + $0x5f0] sm:$0xff] }
 0x11c   :  { %1088 = vmatpush.msra.mxu0 %v166_v23  ;;  %1108 = vmatpush.msra.mxu1 %v294_v24  ;;  %v422_v37 = vld [vmem:[#allocation4 + $0x828] sm:$0xff]  ;;  %v503_v61 = vld [vmem:[#allocation4 + $0xab0] sm:$0xff] }
 0x11d   :  { %1125 = vmatpush.msra.mxu2 %v446_v25  ;;  %1145 = vmatpush.msra.mxu3 %v574_v26  ;;  %v550_v38 = vld [vmem:[#allocation4 + $0xc28] sm:$0xff]  ;;  %v631_v62 = vld [vmem:[#allocation4 + $0xeb0] sm:$0xff] }
 0x11e   :  { %1089 = vmatmul.f32.vlgmr.msra.gmra.mxu0 %v3214_v11  ;;  %1109 = vmatmul.f32.vlgmr.msra.gmra.mxu1 %v3216_v12  ;;  %v215_v63 = vld [vmem:[#allocation4 + $0x1b0] sm:$0xff] }
 0x11f   :  { %1153 = vmatpush.msrb.mxu0 %v287_v27  ;;  %1173 = vmatpush.msrb.mxu1 %v415_v28  ;;  %v343_v0 = vld [vmem:[#allocation4 + $0x5b0] sm:$0xff] }
 0x120   :  { %1126 = vmatpush.msra.mxu2 %v438_v29  ;;  %1146 = vmatpush.msra.mxu3 %v566_v30  ;;  %v495_v1 = vld [vmem:[#allocation4 + $0xa70] sm:$0xff] }
 0x121   :  { %1154 = vmatpush.msrb.mxu0 %v279_v31  ;;  %1174 = vmatpush.msrb.mxu1 %v407_v32  ;;  %v623_v2 = vld [vmem:[#allocation4 + $0xe70] sm:$0xff]  ;;  %v288_v31 = vld [vmem:[#allocation4 + $0x3f8] sm:$0xff] }
 0x122   :  { %1127 = vmatpush.msra.mxu2 %v430_v33  ;;  %1147 = vmatpush.msra.mxu3 %v558_v34  ;;  %v207_v3 = vld [vmem:[#allocation4 + $0x170] sm:$0xff]  ;;  %v416_v32 = vld [vmem:[#allocation4 + $0x7f8] sm:$0xff] }
 0x123   :  { %1155 = vmatpush.msrb.mxu0 %v271_v35  ;;  %1175 = vmatpush.msrb.mxu1 %v399_v36  ;;  %v335_v4 = vld [vmem:[#allocation4 + $0x570] sm:$0xff]  ;;  %v280_v35 = vld [vmem:[#allocation4 + $0x3b8] sm:$0xff] }
 0x124   :  { %1128 = vmatpush.msra.mxu2 %v422_v37  ;;  %1148 = vmatpush.msra.mxu3 %v550_v38  ;;  %v487_v5 = vld [vmem:[#allocation4 + $0xa30] sm:$0xff]  ;;  %v408_v36 = vld [vmem:[#allocation4 + $0x7b8] sm:$0xff] }
 0x125   :  { %1129 = vmatmul.f32.vlgmr.msra.gmra.mxu2 %v3220_v21  ;;  %1149 = vmatmul.f32.vlgmr.msra.gmra.mxu3 %v3222_v22  ;;  %v615_v6 = vld [vmem:[#allocation4 + $0xe30] sm:$0xff] }
 0x126   :  { %1156 = vmatpush.msrb.mxu0 %v263_v39  ;;  %1176 = vmatpush.msrb.mxu1 %v391_v40  ;;  %v199_v7 = vld [vmem:[#allocation4 + $0x130] sm:$0xff]  ;;  %v272_v39 = vld [vmem:[#allocation4 + $0x378] sm:$0xff] }
 0x127   :  { %1193 = vmatpush.msrb.mxu2 %v543_v41  ;;  %1213 = vmatpush.msrb.mxu3 %v671_v42  ;;  %v327_v8 = vld [vmem:[#allocation4 + $0x530] sm:$0xff]  ;;  %v400_v40 = vld [vmem:[#allocation4 + $0x778] sm:$0xff] }
 0x128   :  { %1157 = vmatpush.msrb.mxu0 %v255_v43  ;;  %1177 = vmatpush.msrb.mxu1 %v383_v44  ;;  %v479_v9 = vld [vmem:[#allocation4 + $0x9f0] sm:$0xff]  ;;  %v264_v43 = vld [vmem:[#allocation4 + $0x338] sm:$0xff] }
 0x129   :  { %1194 = vmatpush.msrb.mxu2 %v535_v45  ;;  %1214 = vmatpush.msrb.mxu3 %v663_v46  ;;  %v607_v10 = vld [vmem:[#allocation4 + $0xdf0] sm:$0xff]  ;;  %v392_v44 = vld [vmem:[#allocation4 + $0x738] sm:$0xff] }
 0x12a   :  { %1158 = vmatpush.msrb.mxu0 %v247_v47  ;;  %1178 = vmatpush.msrb.mxu1 %v375_v48  ;;  %v191_v13 = vld [vmem:[#allocation4 + $0xf0] sm:$0xff]  ;;  %v544_v45 = vld [vmem:[#allocation4 + $0xbf8] sm:$0xff] }
 0x12b   :  { %1195 = vmatpush.msrb.mxu2 %v527_v49  ;;  %1215 = vmatpush.msrb.mxu3 %v655_v50  ;;  %v319_v14 = vld [vmem:[#allocation4 + $0x4f0] sm:$0xff]  ;;  %v672_v46 = vld [vmem:[#allocation4 + $0xff8] sm:$0xff] }
 0x12c   :  { %1159 = vmatpush.msrb.mxu0 %v239_v51  ;;  %1179 = vmatpush.msrb.mxu1 %v367_v52  ;;  %v471_v15 = vld [vmem:[#allocation4 + $0x9b0] sm:$0xff]  ;;  %v256_v47 = vld [vmem:[#allocation4 + $0x2f8] sm:$0xff] }
 0x12d   :  { %1196 = vmatpush.msrb.mxu2 %v519_v53  ;;  %1216 = vmatpush.msrb.mxu3 %v647_v54  ;;  %v599_v16 = vld [vmem:[#allocation4 + $0xdb0] sm:$0xff]  ;;  %v384_v48 = vld [vmem:[#allocation4 + $0x6f8] sm:$0xff] }
 0x12e   :  { %1160 = vmatpush.msrb.mxu0 %v231_v55  ;;  %1180 = vmatpush.msrb.mxu1 %v359_v56  ;;  %v183_v17 = vld [vmem:[#allocation4 + $0xb0] sm:$0xff]  ;;  %v536_v49 = vld [vmem:[#allocation4 + $0xbb8] sm:$0xff] }
 0x12f   :  { %1197 = vmatpush.msrb.mxu2 %v511_v57  ;;  %1217 = vmatpush.msrb.mxu3 %v639_v58  ;;  %v311_v18 = vld [vmem:[#allocation4 + $0x4b0] sm:$0xff]  ;;  %v664_v50 = vld [vmem:[#allocation4 + $0xfb8] sm:$0xff] }
 0x130   :  { %1161 = vmatpush.msrb.mxu0 %v223_v59  ;;  %1181 = vmatpush.msrb.mxu1 %v351_v60  ;;  %v463_v19 = vld [vmem:[#allocation4 + $0x970] sm:$0xff]  ;;  %v248_v51 = vld [vmem:[#allocation4 + $0x2b8] sm:$0xff] }
 0x131   :  { %1198 = vmatpush.msrb.mxu2 %v503_v61  ;;  %1218 = vmatpush.msrb.mxu3 %v631_v62  ;;  %v591_v20 = vld [vmem:[#allocation4 + $0xd70] sm:$0xff]  ;;  %v376_v52 = vld [vmem:[#allocation4 + $0x6b8] sm:$0xff] }
 0x132   :  { %1162 = vmatpush.msrb.mxu0 %v215_v63  ;;  %1182 = vmatpush.msrb.mxu1 %v343_v0  ;;  %v175_v23 = vld [vmem:[#allocation4 + $0x70] sm:$0xff]  ;;  %v528_v53 = vld [vmem:[#allocation4 + $0xb78] sm:$0xff] }
 0x133   :  { %1199 = vmatpush.msrb.mxu2 %v495_v1  ;;  %1219 = vmatpush.msrb.mxu3 %v623_v2  ;;  %v303_v24 = vld [vmem:[#allocation4 + $0x470] sm:$0xff]  ;;  %v656_v54 = vld [vmem:[#allocation4 + $0xf78] sm:$0xff] }
 0x134   :  { %1163 = vmatpush.msrb.mxu0 %v207_v3  ;;  %1183 = vmatpush.msrb.mxu1 %v335_v4  ;;  %v455_v25 = vld [vmem:[#allocation4 + $0x930] sm:$0xff]  ;;  %v240_v55 = vld [vmem:[#allocation4 + $0x278] sm:$0xff] }
 0x135   :  { %1200 = vmatpush.msrb.mxu2 %v487_v5  ;;  %1220 = vmatpush.msrb.mxu3 %v615_v6  ;;  %v583_v26 = vld [vmem:[#allocation4 + $0xd30] sm:$0xff]  ;;  %v368_v56 = vld [vmem:[#allocation4 + $0x678] sm:$0xff] }
 0x136   :  { %1164 = vmatpush.msrb.mxu0 %v199_v7  ;;  %1184 = vmatpush.msrb.mxu1 %v327_v8  ;;  %v167_v27 = vld [vmem:[#allocation4 + $0x30] sm:$0xff]  ;;  %v520_v57 = vld [vmem:[#allocation4 + $0xb38] sm:$0xff] }
 0x137   :  { %1201 = vmatpush.msrb.mxu2 %v479_v9  ;;  %1221 = vmatpush.msrb.mxu3 %v607_v10  ;;  %v295_v28 = vld [vmem:[#allocation4 + $0x430] sm:$0xff]  ;;  %v648_v58 = vld [vmem:[#allocation4 + $0xf38] sm:$0xff] }
 0x138   :  { %1165 = vmatpush.msrb.mxu0 %v191_v13  ;;  %1185 = vmatpush.msrb.mxu1 %v319_v14  ;;  %v447_v29 = vld [vmem:[#allocation4 + $0x8f0] sm:$0xff]  ;;  %v232_v59 = vld [vmem:[#allocation4 + $0x238] sm:$0xff] }
 0x139   :  { %1202 = vmatpush.msrb.mxu2 %v471_v15  ;;  %1222 = vmatpush.msrb.mxu3 %v599_v16  ;;  %v575_v30 = vld [vmem:[#allocation4 + $0xcf0] sm:$0xff]  ;;  %v360_v60 = vld [vmem:[#allocation4 + $0x638] sm:$0xff] }
 0x13a   :  { %1166 = vmatpush.msrb.mxu0 %v183_v17  ;;  %1186 = vmatpush.msrb.mxu1 %v311_v18  ;;  %v439_v33 = vld [vmem:[#allocation4 + $0x8b0] sm:$0xff]  ;;  %v512_v61 = vld [vmem:[#allocation4 + $0xaf8] sm:$0xff] }
 0x13b   :  { %1203 = vmatpush.msrb.mxu2 %v463_v19  ;;  %1223 = vmatpush.msrb.mxu3 %v591_v20  ;;  %v567_v34 = vld [vmem:[#allocation4 + $0xcb0] sm:$0xff]  ;;  %v640_v62 = vld [vmem:[#allocation4 + $0xef8] sm:$0xff] }
 0x13c   :  { %1167 = vmatpush.msrb.mxu0 %v175_v23  ;;  %1187 = vmatpush.msrb.mxu1 %v303_v24  ;;  %v431_v37 = vld [vmem:[#allocation4 + $0x870] sm:$0xff]  ;;  %v224_v63 = vld [vmem:[#allocation4 + $0x1f8] sm:$0xff] }
 0x13d   :  { %1204 = vmatpush.msrb.mxu2 %v455_v25  ;;  %1224 = vmatpush.msrb.mxu3 %v583_v26  ;;  %v559_v38 = vld [vmem:[#allocation4 + $0xc70] sm:$0xff]  ;;  %v352_v0 = vld [vmem:[#allocation4 + $0x5f8] sm:$0xff] }
 0x13e   :  { %1168 = vmatpush.msrb.mxu0 %v167_v27  ;;  %1188 = vmatpush.msrb.mxu1 %v295_v28  ;;  %v423_v41 = vld [vmem:[#allocation4 + $0x830] sm:$0xff]  ;;  %v504_v1 = vld [vmem:[#allocation4 + $0xab8] sm:$0xff] }
 0x13f   :  { %1205 = vmatpush.msrb.mxu2 %v447_v29  ;;  %1225 = vmatpush.msrb.mxu3 %v575_v30  ;;  %v551_v42 = vld [vmem:[#allocation4 + $0xc30] sm:$0xff]  ;;  %v632_v2 = vld [vmem:[#allocation4 + $0xeb8] sm:$0xff] }
 0x140   :  { %1169 = vmatmul.f32.vlgmr.msrb.gmra.mxu0 %v3214_v11  ;;  %1189 = vmatmul.f32.vlgmr.msrb.gmra.mxu1 %v3216_v12  ;;  %v216_v3 = vld [vmem:[#allocation4 + $0x1b8] sm:$0xff] }
 0x141   :  { %1233 = vmatpush.msra.mxu0 %v288_v31  ;;  %1253 = vmatpush.msra.mxu1 %v416_v32  ;;  %v344_v4 = vld [vmem:[#allocation4 + $0x5b8] sm:$0xff] }
 0x142   :  { %1206 = vmatpush.msrb.mxu2 %v439_v33  ;;  %1226 = vmatpush.msrb.mxu3 %v567_v34  ;;  %v496_v5 = vld [vmem:[#allocation4 + $0xa78] sm:$0xff] }
 0x143   :  { %1234 = vmatpush.msra.mxu0 %v280_v35  ;;  %1254 = vmatpush.msra.mxu1 %v408_v36  ;;  %v624_v6 = vld [vmem:[#allocation4 + $0xe78] sm:$0xff]  ;;  %v1411_v35 = vld [vmem:[#allocation6 + $0x2d0] sm:$0xff] }
 0x144   :  { %1207 = vmatpush.msrb.mxu2 %v431_v37  ;;  %1227 = vmatpush.msrb.mxu3 %v559_v38  ;;  %v208_v7 = vld [vmem:[#allocation4 + $0x178] sm:$0xff]  ;;  %v1507_v36 = vld [vmem:[#allocation6 + $0x5d0] sm:$0xff] }
 0x145   :  { %1235 = vmatpush.msra.mxu0 %v272_v39  ;;  %1255 = vmatpush.msra.mxu1 %v400_v40  ;;  %v336_v8 = vld [vmem:[#allocation4 + $0x578] sm:$0xff]  ;;  %v3250_v39 = vpop.f32.mrf.mxu0  ;;  %v3252_v40 = vpop.f32.mrf.mxu1 }
 0x146   :  { %1208 = vmatpush.msrb.mxu2 %v423_v41  ;;  %1228 = vmatpush.msrb.mxu3 %v551_v42  ;;  %v488_v9 = vld [vmem:[#allocation4 + $0xa38] sm:$0xff]  ;;  %v1405_v41 = vld [vmem:[#allocation6 + $0x2a0] sm:$0xff] }
 0x147   :  { %1209 = vmatmul.f32.vlgmr.msrb.gmra.mxu2 %v3220_v21  ;;  %1229 = vmatmul.f32.vlgmr.msrb.gmra.mxu3 %v3222_v22  ;;  %v616_v10 = vld [vmem:[#allocation4 + $0xe38] sm:$0xff]  ;;  %v1501_v42 = vld [vmem:[#allocation6 + $0x5a0] sm:$0xff] }
 0x148   :  { %1236 = vmatpush.msra.mxu0 %v264_v43  ;;  %1256 = vmatpush.msra.mxu1 %v392_v44  ;;  %v200_v13 = vld [vmem:[#allocation4 + $0x138] sm:$0xff] }
 0x149   :  { %1273 = vmatpush.msra.mxu2 %v544_v45  ;;  %1293 = vmatpush.msra.mxu3 %v672_v46  ;;  %v328_v14 = vld [vmem:[#allocation4 + $0x538] sm:$0xff]  ;;  %v3256_v45 = vpop.f32.mrf.mxu2  ;;  %v1399_v46 = vld [vmem:[#allocation6 + $0x270] sm:$0xff] }
 0x14a   :  { %1237 = vmatpush.msra.mxu0 %v256_v47  ;;  %1257 = vmatpush.msra.mxu1 %v384_v48  ;;  %v480_v15 = vld [vmem:[#allocation4 + $0x9f8] sm:$0xff]  ;;  %v1495_v47 = vld [vmem:[#allocation6 + $0x570] sm:$0xff] }
 0x14b   :  { %1274 = vmatpush.msra.mxu2 %v536_v49  ;;  %1294 = vmatpush.msra.mxu3 %v664_v50  ;;  %v608_v16 = vld [vmem:[#allocation4 + $0xdf8] sm:$0xff]  ;;  %v1603_v50 = vld [vmem:[#allocation6 + $0x8d0] sm:$0xff] }
 0x14c   :  { %1238 = vmatpush.msra.mxu0 %v248_v51  ;;  %1258 = vmatpush.msra.mxu1 %v376_v52  ;;  %v192_v17 = vld [vmem:[#allocation4 + $0xf8] sm:$0xff]  ;;  %v1699_v51 = vld [vmem:[#allocation6 + $0xbd0] sm:$0xff]  ;;  %v3258_v52 = vpop.f32.mrf.mxu3 }
 0x14d   :  { %1275 = vmatpush.msra.mxu2 %v528_v53  ;;  %1295 = vmatpush.msra.mxu3 %v656_v54  ;;  %v320_v18 = vld [vmem:[#allocation4 + $0x4f8] sm:$0xff]  ;;  %v1387_v53 = vld [vmem:[#allocation6 + $0x210] sm:$0xff] }
 0x14e   :  { %1239 = vmatpush.msra.mxu0 %v240_v55  ;;  %1259 = vmatpush.msra.mxu1 %v368_v56  ;;  %v472_v19 = vld [vmem:[#allocation4 + $0x9b8] sm:$0xff]  ;;  %v1483_v54 = vld [vmem:[#allocation6 + $0x510] sm:$0xff]  ;;  %v1597_v55 = vld [vmem:[#allocation6 + $0x8a0] sm:$0xff] }
 0x14f   :  { %1276 = vmatpush.msra.mxu2 %v520_v57  ;;  %1296 = vmatpush.msra.mxu3 %v648_v58  ;;  %v600_v20 = vld [vmem:[#allocation4 + $0xdb8] sm:$0xff]  ;;  %v1693_v56 = vld [vmem:[#allocation6 + $0xba0] sm:$0xff] }
 0x150   :  { %1240 = vmatpush.msra.mxu0 %v232_v59  ;;  %1260 = vmatpush.msra.mxu1 %v360_v60  ;;  %v184_v23 = vld [vmem:[#allocation4 + $0xb8] sm:$0xff]  ;;  %v1381_v57 = vld [vmem:[#allocation6 + $0x1e0] sm:$0xff]  ;;  %v770_v59 = vpop.f32.mrf.mxu0  ;;  %v790_v60 = vpop.f32.mrf.mxu1 }
 0x151   :  { %1277 = vmatpush.msra.mxu2 %v512_v61  ;;  %1297 = vmatpush.msra.mxu3 %v640_v62  ;;  %v312_v24 = vld [vmem:[#allocation4 + $0x4b8] sm:$0xff]  ;;  %v1477_v58 = vld [vmem:[#allocation6 + $0x4e0] sm:$0xff]  ;;  %v1591_v61 = vld [vmem:[#allocation6 + $0x870] sm:$0xff] }
 0x152   :  { %1241 = vmatpush.msra.mxu0 %v224_v63  ;;  %1261 = vmatpush.msra.mxu1 %v352_v0  ;;  %v464_v25 = vld [vmem:[#allocation4 + $0x978] sm:$0xff]  ;;  %v1687_v62 = vld [vmem:[#allocation6 + $0xb70] sm:$0xff]  ;;  %v810_v63 = vpop.f32.mrf.mxu2  ;;  %v1585_v0 = vld [vmem:[#allocation6 + $0x840] sm:$0xff] }
 0x153   :  { %1278 = vmatpush.msra.mxu2 %v504_v1  ;;  %1298 = vmatpush.msra.mxu3 %v632_v2  ;;  %v592_v26 = vld [vmem:[#allocation4 + $0xd78] sm:$0xff]  ;;  %v1681_v1 = vld [vmem:[#allocation6 + $0xb40] sm:$0xff] }
 0x154   :  { %1242 = vmatpush.msra.mxu0 %v216_v3  ;;  %1262 = vmatpush.msra.mxu1 %v344_v4  ;;  %v176_v27 = vld [vmem:[#allocation4 + $0x78] sm:$0xff]  ;;  %v1369_v2 = vld [vmem:[#allocation6 + $0x180] sm:$0xff]  ;;  %v1579_v4 = vld [vmem:[#allocation6 + $0x810] sm:$0xff] }
 0x155   :  { %1279 = vmatpush.msra.mxu2 %v496_v5  ;;  %1299 = vmatpush.msra.mxu3 %v624_v6  ;;  %v304_v28 = vld [vmem:[#allocation4 + $0x478] sm:$0xff]  ;;  %v1465_v3 = vld [vmem:[#allocation6 + $0x480] sm:$0xff]  ;;  %v1675_v5 = vld [vmem:[#allocation6 + $0xb10] sm:$0xff] }
 0x156   :  { %1243 = vmatpush.msra.mxu0 %v208_v7  ;;  %1263 = vmatpush.msra.mxu1 %v336_v8  ;;  %v456_v29 = vld [vmem:[#allocation4 + $0x938] sm:$0xff]  ;;  %v1363_v6 = vld [vmem:[#allocation6 + $0x150] sm:$0xff]  ;;  %v1573_v8 = vld [vmem:[#allocation6 + $0x7e0] sm:$0xff] }
 0x157   :  { %1280 = vmatpush.msra.mxu2 %v488_v9  ;;  %1300 = vmatpush.msra.mxu3 %v616_v10  ;;  %v584_v30 = vld [vmem:[#allocation4 + $0xd38] sm:$0xff]  ;;  %v1459_v7 = vld [vmem:[#allocation6 + $0x450] sm:$0xff]  ;;  %v1669_v9 = vld [vmem:[#allocation6 + $0xae0] sm:$0xff]  ;;  %v830_v10 = vpop.f32.mrf.mxu3 }
 0x158   :  { %1244 = vmatpush.msra.mxu0 %v200_v13  ;;  %1264 = vmatpush.msra.mxu1 %v328_v14  ;;  %v168_v31 = vld [vmem:[#allocation4 + $0x38] sm:$0xff]  ;;  %v1357_v13 = vld [vmem:[#allocation6 + $0x120] sm:$0xff] }
 0x159   :  { %1281 = vmatpush.msra.mxu2 %v480_v15  ;;  %1301 = vmatpush.msra.mxu3 %v608_v16  ;;  %v296_v32 = vld [vmem:[#allocation4 + $0x438] sm:$0xff]  ;;  %v1453_v14 = vld [vmem:[#allocation6 + $0x420] sm:$0xff]  ;;  %v850_v15 = vpop.f32.mrf.mxu0  ;;  %v870_v16 = vpop.f32.mrf.mxu1 }
 0x15a   :  { %1245 = vmatpush.msra.mxu0 %v192_v17  ;;  %1265 = vmatpush.msra.mxu1 %v320_v18  ;;  %v448_v33 = vld [vmem:[#allocation4 + $0x8f8] sm:$0xff]  ;;  %v1567_v17 = vld [vmem:[#allocation6 + $0x7b0] sm:$0xff] }
 0x15b   :  { %1282 = vmatpush.msra.mxu2 %v472_v19  ;;  %1302 = vmatpush.msra.mxu3 %v600_v20  ;;  %v576_v34 = vld [vmem:[#allocation4 + $0xcf8] sm:$0xff]  ;;  %v1663_v18 = vld [vmem:[#allocation6 + $0xab0] sm:$0xff] }
 0x15c   :  { %1246 = vmatpush.msra.mxu0 %v184_v23  ;;  %1266 = vmatpush.msra.mxu1 %v312_v24  ;;  %v440_v37 = vld [vmem:[#allocation4 + $0x8b8] sm:$0xff]  ;;  %v1351_v19 = vld [vmem:[#allocation6 + $0xf0] sm:$0xff]  ;;  %v711_v23 = vadd.f32 %v3252_v40, %v3250_v39  ;;  %v890_v24 = vpop.f32.mrf.mxu2  ;;  %v1333_v39 = vld [vmem:[#allocation6 + $0x60] sm:$0xff] }
 0x15d   :  { %1283 = vmatpush.msra.mxu2 %v464_v25  ;;  %1303 = vmatpush.msra.mxu3 %v592_v26  ;;  %v568_v38 = vld [vmem:[#allocation4 + $0xcb8] sm:$0xff]  ;;  %v1447_v20 = vld [vmem:[#allocation6 + $0x3f0] sm:$0xff]  ;;  %v1561_v25 = vld [vmem:[#allocation6 + $0x780] sm:$0xff] }
 0x15e   :  { %1247 = vmatpush.msra.mxu0 %v176_v27  ;;  %1267 = vmatpush.msra.mxu1 %v304_v28  ;;  %v432_v43 = vld [vmem:[#allocation4 + $0x878] sm:$0xff]  ;;  %v1657_v26 = vld [vmem:[#allocation6 + $0xa80] sm:$0xff] }
 0x15f   :  { %1284 = vmatpush.msra.mxu2 %v456_v29  ;;  %1304 = vmatpush.msra.mxu3 %v584_v30  ;;  %v560_v44 = vld [vmem:[#allocation4 + $0xc78] sm:$0xff]  ;;  %v1345_v27 = vld [vmem:[#allocation6 + $0xc0] sm:$0xff]  ;;  %v791_v29 = vadd.f32 %v790_v60, %v770_v59  ;;  %v1555_v30 = vld [vmem:[#allocation6 + $0x750] sm:$0xff] }
 0x160   :  { %1248 = vmatpush.msra.mxu0 %v168_v31  ;;  %1268 = vmatpush.msra.mxu1 %v296_v32  ;;  %v424_v48 = vld [vmem:[#allocation4 + $0x838] sm:$0xff]  ;;  %v1441_v28 = vld [vmem:[#allocation6 + $0x3c0] sm:$0xff]  ;;  %v1651_v31 = vld [vmem:[#allocation6 + $0xa50] sm:$0xff] }
 0x161   :  { %1285 = vmatpush.msra.mxu2 %v448_v33  ;;  %1305 = vmatpush.msra.mxu3 %v576_v34  ;;  %v552_v49 = vld [vmem:[#allocation4 + $0xc38] sm:$0xff]  ;;  %v1339_v32 = vld [vmem:[#allocation6 + $0x90] sm:$0xff]  ;;  %v731_v34 = vadd.f32 %v3256_v45, %v711_v23  ;;  %v1429_v40 = vld [vmem:[#allocation6 + $0x360] sm:$0xff] }
 0x162   :  { %1249 = vmatmul.f32.vlgmr.msra.gmra.mxu0 %v3214_v11  ;;  %1269 = vmatmul.f32.vlgmr.msra.gmra.mxu1 %v3216_v12  ;;  %v1393_v11 = vld [vmem:[#allocation6 + $0x240] sm:$0xff]  ;;  %v1435_v33 = vld [vmem:[#allocation6 + $0x390] sm:$0xff] }
 0x163   :  { %2089 = vmatpush.msrb.mxu0 %v1411_v35  ;;  %2109 = vmatpush.msrb.mxu1 %v1507_v36  ;;  %v1489_v12 = vld [vmem:[#allocation6 + $0x540] sm:$0xff]  ;;  %v811_v35 = vadd.f32 %v810_v63, %v791_v29  ;;  %v1423_v45 = vld [vmem:[#allocation6 + $0x330] sm:$0xff] }
 0x164   :  { %1286 = vmatpush.msra.mxu2 %v440_v37  ;;  %1306 = vmatpush.msra.mxu3 %v568_v38  ;;  %v1549_v36 = vld [vmem:[#allocation6 + $0x720] sm:$0xff]  ;;  %v910_v38 = vpop.f32.mrf.mxu3  ;;  %v1795_v60 = vld [vmem:[#allocation6 + $0xed0] sm:$0xff] }
 0x165   :  { %2090 = vmatpush.msrb.mxu0 %v1405_v41  ;;  %2110 = vmatpush.msrb.mxu1 %v1501_v42  ;;  %v1645_v37 = vld [vmem:[#allocation6 + $0xa20] sm:$0xff]  ;;  %v930_v41 = vpop.f32.mrf.mxu0  ;;  %v950_v42 = vpop.f32.mrf.mxu1  ;;  %v1975_v23 = vld [vmem:[#allocation6 + $0x1470] sm:$0xff] }
 0x166   :  { %1287 = vmatpush.msra.mxu2 %v432_v43  ;;  %1307 = vmatpush.msra.mxu3 %v560_v44  ;;  %v1543_v43 = vld [vmem:[#allocation6 + $0x6f0] sm:$0xff]  ;;  %v1789_v63 = vld [vmem:[#allocation6 + $0xea0] sm:$0xff] }
 0x167   :  { %2091 = vmatpush.msrb.mxu0 %v1399_v46  ;;  %2111 = vmatpush.msrb.mxu1 %v1495_v47  ;;  %v1639_v44 = vld [vmem:[#allocation6 + $0x9f0] sm:$0xff]  ;;  %v751_v47 = vadd.f32 %v3258_v52, %v731_v34  ;;  %v1837_v34 = vld [vmem:[#allocation6 + $0x1020] sm:$0xff] }
 0x168   :  { %1288 = vmatpush.msra.mxu2 %v424_v48  ;;  %1308 = vmatpush.msra.mxu3 %v552_v49  ;;  %v1327_v46 = vld [vmem:[#allocation6 + $0x30] sm:$0xff]  ;;  %v831_v48 = vadd.f32 %v830_v10, %v811_v35  ;;  %v970_v49 = vpop.f32.mrf.mxu2 }
 0x169   :  { %1289 = vmatmul.f32.vlgmr.msra.gmra.mxu2 %v3220_v21  ;;  %1309 = vmatmul.f32.vlgmr.msra.gmra.mxu3 %v3222_v22  ;;  %v1375_v21 = vld [vmem:[#allocation6 + $0x1b0] sm:$0xff]  ;;  %v3266_v52 = vmax.f32 %v751_v47, 0.0  ;;  %v2077_v47 = vld [vmem:[#allocation6 + $0x17a0] sm:$0xff] }
 0x16a   :  { %2092 = vmatpush.msrb.mxu0 %v1393_v11  ;;  %2112 = vmatpush.msrb.mxu1 %v1489_v12  ;;  %v1471_v22 = vld [vmem:[#allocation6 + $0x4b0] sm:$0xff]  ;;  %v1537_v11 = vld [vmem:[#allocation6 + $0x6c0] sm:$0xff]  ;;  %v3268_v59 = vmax.f32 %v831_v48, 0.0 }
 0x16b   :  { %2129 = vmatpush.msrb.mxu2 %v1603_v50  ;;  %2149 = vmatpush.msrb.mxu3 %v1699_v51  ;;  %v1633_v12 = vld [vmem:[#allocation6 + $0x9c0] sm:$0xff]  ;;  %v871_v50 = vadd.f32 %v870_v16, %v850_v15  ;;  %v951_v51 = vadd.f32 %v950_v42, %v930_v41  ;;  %v1987_v15 = vld [vmem:[#allocation6 + $0x14d0] sm:$0xff] }
 0x16c   :  { %2093 = vmatpush.msrb.mxu0 %v1387_v53  ;;  %2113 = vmatpush.msrb.mxu1 %v1483_v54  ;;  %v1321_v53 = vld [vmem:[#allocation6] sm:$0xff]  ;;  %v1771_v16 = vld [vmem:[#allocation6 + $0xe10] sm:$0xff] }
 0x16d   :  { %2130 = vmatpush.msrb.mxu2 %v1597_v55  ;;  %2150 = vmatpush.msrb.mxu3 %v1693_v56  ;;  %v1417_v54 = vld [vmem:[#allocation6 + $0x300] sm:$0xff]  ;;  %v1531_v55 = vld [vmem:[#allocation6 + $0x690] sm:$0xff] }
 0x16e   :  { %2094 = vmatpush.msrb.mxu0 %v1381_v57  ;;  %2114 = vmatpush.msrb.mxu1 %v1477_v58  ;;  %v1627_v56 = vld [vmem:[#allocation6 + $0x990] sm:$0xff]  ;;  %v891_v57 = vadd.f32 %v890_v24, %v871_v50  ;;  %v971_v58 = vadd.f32 %v970_v49, %v951_v51  ;;  %v1945_v41 = vld [vmem:[#allocation6 + $0x1380] sm:$0xff] }
 0x16f   :  { %2131 = vmatpush.msrb.mxu2 %v1591_v61  ;;  %2151 = vmatpush.msrb.mxu3 %v1687_v62  ;;  %v1891_v61 = vld [vmem:[#allocation6 + $0x11d0] sm:$0xff]  ;;  %v1525_v62 = vld [vmem:[#allocation6 + $0x660] sm:$0xff] }
 0x170   :  { %2095 = vmatpush.msrb.mxu0 %v1375_v21  ;;  %2115 = vmatpush.msrb.mxu1 %v1471_v22  ;;  %v1621_v21 = vld [vmem:[#allocation6 + $0x960] sm:$0xff]  ;;  %v990_v22 = vpop.f32.mrf.mxu3  ;;  %v1759_v24 = vld [vmem:[#allocation6 + $0xdb0] sm:$0xff] }
 0x171   :  { %2132 = vmatpush.msrb.mxu2 %v1585_v0  ;;  %2152 = vmatpush.msrb.mxu3 %v1681_v1  ;;  %v1885_v0 = vld [vmem:[#allocation6 + $0x11a0] sm:$0xff]  ;;  %v911_v1 = vadd.f32 %v910_v38, %v891_v57  ;;  %v1963_v29 = vld [vmem:[#allocation6 + $0x1410] sm:$0xff] }
 0x172   :  { %2096 = vmatpush.msrb.mxu0 %v1369_v2  ;;  %2116 = vmatpush.msrb.mxu1 %v1465_v3  ;;  %v991_v2 = vadd.f32 %v990_v22, %v971_v58  ;;  %v1519_v3 = vld [vmem:[#allocation6 + $0x630] sm:$0xff]  ;;  %v1717_v51 = vld [vmem:[#allocation6 + $0xc60] sm:$0xff] }
 0x173   :  { %2133 = vmatpush.msrb.mxu2 %v1579_v4  ;;  %2153 = vmatpush.msrb.mxu3 %v1675_v5  ;;  %v1615_v4 = vld [vmem:[#allocation6 + $0x930] sm:$0xff]  ;;  %v1801_v22 = vld [vmem:[#allocation6 + $0xf00] sm:$0xff] }
 0x174   :  { %2097 = vmatpush.msrb.mxu0 %v1363_v6  ;;  %2117 = vmatpush.msrb.mxu1 %v1459_v7  ;;  %v1783_v5 = vld [vmem:[#allocation6 + $0xe70] sm:$0xff]  ;;  %v1513_v7 = vld [vmem:[#allocation6 + $0x600] sm:$0xff]  ;;  %v3274_v10 = vmax.f32 %v991_v2, 0.0  ;;  %v1412_v2 = vld [vmem:[#allocation6 + $0x2d8] sm:$0xff] }
 0x175   :  { %2134 = vmatpush.msrb.mxu2 %v1573_v8  ;;  %2154 = vmatpush.msrb.mxu3 %v1669_v9  ;;  %v1879_v6 = vld [vmem:[#allocation6 + $0x1170] sm:$0xff]  ;;  %v1609_v8 = vld [vmem:[#allocation6 + $0x900] sm:$0xff]  ;;  %v3272_v9 = vmax.f32 %v911_v1, 0.0 }
 0x176   :  { %2098 = vmatpush.msrb.mxu0 %v1357_v13  ;;  %2118 = vmatpush.msrb.mxu1 %v1453_v14  ;;  %v1777_v13 = vld [vmem:[#allocation6 + $0xe40] sm:$0xff]  ;;  %v1735_v38 = vld [vmem:[#allocation6 + $0xcf0] sm:$0xff] }
 0x177   :  { %2135 = vmatpush.msrb.mxu2 %v1567_v17  ;;  %2155 = vmatpush.msrb.mxu3 %v1663_v18  ;;  %v1873_v14 = vld [vmem:[#allocation6 + $0x1140] sm:$0xff]  ;;  %v1867_v17 = vld [vmem:[#allocation6 + $0x1110] sm:$0xff] }
 0x178   :  { %2099 = vmatpush.msrb.mxu0 %v1351_v19  ;;  %2119 = vmatpush.msrb.mxu1 %v1447_v20  ;;  %v1981_v18 = vld [vmem:[#allocation6 + $0x14a0] sm:$0xff]  ;;  %v2083_v42 = vld [vmem:[#allocation6 + $0x17d0] sm:$0xff] }
 0x179   :  { %2136 = vmatpush.msrb.mxu2 %v1561_v25  ;;  %2156 = vmatpush.msrb.mxu3 %v1657_v26  ;;  %v1765_v19 = vld [vmem:[#allocation6 + $0xde0] sm:$0xff]  ;;  %v1855_v25 = vld [vmem:[#allocation6 + $0x10b0] sm:$0xff]  ;;  %v1010_v35 = vpop.f32.mrf.mxu0 }
 0x17a   :  { %2100 = vmatpush.msrb.mxu0 %v1345_v27  ;;  %2120 = vmatpush.msrb.mxu1 %v1441_v28  ;;  %v1861_v20 = vld [vmem:[#allocation6 + $0x10e0] sm:$0xff]  ;;  %v1723_v49 = vld [vmem:[#allocation6 + $0xc90] sm:$0xff] }
 0x17b   :  { %2137 = vmatpush.msrb.mxu2 %v1555_v30  ;;  %2157 = vmatpush.msrb.mxu3 %v1651_v31  ;;  %v1969_v26 = vld [vmem:[#allocation6 + $0x1440] sm:$0xff]  ;;  %v1747_v30 = vld [vmem:[#allocation6 + $0xd50] sm:$0xff] }
 0x17c   :  { %2101 = vmatpush.msrb.mxu0 %v1339_v32  ;;  %2121 = vmatpush.msrb.mxu1 %v1435_v33  ;;  %v1753_v27 = vld [vmem:[#allocation6 + $0xd80] sm:$0xff]  ;;  %v1843_v31 = vld [vmem:[#allocation6 + $0x1050] sm:$0xff] }
 0x17d   :  { %2138 = vmatpush.msrb.mxu2 %v1549_v36  ;;  %2158 = vmatpush.msrb.mxu3 %v1645_v37  ;;  %v1849_v28 = vld [vmem:[#allocation6 + $0x1080] sm:$0xff]  ;;  %v1030_v36 = vpop.f32.mrf.mxu1  ;;  %v1951_v37 = vld [vmem:[#allocation6 + $0x13b0] sm:$0xff] }
 0x17e   :  { %2102 = vmatpush.msrb.mxu0 %v1333_v39  ;;  %2122 = vmatpush.msrb.mxu1 %v1429_v40  ;;  %v1957_v32 = vld [vmem:[#allocation6 + $0x13e0] sm:$0xff]  ;;  %v1831_v39 = vld [vmem:[#allocation6 + $0xff0] sm:$0xff] }
 0x17f   :  { %2139 = vmatpush.msrb.mxu2 %v1543_v43  ;;  %2159 = vmatpush.msrb.mxu3 %v1639_v44  ;;  %v1741_v33 = vld [vmem:[#allocation6 + $0xd20] sm:$0xff]  ;;  %v1031_v43 = vadd.f32 %v1030_v36, %v1010_v35  ;;  %v2071_v50 = vld [vmem:[#allocation6 + $0x1770] sm:$0xff]  ;;  %v1382_v35 = vld [vmem:[#allocation6 + $0x1e8] sm:$0xff] }
 0x180   :  { %2103 = vmatpush.msrb.mxu0 %v1327_v46  ;;  %2123 = vmatpush.msrb.mxu1 %v1423_v45  ;;  %v1729_v44 = vld [vmem:[#allocation6 + $0xcc0] sm:$0xff]  ;;  %v1939_v45 = vld [vmem:[#allocation6 + $0x1350] sm:$0xff] }
 0x181   :  { %2140 = vmatpush.msrb.mxu2 %v1537_v11  ;;  %2160 = vmatpush.msrb.mxu3 %v1633_v12  ;;  %v1825_v46 = vld [vmem:[#allocation6 + $0xfc0] sm:$0xff]  ;;  %v1819_v11 = vld [vmem:[#allocation6 + $0xf90] sm:$0xff] }
 0x182   :  { %2104 = vmatpush.msrb.mxu0 %v1321_v53  ;;  %2124 = vmatpush.msrb.mxu1 %v1417_v54  ;;  %v1933_v12 = vld [vmem:[#allocation6 + $0x1320] sm:$0xff]  ;;  %v1711_v58 = vld [vmem:[#allocation6 + $0xc30] sm:$0xff] }
 0x183   :  { %2141 = vmatpush.msrb.mxu2 %v1531_v55  ;;  %2161 = vmatpush.msrb.mxu3 %v1627_v56  ;;  %v1813_v53 = vld [vmem:[#allocation6 + $0xf60] sm:$0xff]  ;;  %v1927_v55 = vld [vmem:[#allocation6 + $0x12f0] sm:$0xff] }
 0x184   :  { %2105 = vmatmul.f32.vlgmr.msrb.gmra.mxu0 %v3266_v52  ;;  %2125 = vmatmul.f32.vlgmr.msrb.gmra.mxu1 %v3268_v59  ;;  %v2065_v56 = vld [vmem:[#allocation6 + $0x1740] sm:$0xff] }
 0x185   :  { %2169 = vmatpush.msra.mxu0 %v1795_v60  ;;  %2189 = vmatpush.msra.mxu1 %v1891_v61  ;;  %v1807_v60 = vld [vmem:[#allocation6 + $0xf30] sm:$0xff]  ;;  %v1921_v61 = vld [vmem:[#allocation6 + $0x12c0] sm:$0xff] }
 0x186   :  { %2142 = vmatpush.msrb.mxu2 %v1525_v62  ;;  %2162 = vmatpush.msrb.mxu3 %v1621_v21  ;;  %v1050_v40 = vpop.f32.mrf.mxu2  ;;  %v1070_v54 = vpop.f32.mrf.mxu3  ;;  %v2059_v62 = vld [vmem:[#allocation6 + $0x1710] sm:$0xff]  ;;  %v1705_v21 = vld [vmem:[#allocation6 + $0xc00] sm:$0xff] }
 0x187   :  { %2170 = vmatpush.msra.mxu0 %v1789_v63  ;;  %2190 = vmatpush.msra.mxu1 %v1885_v0  ;;  %v1051_v48 = vadd.f32 %v1050_v40, %v1031_v43  ;;  %v1508_v63 = vld [vmem:[#allocation6 + $0x5d8] sm:$0xff]  ;;  %v2053_v0 = vld [vmem:[#allocation6 + $0x16e0] sm:$0xff]  ;;  %v2023_v40 = vld [vmem:[#allocation6 + $0x15f0] sm:$0xff] }
 0x188   :  { %2143 = vmatpush.msrb.mxu2 %v1519_v3  ;;  %2163 = vmatpush.msrb.mxu3 %v1615_v4  ;;  %v1915_v3 = vld [vmem:[#allocation6 + $0x1290] sm:$0xff]  ;;  %v1370_v43 = vld [vmem:[#allocation6 + $0x188] sm:$0xff] }
 0x189   :  { %2171 = vmatpush.msra.mxu0 %v1783_v5  ;;  %2191 = vmatpush.msra.mxu1 %v1879_v6  ;;  %v1071_v57 = vadd.f32 %v1070_v54, %v1051_v48  ;;  %v1502_v6 = vld [vmem:[#allocation6 + $0x5a8] sm:$0xff]  ;;  %v2011_v48 = vld [vmem:[#allocation6 + $0x1590] sm:$0xff]  ;;  %v1352_v54 = vld [vmem:[#allocation6 + $0xf8] sm:$0xff] }
 0x18a   :  { %2144 = vmatpush.msrb.mxu2 %v1513_v7  ;;  %2164 = vmatpush.msrb.mxu3 %v1609_v8  ;;  %v1406_v7 = vld [vmem:[#allocation6 + $0x2a8] sm:$0xff]  ;;  %v1909_v8 = vld [vmem:[#allocation6 + $0x1260] sm:$0xff] }
 0x18b   :  { %2145 = vmatmul.f32.vlgmr.msrb.gmra.mxu2 %v3272_v9  ;;  %2165 = vmatmul.f32.vlgmr.msrb.gmra.mxu3 %v3274_v10  ;;  %v3278_v1 = vmax.f32 %v1071_v57, 0.0  ;;  %v1562_v57 = vld [vmem:[#allocation6 + $0x788] sm:$0xff] }
 0x18c   :  { %2172 = vmatpush.msra.mxu0 %v1777_v13  ;;  %2192 = vmatpush.msra.mxu1 %v1873_v14  ;;  %v1496_v13 = vld [vmem:[#allocation6 + $0x578] sm:$0xff]  ;;  %v2047_v14 = vld [vmem:[#allocation6 + $0x16b0] sm:$0xff] }
 0x18d   :  { %2209 = vmatpush.msra.mxu2 %v1987_v15  ;;  %2229 = vmatpush.msra.mxu3 %v2083_v42  ;;  %v1586_v42 = vld [vmem:[#allocation6 + $0x848] sm:$0xff] }
 0x18e   :  { %2173 = vmatpush.msra.mxu0 %v1771_v16  ;;  %2193 = vmatpush.msra.mxu1 %v1867_v17  ;;  %v1400_v16 = vld [vmem:[#allocation6 + $0x278] sm:$0xff]  ;;  %v1903_v17 = vld [vmem:[#allocation6 + $0x1230] sm:$0xff] }
 0x18f   :  { %2210 = vmatpush.msra.mxu2 %v1981_v18  ;;  %2230 = vmatpush.msra.mxu3 %v2077_v47  ;;  %v1490_v18 = vld [vmem:[#allocation6 + $0x548] sm:$0xff]  ;;  %v1364_v47 = vld [vmem:[#allocation6 + $0x158] sm:$0xff] }
 0x190   :  { %2174 = vmatpush.msra.mxu0 %v1765_v19  ;;  %2194 = vmatpush.msra.mxu1 %v1861_v20  ;;  %v2041_v20 = vld [vmem:[#allocation6 + $0x1680] sm:$0xff] }
 0x191   :  { %2211 = vmatpush.msra.mxu2 %v1975_v23  ;;  %2231 = vmatpush.msra.mxu3 %v2071_v50  ;;  %v1394_v23 = vld [vmem:[#allocation6 + $0x248] sm:$0xff]  ;;  %v2005_v50 = vld [vmem:[#allocation6 + $0x1560] sm:$0xff] }
 0x192   :  { %2175 = vmatpush.msra.mxu0 %v1759_v24  ;;  %2195 = vmatpush.msra.mxu1 %v1855_v25  ;;  %v1897_v25 = vld [vmem:[#allocation6 + $0x1200] sm:$0xff] }
 0x193   :  { %2212 = vmatpush.msra.mxu2 %v1969_v26  ;;  %2232 = vmatpush.msra.mxu3 %v2065_v56  ;;  %v1484_v26 = vld [vmem:[#allocation6 + $0x518] sm:$0xff]  ;;  %v1442_v56 = vld [vmem:[#allocation6 + $0x3c8] sm:$0xff] }
 0x194   :  { %2176 = vmatpush.msra.mxu0 %v1753_v27  ;;  %2196 = vmatpush.msra.mxu1 %v1849_v28  ;;  %v1604_v28 = vld [vmem:[#allocation6 + $0x8d8] sm:$0xff] }
 0x195   :  { %2213 = vmatpush.msra.mxu2 %v1963_v29  ;;  %2233 = vmatpush.msra.mxu3 %v2059_v62  ;;  %v2035_v29 = vld [vmem:[#allocation6 + $0x1650] sm:$0xff]  ;;  %v1556_v62 = vld [vmem:[#allocation6 + $0x758] sm:$0xff] }
 0x196   :  { %2177 = vmatpush.msra.mxu0 %v1747_v30  ;;  %2197 = vmatpush.msra.mxu1 %v1843_v31  ;;  %v1388_v30 = vld [vmem:[#allocation6 + $0x218] sm:$0xff] }
 0x197   :  { %2214 = vmatpush.msra.mxu2 %v1957_v32  ;;  %2234 = vmatpush.msra.mxu3 %v2053_v0  ;;  %v1478_v32 = vld [vmem:[#allocation6 + $0x4e8] sm:$0xff] }
 0x198   :  { %2178 = vmatpush.msra.mxu0 %v1741_v33  ;;  %2198 = vmatpush.msra.mxu1 %v1837_v34  ;;  %v1598_v33 = vld [vmem:[#allocation6 + $0x8a8] sm:$0xff]  ;;  %v2029_v34 = vld [vmem:[#allocation6 + $0x1620] sm:$0xff] }
 0x199   :  { %2215 = vmatpush.msra.mxu2 %v1951_v37  ;;  %2235 = vmatpush.msra.mxu3 %v2047_v14  ;;  %v1472_v37 = vld [vmem:[#allocation6 + $0x4b8] sm:$0xff]  ;;  %v1550_v0 = vld [vmem:[#allocation6 + $0x728] sm:$0xff] }
 0x19a   :  { %2179 = vmatpush.msra.mxu0 %v1735_v38  ;;  %2199 = vmatpush.msra.mxu1 %v1831_v39  ;;  %v1592_v38 = vld [vmem:[#allocation6 + $0x878] sm:$0xff]  ;;  %v1322_v14 = vld [vmem:[#allocation6 + $0x8] sm:$0xff] }
 0x19b   :  { %2216 = vmatpush.msra.mxu2 %v1945_v41  ;;  %v1090_v4 = vpop.f32.mrf.mxu0  ;;  %v1110_v5 = vpop.f32.mrf.mxu1  ;;  %2236 = vmatpush.msra.mxu3 %v2041_v20  ;;  %v1376_v39 = vld [vmem:[#allocation6 + $0x1b8] sm:$0xff]  ;;  %v1466_v41 = vld [vmem:[#allocation6 + $0x488] sm:$0xff] }
 0x19c   :  { %2180 = vmatpush.msra.mxu0 %v1729_v44  ;;  %2200 = vmatpush.msra.mxu1 %v1825_v46  ;;  %v1111_v15 = vadd.f32 %v1110_v5, %v1090_v4  ;;  %v2017_v44 = vld [vmem:[#allocation6 + $0x15c0] sm:$0xff]  ;;  %v1460_v46 = vld [vmem:[#allocation6 + $0x458] sm:$0xff]  ;;  %v1790_v20 = vld [vmem:[#allocation6 + $0xea8] sm:$0xff] }
 0x19d   :  { %2217 = vmatpush.msra.mxu2 %v1939_v45  ;;  %2237 = vmatpush.msra.mxu3 %v2035_v29  ;;  %v1580_v45 = vld [vmem:[#allocation6 + $0x818] sm:$0xff] }
 0x19e   :  { %2181 = vmatpush.msra.mxu0 %v1723_v49  ;;  %2201 = vmatpush.msra.mxu1 %v1819_v11  ;;  %v1454_v49 = vld [vmem:[#allocation6 + $0x428] sm:$0xff]  ;;  %v1424_v4 = vld [vmem:[#allocation6 + $0x338] sm:$0xff] }
 0x19f   :  { %2218 = vmatpush.msra.mxu2 %v1933_v12  ;;  %2238 = vmatpush.msra.mxu3 %v2029_v34  ;;  %v1574_v11 = vld [vmem:[#allocation6 + $0x7e8] sm:$0xff]  ;;  %v1544_v5 = vld [vmem:[#allocation6 + $0x6f8] sm:$0xff] }
 0x1a0   :  { %2182 = vmatpush.msra.mxu0 %v1717_v51  ;;  %2202 = vmatpush.msra.mxu1 %v1813_v53  ;;  %v1358_v12 = vld [vmem:[#allocation6 + $0x128] sm:$0xff]  ;;  %v1448_v51 = vld [vmem:[#allocation6 + $0x3f8] sm:$0xff] }
 0x1a1   :  { %2219 = vmatpush.msra.mxu2 %v1927_v55  ;;  %2239 = vmatpush.msra.mxu3 %v2023_v40  ;;  %v1568_v53 = vld [vmem:[#allocation6 + $0x7b8] sm:$0xff]  ;;  %v1999_v55 = vld [vmem:[#allocation6 + $0x1530] sm:$0xff]  ;;  %v1514_v34 = vld [vmem:[#allocation6 + $0x608] sm:$0xff] }
 0x1a2   :  { %2183 = vmatpush.msra.mxu0 %v1711_v58  ;;  %2203 = vmatpush.msra.mxu1 %v1807_v60  ;;  %v1346_v58 = vld [vmem:[#allocation6 + $0xc8] sm:$0xff]  ;;  %v1993_v60 = vld [vmem:[#allocation6 + $0x1500] sm:$0xff]  ;;  %v1520_v29 = vld [vmem:[#allocation6 + $0x638] sm:$0xff] }
 0x1a3   :  { %2220 = vmatpush.msra.mxu2 %v1921_v61  ;;  %2240 = vmatpush.msra.mxu3 %v2017_v44  ;;  %v1436_v61 = vld [vmem:[#allocation6 + $0x398] sm:$0xff]  ;;  %v1766_v44 = vld [vmem:[#allocation6 + $0xde8] sm:$0xff] }
 0x1a4   :  { %2184 = vmatpush.msra.mxu0 %v1705_v21  ;;  %2204 = vmatpush.msra.mxu1 %v1801_v22  ;;  %v1340_v21 = vld [vmem:[#allocation6 + $0x98] sm:$0xff] }
 0x1a5   :  { %2185 = vmatmul.f32.vlgmr.msra.gmra.mxu0 %v3278_v1  ;;  %2221 = vmatpush.msra.mxu2 %v1915_v3  ;;  %v1700_v22 = vld [vmem:[#allocation6 + $0xbd8] sm:$0xff]  ;;  %v1694_v3 = vld [vmem:[#allocation6 + $0xba8] sm:$0xff] }
 0x1a6   :  { %2269 = vmatpush.msrb.mxu1 %v1508_v63  ;;  %2249 = vmatpush.msrb.mxu0 %v1412_v2  ;;  %v1430_v63 = vld [vmem:[#allocation6 + $0x368] sm:$0xff] }
 0x1a7   :  { %2222 = vmatpush.msra.mxu2 %v1909_v8  ;;  %2241 = vmatpush.msra.mxu3 %v2011_v48  ;;  %v1334_v2 = vld [vmem:[#allocation6 + $0x68] sm:$0xff] }
 0x1a8   :  { %2270 = vmatpush.msrb.mxu1 %v1502_v6  ;;  %2250 = vmatpush.msrb.mxu0 %v1406_v7  ;;  %v1130_v19 = vpop.f32.mrf.mxu2  ;;  %v1150_v27 = vpop.f32.mrf.mxu3  ;;  %v1328_v6 = vld [vmem:[#allocation6 + $0x38] sm:$0xff]  ;;  %v1418_v8 = vld [vmem:[#allocation6 + $0x308] sm:$0xff] }
 0x1a9   :  { %v1131_v24 = vadd.f32 %v1130_v19, %v1111_v15  ;;  %2223 = vmatpush.msra.mxu2 %v1903_v17  ;;  %2242 = vmatpush.msra.mxu3 %v2005_v50  ;;  %v1688_v7 = vld [vmem:[#allocation6 + $0xb78] sm:$0xff]  ;;  %v1682_v19 = vld [vmem:[#allocation6 + $0xb48] sm:$0xff] }
 0x1aa   :  { %2271 = vmatpush.msrb.mxu1 %v1496_v13  ;;  %2251 = vmatpush.msrb.mxu0 %v1400_v16  ;;  %v1538_v13 = vld [vmem:[#allocation6 + $0x6c8] sm:$0xff]  ;;  %v1892_v15 = vld [vmem:[#allocation6 + $0x11d8] sm:$0xff] }
 0x1ab   :  { %v1151_v31 = vadd.f32 %v1150_v27, %v1131_v24  ;;  %2224 = vmatpush.msra.mxu2 %v1897_v25  ;;  %2243 = vmatpush.msra.mxu3 %v1999_v55  ;;  %v1796_v16 = vld [vmem:[#allocation6 + $0xed8] sm:$0xff]  ;;  %v1754_v50 = vld [vmem:[#allocation6 + $0xd88] sm:$0xff] }
 0x1ac   :  { %2272 = vmatpush.msrb.mxu1 %v1490_v18  ;;  %2252 = vmatpush.msrb.mxu0 %v1394_v23  ;;  %v1532_v17 = vld [vmem:[#allocation6 + $0x698] sm:$0xff]  ;;  %v1886_v18 = vld [vmem:[#allocation6 + $0x11a8] sm:$0xff] }
 0x1ad   :  { %v3281_v36 = vmax.f32 %v1151_v31, 0.0  ;;  %2289 = vmatpush.msrb.mxu2 %v1604_v28  ;;  %2244 = vmatpush.msra.mxu3 %v1993_v60  ;;  %v1526_v23 = vld [vmem:[#allocation6 + $0x668] sm:$0xff]  ;;  %v1676_v27 = vld [vmem:[#allocation6 + $0xb18] sm:$0xff] }
 0x1ae   :  { %2273 = vmatpush.msrb.mxu1 %v1484_v26  ;;  %2253 = vmatpush.msrb.mxu0 %v1388_v30  ;;  %v1880_v26 = vld [vmem:[#allocation6 + $0x1178] sm:$0xff]  ;;  %v1874_v30 = vld [vmem:[#allocation6 + $0x1148] sm:$0xff] }
 0x1af   :  { %2290 = vmatpush.msrb.mxu2 %v1598_v33  ;;  %2205 = vmatmul.f32.vlgmr.msra.gmra.mxu1 %v3281_v36  ;;  %v1784_v28 = vld [vmem:[#allocation6 + $0xe78] sm:$0xff]  ;;  %v1670_v31 = vld [vmem:[#allocation6 + $0xae8] sm:$0xff] }
 0x1b0   :  { %2274 = vmatpush.msrb.mxu1 %v1478_v32  ;;  %2254 = vmatpush.msrb.mxu0 %v1382_v35  ;;  %v1778_v33 = vld [vmem:[#allocation6 + $0xe48] sm:$0xff]  ;;  %v1868_v35 = vld [vmem:[#allocation6 + $0x1118] sm:$0xff] }
 0x1b1   :  { %2291 = vmatpush.msrb.mxu2 %v1592_v38  ;;  %2309 = vmatpush.msrb.mxu3 %v1700_v22  ;;  %v1664_v38 = vld [vmem:[#allocation6 + $0xab8] sm:$0xff]  ;;  %v1742_v60 = vld [vmem:[#allocation6 + $0xd28] sm:$0xff] }
 0x1b2   :  { %2275 = vmatpush.msrb.mxu1 %v1472_v37  ;;  %2255 = vmatpush.msrb.mxu0 %v1376_v39  ;;  %v1772_v39 = vld [vmem:[#allocation6 + $0xe18] sm:$0xff] }
 0x1b3   :  { %2292 = vmatpush.msrb.mxu2 %v1586_v42  ;;  %2310 = vmatpush.msrb.mxu3 %v1694_v3  ;;  %v1748_v55 = vld [vmem:[#allocation6 + $0xd58] sm:$0xff]  ;;  %v1958_v3 = vld [vmem:[#allocation6 + $0x13e8] sm:$0xff] }
 0x1b4   :  { %2276 = vmatpush.msrb.mxu1 %v1466_v41  ;;  %2256 = vmatpush.msrb.mxu0 %v1370_v43  ;;  %v1862_v41 = vld [vmem:[#allocation6 + $0x10e8] sm:$0xff]  ;;  %v1964_v22 = vld [vmem:[#allocation6 + $0x1418] sm:$0xff] }
 0x1b5   :  { %2293 = vmatpush.msrb.mxu2 %v1580_v45  ;;  %2311 = vmatpush.msrb.mxu3 %v1688_v7  ;;  %v1658_v43 = vld [vmem:[#allocation6 + $0xa88] sm:$0xff]  ;;  %v1856_v45 = vld [vmem:[#allocation6 + $0x10b8] sm:$0xff] }
 0x1b6   :  { %2277 = vmatpush.msrb.mxu1 %v1460_v46  ;;  %2257 = vmatpush.msrb.mxu0 %v1364_v47  ;;  %v1760_v47 = vld [vmem:[#allocation6 + $0xdb8] sm:$0xff] }
 0x1b7   :  { %2294 = vmatpush.msrb.mxu2 %v1574_v11  ;;  %2312 = vmatpush.msrb.mxu3 %v1682_v19  ;;  %v1850_v11 = vld [vmem:[#allocation6 + $0x1088] sm:$0xff]  ;;  %v1952_v7 = vld [vmem:[#allocation6 + $0x13b8] sm:$0xff] }
 0x1b8   :  { %2278 = vmatpush.msrb.mxu1 %v1454_v49  ;;  %2258 = vmatpush.msrb.mxu0 %v1358_v12  ;;  %v1988_v49 = vld [vmem:[#allocation6 + $0x14d8] sm:$0xff] }
 0x1b9   :  { %2295 = vmatpush.msrb.mxu2 %v1568_v53  ;;  %2313 = vmatpush.msrb.mxu3 %v1676_v27  ;;  %v1652_v12 = vld [vmem:[#allocation6 + $0xa58] sm:$0xff]  ;;  %v1934_v27 = vld [vmem:[#allocation6 + $0x1328] sm:$0xff] }
 0x1ba   :  { %2279 = vmatpush.msrb.mxu1 %v1448_v51  ;;  %2259 = vmatpush.msrb.mxu0 %v1352_v54  ;;  %v1982_v51 = vld [vmem:[#allocation6 + $0x14a8] sm:$0xff]  ;;  %v1844_v53 = vld [vmem:[#allocation6 + $0x1058] sm:$0xff] }
 0x1bb   :  { %2296 = vmatpush.msrb.mxu2 %v1562_v57  ;;  %2314 = vmatpush.msrb.mxu3 %v1670_v31  ;;  %v1646_v54 = vld [vmem:[#allocation6 + $0xa28] sm:$0xff]  ;;  %v1940_v19 = vld [vmem:[#allocation6 + $0x1358] sm:$0xff]  ;;  %v1497_v31 = vld [vmem:[#allocation6 + $0x580] sm:$0xff] }
 0x1bc   :  { %2280 = vmatpush.msrb.mxu1 %v1442_v56  ;;  %2260 = vmatpush.msrb.mxu0 %v1346_v58  ;;  %v1976_v56 = vld [vmem:[#allocation6 + $0x1478] sm:$0xff]  ;;  %v1838_v57 = vld [vmem:[#allocation6 + $0x1028] sm:$0xff] }
 0x1bd   :  { %2297 = vmatpush.msrb.mxu2 %v1556_v62  ;;  %v1170_v24 = vpop.f32.mrf.mxu0  ;;  %v1190_v25 = vpop.f32.mrf.mxu1  ;;  %2315 = vmatpush.msrb.mxu3 %v1664_v38  ;;  %v1640_v58 = vld [vmem:[#allocation6 + $0x9f8] sm:$0xff]  ;;  %v1395_v38 = vld [vmem:[#allocation6 + $0x250] sm:$0xff] }
 0x1be   :  { %2281 = vmatpush.msrb.mxu1 %v1436_v61  ;;  %2261 = vmatpush.msrb.mxu0 %v1340_v21  ;;  %v1191_v32 = vadd.f32 %v1190_v25, %v1170_v24  ;;  %v1970_v61 = vld [vmem:[#allocation6 + $0x1448] sm:$0xff]  ;;  %v1832_v62 = vld [vmem:[#allocation6 + $0xff8] sm:$0xff]  ;;  %v1509_v25 = vld [vmem:[#allocation6 + $0x5e0] sm:$0xff] }
 0x1bf   :  { %2298 = vmatpush.msrb.mxu2 %v1550_v0  ;;  %2316 = vmatpush.msrb.mxu3 %v1658_v43  ;;  %v1736_v21 = vld [vmem:[#allocation6 + $0xcf8] sm:$0xff]  ;;  %v1634_v0 = vld [vmem:[#allocation6 + $0x9c8] sm:$0xff] }
 0x1c0   :  { %2282 = vmatpush.msrb.mxu1 %v1430_v63  ;;  %2262 = vmatpush.msrb.mxu0 %v1334_v2  ;;  %v1826_v63 = vld [vmem:[#allocation6 + $0xfc8] sm:$0xff] }
 0x1c1   :  { %2299 = vmatpush.msrb.mxu2 %v1544_v5  ;;  %2317 = vmatpush.msrb.mxu3 %v1652_v12  ;;  %v1730_v2 = vld [vmem:[#allocation6 + $0xcc8] sm:$0xff]  ;;  %v1628_v5 = vld [vmem:[#allocation6 + $0x998] sm:$0xff] }
 0x1c2   :  { %2283 = vmatpush.msrb.mxu1 %v1424_v4  ;;  %2263 = vmatpush.msrb.mxu0 %v1328_v6  ;;  %v1820_v4 = vld [vmem:[#allocation6 + $0xf98] sm:$0xff]  ;;  %v1706_v24 = vld [vmem:[#allocation6 + $0xc08] sm:$0xff] }
 0x1c3   :  { %2300 = vmatpush.msrb.mxu2 %v1538_v13  ;;  %2318 = vmatpush.msrb.mxu3 %v1646_v54  ;;  %v1724_v6 = vld [vmem:[#allocation6 + $0xc98] sm:$0xff]  ;;  %v1622_v13 = vld [vmem:[#allocation6 + $0x968] sm:$0xff]  ;;  %v1467_v54 = vld [vmem:[#allocation6 + $0x490] sm:$0xff] }
 0x1c4   :  { %2284 = vmatpush.msrb.mxu1 %v1418_v8  ;;  %2264 = vmatpush.msrb.mxu0 %v1322_v14  ;;  %v1814_v8 = vld [vmem:[#allocation6 + $0xf68] sm:$0xff] }
 0x1c5   :  { %2285 = vmatmul.f32.vlgmr.msrb.gmra.mxu1 %v3268_v59  ;;  %2265 = vmatmul.f32.vlgmr.msrb.gmra.mxu0 %v3266_v52  ;;  %v1718_v14 = vld [vmem:[#allocation6 + $0xc68] sm:$0xff] }
 0x1c6   :  { %2349 = vmatpush.msra.mxu1 %v1892_v15  ;;  %2329 = vmatpush.msra.mxu0 %v1796_v16  ;;  %v1946_v15 = vld [vmem:[#allocation6 + $0x1388] sm:$0xff]  ;;  %v1808_v16 = vld [vmem:[#allocation6 + $0xf38] sm:$0xff] }
 0x1c7   :  { %2301 = vmatpush.msrb.mxu2 %v1532_v17  ;;  %2319 = vmatpush.msrb.mxu3 %v1640_v58  ;;  %v1616_v17 = vld [vmem:[#allocation6 + $0x938] sm:$0xff]  ;;  %v1910_v43 = vld [vmem:[#allocation6 + $0x1268] sm:$0xff] }
 0x1c8   :  { %2350 = vmatpush.msra.mxu1 %v1886_v18  ;;  %2330 = vmatpush.msra.mxu0 %v1790_v20  ;;  %v1712_v18 = vld [vmem:[#allocation6 + $0xc38] sm:$0xff]  ;;  %v1802_v20 = vld [vmem:[#allocation6 + $0xf08] sm:$0xff] }
 0x1c9   :  { %2302 = vmatpush.msrb.mxu2 %v1526_v23  ;;  %2320 = vmatpush.msrb.mxu3 %v1634_v0  ;;  %v1610_v23 = vld [vmem:[#allocation6 + $0x908] sm:$0xff]  ;;  %v2084_v58 = vld [vmem:[#allocation6 + $0x17d8] sm:$0xff]  ;;  %v1449_v0 = vld [vmem:[#allocation6 + $0x400] sm:$0xff] }
 0x1ca   :  { %2351 = vmatpush.msra.mxu1 %v1880_v26  ;;  %2331 = vmatpush.msra.mxu0 %v1784_v28  ;;  %v1210_v37 = vpop.f32.mrf.mxu2  ;;  %v1230_v42 = vpop.f32.mrf.mxu3  ;;  %v1413_v26 = vld [vmem:[#allocation6 + $0x2e0] sm:$0xff]  ;;  %v1503_v28 = vld [vmem:[#allocation6 + $0x5b0] sm:$0xff] }
 0x1cb   :  { %2303 = vmatpush.msrb.mxu2 %v1520_v29  ;;  %v1211_v40 = vadd.f32 %v1210_v37, %v1191_v32  ;;  %2321 = vmatpush.msrb.mxu3 %v1628_v5  ;;  %v1407_v29 = vld [vmem:[#allocation6 + $0x2b0] sm:$0xff]  ;;  %v1401_v32 = vld [vmem:[#allocation6 + $0x280] sm:$0xff] }
 0x1cc   :  { %2352 = vmatpush.msra.mxu1 %v1874_v30  ;;  %2332 = vmatpush.msra.mxu0 %v1778_v33  ;;  %v1928_v30 = vld [vmem:[#allocation6 + $0x12f8] sm:$0xff]  ;;  %v1922_v33 = vld [vmem:[#allocation6 + $0x12c8] sm:$0xff]  ;;  %v1491_v37 = vld [vmem:[#allocation6 + $0x550] sm:$0xff] }
 0x1cd   :  { %2304 = vmatpush.msrb.mxu2 %v1514_v34  ;;  %v1231_v46 = vadd.f32 %v1230_v42, %v1211_v40  ;;  %2322 = vmatpush.msrb.mxu3 %v1622_v13  ;;  %v1485_v40 = vld [vmem:[#allocation6 + $0x520] sm:$0xff]  ;;  %v1443_v5 = vld [vmem:[#allocation6 + $0x3d0] sm:$0xff] }
 0x1ce   :  { %2353 = vmatpush.msra.mxu1 %v1868_v35  ;;  %2333 = vmatpush.msra.mxu0 %v1772_v39  ;;  %v1916_v39 = vld [vmem:[#allocation6 + $0x1298] sm:$0xff]  ;;  %v1389_v42 = vld [vmem:[#allocation6 + $0x220] sm:$0xff] }
 0x1cf   :  { %v3286_v48 = vmax.f32 %v1231_v46, 0.0  ;;  %2323 = vmatpush.msrb.mxu3 %v1616_v17  ;;  %v1437_v13 = vld [vmem:[#allocation6 + $0x3a0] sm:$0xff] }
 0x1d0   :  { %2354 = vmatpush.msra.mxu1 %v1862_v41  ;;  %2334 = vmatpush.msra.mxu0 %v1766_v44  ;;  %v1479_v44 = vld [vmem:[#allocation6 + $0x4f0] sm:$0xff]  ;;  %v1581_v17 = vld [vmem:[#allocation6 + $0x820] sm:$0xff] }
 0x1d1   :  { %2225 = vmatmul.f32.vlgmr.msra.gmra.mxu2 %v3286_v48  ;;  %2324 = vmatpush.msrb.mxu3 %v1610_v23  ;;  %v1575_v23 = vld [vmem:[#allocation6 + $0x7f0] sm:$0xff] }
 0x1d2   :  { %2355 = vmatpush.msra.mxu1 %v1856_v45  ;;  %2335 = vmatpush.msra.mxu0 %v1760_v47  ;;  %v1383_v45 = vld [vmem:[#allocation6 + $0x1f0] sm:$0xff] }
 0x1d3   :  { %2369 = vmatpush.msra.mxu2 %v1988_v49  ;;  %v1904_v49 = vld [vmem:[#allocation6 + $0x1238] sm:$0xff] }
 0x1d4   :  { %2356 = vmatpush.msra.mxu1 %v1850_v11  ;;  %2336 = vmatpush.msra.mxu0 %v1754_v50  ;;  %v1473_v11 = vld [vmem:[#allocation6 + $0x4c0] sm:$0xff] }
 0x1d5   :  { %2370 = vmatpush.msra.mxu2 %v1982_v51  ;;  %v1377_v50 = vld [vmem:[#allocation6 + $0x1c0] sm:$0xff] }
 0x1d6   :  { %2357 = vmatpush.msra.mxu1 %v1844_v53  ;;  %2337 = vmatpush.msra.mxu0 %v1748_v55  ;;  %v1898_v53 = vld [vmem:[#allocation6 + $0x1208] sm:$0xff] }
 0x1d7   :  { %2371 = vmatpush.msra.mxu2 %v1976_v56  ;;  %v1371_v56 = vld [vmem:[#allocation6 + $0x190] sm:$0xff] }
 0x1d8   :  { %2358 = vmatpush.msra.mxu1 %v1838_v57  ;;  %2338 = vmatpush.msra.mxu0 %v1742_v60  ;;  %v1461_v57 = vld [vmem:[#allocation6 + $0x460] sm:$0xff] }
 0x1d9   :  { %2372 = vmatpush.msra.mxu2 %v1970_v61  ;;  %v1365_v60 = vld [vmem:[#allocation6 + $0x160] sm:$0xff] }
 0x1da   :  { %2359 = vmatpush.msra.mxu1 %v1832_v62  ;;  %2305 = vmatmul.f32.vlgmr.msrb.gmra.mxu2 %v3272_v9  ;;  %v1605_v61 = vld [vmem:[#allocation6 + $0x8e0] sm:$0xff]  ;;  %v1455_v62 = vld [vmem:[#allocation6 + $0x430] sm:$0xff] }
 0x1db   :  { %2339 = vmatpush.msra.mxu0 %v1736_v21  ;;  %2373 = vmatpush.msra.mxu2 %v1964_v22  ;;  %v2078_v21 = vld [vmem:[#allocation6 + $0x17a8] sm:$0xff]  ;;  %v1359_v22 = vld [vmem:[#allocation6 + $0x130] sm:$0xff] }
 0x1dc   :  { %2360 = vmatpush.msra.mxu1 %v1826_v63  ;;  %v1599_v63 = vld [vmem:[#allocation6 + $0x8b0] sm:$0xff] }
 0x1dd   :  { %2340 = vmatpush.msra.mxu0 %v1730_v2  ;;  %2374 = vmatpush.msra.mxu2 %v1958_v3  ;;  %v2072_v2 = vld [vmem:[#allocation6 + $0x1778] sm:$0xff]  ;;  %v1353_v3 = vld [vmem:[#allocation6 + $0x100] sm:$0xff] }
 0x1de   :  { %2361 = vmatpush.msra.mxu1 %v1820_v4  ;;  %v1593_v4 = vld [vmem:[#allocation6 + $0x880] sm:$0xff] }
 0x1df   :  { %2341 = vmatpush.msra.mxu0 %v1724_v6  ;;  %2375 = vmatpush.msra.mxu2 %v1952_v7  ;;  %v1250_v34 = vpop.f32.mrf.mxu0  ;;  %v1270_v35 = vpop.f32.mrf.mxu1  ;;  %v2066_v6 = vld [vmem:[#allocation6 + $0x1748] sm:$0xff]  ;;  %v1347_v7 = vld [vmem:[#allocation6 + $0xd0] sm:$0xff] }
 0x1e0   :  { %2362 = vmatpush.msra.mxu1 %v1814_v8  ;;  %v1271_v41 = vadd.f32 %v1270_v35, %v1250_v34  ;;  %v1587_v8 = vld [vmem:[#allocation6 + $0x850] sm:$0xff]  ;;  %v2036_v35 = vld [vmem:[#allocation6 + $0x1658] sm:$0xff] }
 0x1e1   :  { %2342 = vmatpush.msra.mxu0 %v1718_v14  ;;  %2376 = vmatpush.msra.mxu2 %v1946_v15  ;;  %v1341_v14 = vld [vmem:[#allocation6 + $0xa0] sm:$0xff]  ;;  %v2060_v15 = vld [vmem:[#allocation6 + $0x1718] sm:$0xff]  ;;  %v1791_v34 = vld [vmem:[#allocation6 + $0xeb0] sm:$0xff] }
 0x1e2   :  { %2363 = vmatpush.msra.mxu1 %v1808_v16  ;;  %v1431_v16 = vld [vmem:[#allocation6 + $0x370] sm:$0xff] }
 0x1e3   :  { %2343 = vmatpush.msra.mxu0 %v1712_v18  ;;  %2377 = vmatpush.msra.mxu2 %v1940_v19  ;;  %v1335_v18 = vld [vmem:[#allocation6 + $0x70] sm:$0xff]  ;;  %v2054_v19 = vld [vmem:[#allocation6 + $0x16e8] sm:$0xff] }
 0x1e4   :  { %2364 = vmatpush.msra.mxu1 %v1802_v20  ;;  %v1425_v20 = vld [vmem:[#allocation6 + $0x340] sm:$0xff] }
 0x1e5   :  { %2344 = vmatpush.msra.mxu0 %v1706_v24  ;;  %2365 = vmatmul.f32.vlgmr.msra.gmra.mxu1 %v3281_v36  ;;  %v1329_v24 = vld [vmem:[#allocation6 + $0x40] sm:$0xff] }
 0x1e6   :  { %2345 = vmatmul.f32.vlgmr.msra.gmra.mxu0 %v3278_v1  ;;  %2429 = vmatpush.msrb.mxu1 %v1509_v25  ;;  %v2048_v25 = vld [vmem:[#allocation6 + $0x16b8] sm:$0xff] }
 0x1e7   :  { %2409 = vmatpush.msrb.mxu0 %v1413_v26  ;;  %2378 = vmatpush.msra.mxu2 %v1934_v27  ;;  %v1419_v26 = vld [vmem:[#allocation6 + $0x310] sm:$0xff]  ;;  %v1569_v27 = vld [vmem:[#allocation6 + $0x7c0] sm:$0xff] }
 0x1e8   :  { %2430 = vmatpush.msrb.mxu1 %v1503_v28  ;;  %v1323_v28 = vld [vmem:[#allocation6 + $0x10] sm:$0xff] }
 0x1e9   :  { %2410 = vmatpush.msrb.mxu0 %v1407_v29  ;;  %2379 = vmatpush.msra.mxu2 %v1928_v30  ;;  %v1893_v29 = vld [vmem:[#allocation6 + $0x11e0] sm:$0xff] }
 0x1ea   :  { %2431 = vmatpush.msrb.mxu1 %v1497_v31  ;;  %v1797_v30 = vld [vmem:[#allocation6 + $0xee0] sm:$0xff]  ;;  %v2042_v31 = vld [vmem:[#allocation6 + $0x1688] sm:$0xff] }
 0x1eb   :  { %2411 = vmatpush.msrb.mxu0 %v1401_v32  ;;  %2380 = vmatpush.msra.mxu2 %v1922_v33  ;;  %v1887_v32 = vld [vmem:[#allocation6 + $0x11b0] sm:$0xff] }
 0x1ec   :  { %2432 = vmatpush.msrb.mxu1 %v1491_v37  ;;  %v1290_v46 = vpop.f32.mrf.mxu2  ;;  %v1310_v12 = vpop.f32.mrf.mxu3  ;;  %v1563_v33 = vld [vmem:[#allocation6 + $0x790] sm:$0xff]  ;;  %v1881_v37 = vld [vmem:[#allocation6 + $0x1180] sm:$0xff] }
 0x1ed   :  { %2412 = vmatpush.msrb.mxu0 %v1395_v38  ;;  %2381 = vmatpush.msra.mxu2 %v1916_v39  ;;  %v1291_v47 = vadd.f32 %v1290_v46, %v1271_v41  ;;  %v1557_v38 = vld [vmem:[#allocation6 + $0x760] sm:$0xff]  ;;  %v1875_v41 = vld [vmem:[#allocation6 + $0x1150] sm:$0xff] }
 0x1ee   :  { %2433 = vmatpush.msrb.mxu1 %v1485_v40  ;;  %v1785_v39 = vld [vmem:[#allocation6 + $0xe80] sm:$0xff]  ;;  %v2030_v40 = vld [vmem:[#allocation6 + $0x1628] sm:$0xff] }
 0x1ef   :  { %2413 = vmatpush.msrb.mxu0 %v1389_v42  ;;  %2382 = vmatpush.msra.mxu2 %v1910_v43  ;;  %v1311_v51 = vadd.f32 %v1310_v12, %v1291_v47  ;;  %v1551_v42 = vld [vmem:[#allocation6 + $0x730] sm:$0xff]  ;;  %v1869_v46 = vld [vmem:[#allocation6 + $0x1120] sm:$0xff] }
 0x1f0   :  { %2434 = vmatpush.msrb.mxu1 %v1479_v44  ;;  %v1779_v43 = vld [vmem:[#allocation6 + $0xe50] sm:$0xff]  ;;  %v2024_v44 = vld [vmem:[#allocation6 + $0x15f8] sm:$0xff]  ;;  %v1773_v47 = vld [vmem:[#allocation6 + $0xe20] sm:$0xff] }
 0x1f1   :  { %2414 = vmatpush.msrb.mxu0 %v1383_v45  ;;  %2383 = vmatpush.msra.mxu2 %v1904_v49  ;;  %v3292_v55 = vmax.f32 %v1311_v51, 0.0  ;;  %v1545_v45 = vld [vmem:[#allocation6 + $0x700] sm:$0xff]  ;;  %v2018_v49 = vld [vmem:[#allocation6 + $0x15c8] sm:$0xff]  ;;  %v1539_v12 = vld [vmem:[#allocation6 + $0x6d0] sm:$0xff] }
 0x1f2   :  { %2435 = vmatpush.msrb.mxu1 %v1473_v11  ;;  %v1863_v11 = vld [vmem:[#allocation6 + $0x10f0] sm:$0xff]  ;;  %v2012_v51 = vld [vmem:[#allocation6 + $0x1598] sm:$0xff] }
 0x1f3   :  { %2415 = vmatpush.msrb.mxu0 %v1377_v50  ;;  %2384 = vmatpush.msra.mxu2 %v1898_v53  ;;  %v1767_v50 = vld [vmem:[#allocation6 + $0xdf0] sm:$0xff]  ;;  %v1857_v53 = vld [vmem:[#allocation6 + $0x10c0] sm:$0xff] }
 0x1f4   :  { %2436 = vmatpush.msrb.mxu1 %v1467_v54  ;;  %2245 = vmatmul.f32.vlgmr.msra.gmra.mxu3 %v3292_v55  ;;  %v1533_v54 = vld [vmem:[#allocation6 + $0x6a0] sm:$0xff] }
 0x1f5   :  { %2416 = vmatpush.msrb.mxu0 %v1371_v56  ;;  %2385 = vmatmul.f32.vlgmr.msra.gmra.mxu2 %v3286_v48  ;;  %v1761_v56 = vld [vmem:[#allocation6 + $0xdc0] sm:$0xff] }
 0x1f6   :  { %2437 = vmatpush.msrb.mxu1 %v1461_v57  ;;  %2389 = vmatpush.msra.mxu3 %v2084_v58  ;;  %v2006_v57 = vld [vmem:[#allocation6 + $0x1568] sm:$0xff]  ;;  %v1851_v58 = vld [vmem:[#allocation6 + $0x1090] sm:$0xff] }
 0x1f7   :  { %2417 = vmatpush.msrb.mxu0 %v1365_v60  ;;  %2449 = vmatpush.msrb.mxu2 %v1605_v61  ;;  %v1527_v60 = vld [vmem:[#allocation6 + $0x670] sm:$0xff] }
 0x1f8   :  { %2438 = vmatpush.msrb.mxu1 %v1455_v62  ;;  %2390 = vmatpush.msra.mxu3 %v2078_v21  ;;  %v1755_v61 = vld [vmem:[#allocation6 + $0xd90] sm:$0xff]  ;;  %v2000_v62 = vld [vmem:[#allocation6 + $0x1538] sm:$0xff]  ;;  %v1845_v21 = vld [vmem:[#allocation6 + $0x1060] sm:$0xff] }
 0x1f9   :  { %2418 = vmatpush.msrb.mxu0 %v1359_v22  ;;  %2450 = vmatpush.msrb.mxu2 %v1599_v63  ;;  %v1521_v22 = vld [vmem:[#allocation6 + $0x640] sm:$0xff] }
 0x1fa   :  { %2439 = vmatpush.msrb.mxu1 %v1449_v0  ;;  %2391 = vmatpush.msra.mxu3 %v2072_v2  ;;  %v1749_v63 = vld [vmem:[#allocation6 + $0xd60] sm:$0xff]  ;;  %v1994_v0 = vld [vmem:[#allocation6 + $0x1508] sm:$0xff]  ;;  %v1839_v2 = vld [vmem:[#allocation6 + $0x1030] sm:$0xff] }
 0x1fb   :  { %2419 = vmatpush.msrb.mxu0 %v1353_v3  ;;  %2451 = vmatpush.msrb.mxu2 %v1593_v4  ;;  %v1515_v3 = vld [vmem:[#allocation6 + $0x610] sm:$0xff] }
 0x1fc   :  { %2440 = vmatpush.msrb.mxu1 %v1443_v5  ;;  %2392 = vmatpush.msra.mxu3 %v2066_v6  ;;  %v1743_v4 = vld [vmem:[#allocation6 + $0xd30] sm:$0xff]  ;;  %v1701_v5 = vld [vmem:[#allocation6 + $0xbe0] sm:$0xff] }
 0x1fd   :  { %2420 = vmatpush.msrb.mxu0 %v1347_v7  ;;  %2452 = vmatpush.msrb.mxu2 %v1587_v8  ;;  %v1737_v6 = vld [vmem:[#allocation6 + $0xd00] sm:$0xff] }
 0x1fe   :  { %2441 = vmatpush.msrb.mxu1 %v1437_v13  ;;  %2325 = vmatmul.f32.vlgmr.msrb.gmra.mxu3 %v3274_v10  ;;  %v1833_v7 = vld [vmem:[#allocation6 + $0x1000] sm:$0xff]  ;;  %v1695_v13 = vld [vmem:[#allocation6 + $0xbb0] sm:$0xff] }
 0x1ff   :  { %2421 = vmatpush.msrb.mxu0 %v1341_v14  ;;  %2393 = vmatpush.msra.mxu3 %v2060_v15  ;;  %v1989_v8 = vld [vmem:[#allocation6 + $0x14e0] sm:$0xff]  ;;  %v1731_v14 = vld [vmem:[#allocation6 + $0xcd0] sm:$0xff] }
 0x200   :  { %2442 = vmatpush.msrb.mxu1 %v1431_v16  ;;  %2453 = vmatpush.msrb.mxu2 %v1581_v17  ;;  %v1827_v15 = vld [vmem:[#allocation6 + $0xfd0] sm:$0xff]  ;;  %v1689_v17 = vld [vmem:[#allocation6 + $0xb80] sm:$0xff] }
 0x201   :  { %2422 = vmatpush.msrb.mxu0 %v1335_v18  ;;  %2394 = vmatpush.msra.mxu3 %v2054_v19  ;;  %v1983_v16 = vld [vmem:[#allocation6 + $0x14b0] sm:$0xff]  ;;  %v1725_v18 = vld [vmem:[#allocation6 + $0xca0] sm:$0xff] }
 0x202   :  { %2443 = vmatpush.msrb.mxu1 %v1425_v20  ;;  %2454 = vmatpush.msrb.mxu2 %v1575_v23  ;;  %v1821_v19 = vld [vmem:[#allocation6 + $0xfa0] sm:$0xff]  ;;  %v1683_v23 = vld [vmem:[#allocation6 + $0xb50] sm:$0xff] }
 0x203   :  { %2423 = vmatpush.msrb.mxu0 %v1329_v24  ;;  %2395 = vmatpush.msra.mxu3 %v2048_v25  ;;  %v1977_v20 = vld [vmem:[#allocation6 + $0x1480] sm:$0xff]  ;;  %v1719_v24 = vld [vmem:[#allocation6 + $0xc70] sm:$0xff] }
 0x204   :  { %2444 = vmatpush.msrb.mxu1 %v1419_v26  ;;  %2455 = vmatpush.msrb.mxu2 %v1569_v27  ;;  %v1815_v25 = vld [vmem:[#allocation6 + $0xf70] sm:$0xff]  ;;  %v1677_v27 = vld [vmem:[#allocation6 + $0xb20] sm:$0xff] }
 0x205   :  { %2424 = vmatpush.msrb.mxu0 %v1323_v28  ;;  %2445 = vmatmul.f32.vlgmr.msrb.gmra.mxu1 %v3268_v59  ;;  %v1971_v26 = vld [vmem:[#allocation6 + $0x1450] sm:$0xff]  ;;  %v1713_v28 = vld [vmem:[#allocation6 + $0xc40] sm:$0xff] }
 0x206   :  { %2425 = vmatmul.f32.vlgmr.msrb.gmra.mxu0 %v3266_v52  ;;  %2509 = vmatpush.msra.mxu1 %v1893_v29  ;;  %v1809_v29 = vld [vmem:[#allocation6 + $0xf40] sm:$0xff] }
 0x207   :  { %2489 = vmatpush.msra.mxu0 %v1797_v30  ;;  %2396 = vmatpush.msra.mxu3 %v2042_v31  ;;  %v1965_v30 = vld [vmem:[#allocation6 + $0x1420] sm:$0xff]  ;;  %v1671_v31 = vld [vmem:[#allocation6 + $0xaf0] sm:$0xff] }
 0x208   :  { %2510 = vmatpush.msra.mxu1 %v1887_v32  ;;  %2456 = vmatpush.msrb.mxu2 %v1563_v33  ;;  %v1707_v32 = vld [vmem:[#allocation6 + $0xc10] sm:$0xff] }
 0x209   :  { %2490 = vmatpush.msra.mxu0 %v1791_v34  ;;  %2397 = vmatpush.msra.mxu3 %v2036_v35  ;;  %v1803_v33 = vld [vmem:[#allocation6 + $0xf10] sm:$0xff]  ;;  %v1414_v35 = vld [vmem:[#allocation6 + $0x2e8] sm:$0xff] }
 0x20a   :  { %2511 = vmatpush.msra.mxu1 %v1881_v37  ;;  %2457 = vmatpush.msrb.mxu2 %v1557_v38  ;;  %v1959_v34 = vld [vmem:[#allocation6 + $0x13f0] sm:$0xff]  ;;  %v1510_v37 = vld [vmem:[#allocation6 + $0x5e8] sm:$0xff]  ;;  %v1665_v38 = vld [vmem:[#allocation6 + $0xac0] sm:$0xff] }
 0x20b   :  { %2491 = vmatpush.msra.mxu0 %v1785_v39  ;;  %2398 = vmatpush.msra.mxu3 %v2030_v40  ;;  %v1953_v39 = vld [vmem:[#allocation6 + $0x13c0] sm:$0xff]  ;;  %v1408_v40 = vld [vmem:[#allocation6 + $0x2b8] sm:$0xff] }
 0x20c   :  { %2512 = vmatpush.msra.mxu1 %v1875_v41  ;;  %2458 = vmatpush.msrb.mxu2 %v1551_v42  ;;  %v1504_v41 = vld [vmem:[#allocation6 + $0x5b8] sm:$0xff]  ;;  %v1659_v42 = vld [vmem:[#allocation6 + $0xa90] sm:$0xff] }
 0x20d   :  { %2492 = vmatpush.msra.mxu0 %v1779_v43  ;;  %2399 = vmatpush.msra.mxu3 %v2024_v44  ;;  %v1947_v43 = vld [vmem:[#allocation6 + $0x1390] sm:$0xff]  ;;  %v1402_v44 = vld [vmem:[#allocation6 + $0x288] sm:$0xff] }
 0x20e   :  { %2513 = vmatpush.msra.mxu1 %v1869_v46  ;;  %2459 = vmatpush.msrb.mxu2 %v1545_v45  ;;  %v1498_v46 = vld [vmem:[#allocation6 + $0x588] sm:$0xff]  ;;  %v1653_v45 = vld [vmem:[#allocation6 + $0xa60] sm:$0xff] }
 0x20f   :  { %2493 = vmatpush.msra.mxu0 %v1773_v47  ;;  %2400 = vmatpush.msra.mxu3 %v2018_v49  ;;  %v1941_v47 = vld [vmem:[#allocation6 + $0x1360] sm:$0xff]  ;;  %v1396_v49 = vld [vmem:[#allocation6 + $0x258] sm:$0xff] }
 0x210   :  { %2514 = vmatpush.msra.mxu1 %v1863_v11  ;;  %2460 = vmatpush.msrb.mxu2 %v1539_v12  ;;  %v1492_v11 = vld [vmem:[#allocation6 + $0x558] sm:$0xff]  ;;  %v1647_v12 = vld [vmem:[#allocation6 + $0xa30] sm:$0xff] }
 0x211   :  { %2494 = vmatpush.msra.mxu0 %v1767_v50  ;;  %2401 = vmatpush.msra.mxu3 %v2012_v51  ;;  %v1935_v50 = vld [vmem:[#allocation6 + $0x1330] sm:$0xff]  ;;  %v1390_v51 = vld [vmem:[#allocation6 + $0x228] sm:$0xff] }
 0x212   :  { %2515 = vmatpush.msra.mxu1 %v1857_v53  ;;  %2461 = vmatpush.msrb.mxu2 %v1533_v54  ;;  %v1486_v53 = vld [vmem:[#allocation6 + $0x528] sm:$0xff]  ;;  %v1641_v54 = vld [vmem:[#allocation6 + $0xa00] sm:$0xff] }
 0x213   :  { %2495 = vmatpush.msra.mxu0 %v1761_v56  ;;  %2402 = vmatpush.msra.mxu3 %v2006_v57  ;;  %v1929_v56 = vld [vmem:[#allocation6 + $0x1300] sm:$0xff]  ;;  %v1384_v57 = vld [vmem:[#allocation6 + $0x1f8] sm:$0xff] }
 0x214   :  { %2516 = vmatpush.msra.mxu1 %v1851_v58  ;;  %2462 = vmatpush.msrb.mxu2 %v1527_v60  ;;  %v1480_v58 = vld [vmem:[#allocation6 + $0x4f8] sm:$0xff]  ;;  %v1635_v60 = vld [vmem:[#allocation6 + $0x9d0] sm:$0xff] }
 0x215   :  { %2496 = vmatpush.msra.mxu0 %v1755_v61  ;;  %2403 = vmatpush.msra.mxu3 %v2000_v62  ;;  %v1923_v61 = vld [vmem:[#allocation6 + $0x12d0] sm:$0xff]  ;;  %v1378_v62 = vld [vmem:[#allocation6 + $0x1c8] sm:$0xff] }
 0x216   :  { %2517 = vmatpush.msra.mxu1 %v1845_v21  ;;  %2463 = vmatpush.msrb.mxu2 %v1521_v22  ;;  %v1474_v21 = vld [vmem:[#allocation6 + $0x4c8] sm:$0xff]  ;;  %v1629_v22 = vld [vmem:[#allocation6 + $0x9a0] sm:$0xff] }
 0x217   :  { %2497 = vmatpush.msra.mxu0 %v1749_v63  ;;  %2404 = vmatpush.msra.mxu3 %v1994_v0  ;;  %v1917_v63 = vld [vmem:[#allocation6 + $0x12a0] sm:$0xff]  ;;  %v1372_v0 = vld [vmem:[#allocation6 + $0x198] sm:$0xff] }
 0x218   :  { %2518 = vmatpush.msra.mxu1 %v1839_v2  ;;  %2464 = vmatpush.msrb.mxu2 %v1515_v3  ;;  %v1468_v2 = vld [vmem:[#allocation6 + $0x498] sm:$0xff]  ;;  %v1623_v3 = vld [vmem:[#allocation6 + $0x970] sm:$0xff] }
 0x219   :  { %2498 = vmatpush.msra.mxu0 %v1743_v4  ;;  %2405 = vmatmul.f32.vlgmr.msra.gmra.mxu3 %v3292_v55  ;;  %v1911_v4 = vld [vmem:[#allocation6 + $0x1270] sm:$0xff] }
 0x21a   :  { %2465 = vmatmul.f32.vlgmr.msrb.gmra.mxu2 %v3272_v9  ;;  %2469 = vmatpush.msrb.mxu3 %v1701_v5  ;;  %v1366_v5 = vld [vmem:[#allocation6 + $0x168] sm:$0xff] }
 0x21b   :  { %2499 = vmatpush.msra.mxu0 %v1737_v6  ;;  %2519 = vmatpush.msra.mxu1 %v1833_v7  ;;  %v1462_v6 = vld [vmem:[#allocation6 + $0x468] sm:$0xff]  ;;  %v1617_v7 = vld [vmem:[#allocation6 + $0x940] sm:$0xff] }
 0x21c   :  { %2529 = vmatpush.msra.mxu2 %v1989_v8  ;;  %2470 = vmatpush.msrb.mxu3 %v1695_v13  ;;  %v1905_v8 = vld [vmem:[#allocation6 + $0x1240] sm:$0xff]  ;;  %v1360_v13 = vld [vmem:[#allocation6 + $0x138] sm:$0xff] }
 0x21d   :  { %2500 = vmatpush.msra.mxu0 %v1731_v14  ;;  %2520 = vmatpush.msra.mxu1 %v1827_v15  ;;  %v1456_v14 = vld [vmem:[#allocation6 + $0x438] sm:$0xff]  ;;  %v1611_v15 = vld [vmem:[#allocation6 + $0x910] sm:$0xff] }
 0x21e   :  { %2530 = vmatpush.msra.mxu2 %v1983_v16  ;;  %2471 = vmatpush.msrb.mxu3 %v1689_v17  ;;  %v1899_v16 = vld [vmem:[#allocation6 + $0x1210] sm:$0xff]  ;;  %v2085_v17 = vld [vmem:[#allocation6 + $0x17e0] sm:$0xff] }
 0x21f   :  { %2501 = vmatpush.msra.mxu0 %v1725_v18  ;;  %2521 = vmatpush.msra.mxu1 %v1821_v19  ;;  %v1354_v18 = vld [vmem:[#allocation6 + $0x108] sm:$0xff] }
 0x220   :  { %2531 = vmatpush.msra.mxu2 %v1977_v20  ;;  %2472 = vmatpush.msrb.mxu3 %v1683_v23  ;;  %v1450_v19 = vld [vmem:[#allocation6 + $0x408] sm:$0xff]  ;;  %v2079_v23 = vld [vmem:[#allocation6 + $0x17b0] sm:$0xff] }
 0x221   :  { %2502 = vmatpush.msra.mxu0 %v1719_v24  ;;  %2522 = vmatpush.msra.mxu1 %v1815_v25  ;;  %v1606_v20 = vld [vmem:[#allocation6 + $0x8e8] sm:$0xff]  ;;  %v1348_v24 = vld [vmem:[#allocation6 + $0xd8] sm:$0xff] }
 0x222   :  { %2532 = vmatpush.msra.mxu2 %v1971_v26  ;;  %2473 = vmatpush.msrb.mxu3 %v1677_v27  ;;  %v1444_v25 = vld [vmem:[#allocation6 + $0x3d8] sm:$0xff]  ;;  %v2073_v27 = vld [vmem:[#allocation6 + $0x1780] sm:$0xff] }
 0x223   :  { %2503 = vmatpush.msra.mxu0 %v1713_v28  ;;  %2523 = vmatpush.msra.mxu1 %v1809_v29  ;;  %v1600_v26 = vld [vmem:[#allocation6 + $0x8b8] sm:$0xff]  ;;  %v1342_v28 = vld [vmem:[#allocation6 + $0xa8] sm:$0xff] }
 0x224   :  { %2533 = vmatpush.msra.mxu2 %v1965_v30  ;;  %2474 = vmatpush.msrb.mxu3 %v1671_v31  ;;  %v1438_v29 = vld [vmem:[#allocation6 + $0x3a8] sm:$0xff]  ;;  %v2067_v31 = vld [vmem:[#allocation6 + $0x1750] sm:$0xff] }
 0x225   :  { %2504 = vmatpush.msra.mxu0 %v1707_v32  ;;  %2524 = vmatpush.msra.mxu1 %v1803_v33  ;;  %v1594_v30 = vld [vmem:[#allocation6 + $0x888] sm:$0xff]  ;;  %v1336_v32 = vld [vmem:[#allocation6 + $0x78] sm:$0xff] }
 0x226   :  { %2534 = vmatpush.msra.mxu2 %v1959_v34  ;;  %2505 = vmatmul.f32.vlgmr.msra.gmra.mxu0 %v3278_v1  ;;  %v1432_v33 = vld [vmem:[#allocation6 + $0x378] sm:$0xff] }
 0x227   :  { %2525 = vmatmul.f32.vlgmr.msra.gmra.mxu1 %v3281_v36  ;;  %2569 = vmatpush.msrb.mxu0 %v1414_v35  ;;  %v1588_v34 = vld [vmem:[#allocation6 + $0x858] sm:$0xff]  ;;  %v2061_v35 = vld [vmem:[#allocation6 + $0x1720] sm:$0xff] }
 0x228   :  { %2589 = vmatpush.msrb.mxu1 %v1510_v37  ;;  %2475 = vmatpush.msrb.mxu3 %v1665_v38  ;;  %v1330_v37 = vld [vmem:[#allocation6 + $0x48] sm:$0xff] }
 0x229   :  { %2535 = vmatpush.msra.mxu2 %v1953_v39  ;;  %2570 = vmatpush.msrb.mxu0 %v1408_v40  ;;  %v1426_v38 = vld [vmem:[#allocation6 + $0x348] sm:$0xff]  ;;  %v2055_v40 = vld [vmem:[#allocation6 + $0x16f0] sm:$0xff] }
 0x22a   :  { %2590 = vmatpush.msrb.mxu1 %v1504_v41  ;;  %2476 = vmatpush.msrb.mxu3 %v1659_v42  ;;  %v1582_v39 = vld [vmem:[#allocation6 + $0x828] sm:$0xff]  ;;  %v1324_v41 = vld [vmem:[#allocation6 + $0x18] sm:$0xff] }
 0x22b   :  { %2536 = vmatpush.msra.mxu2 %v1947_v43  ;;  %2571 = vmatpush.msrb.mxu0 %v1402_v44  ;;  %v1420_v42 = vld [vmem:[#allocation6 + $0x318] sm:$0xff]  ;;  %v1798_v44 = vld [vmem:[#allocation6 + $0xee8] sm:$0xff] }
 0x22c   :  { %2591 = vmatpush.msrb.mxu1 %v1498_v46  ;;  %2477 = vmatpush.msrb.mxu3 %v1653_v45  ;;  %v1576_v43 = vld [vmem:[#allocation6 + $0x7f8] sm:$0xff]  ;;  %v1894_v46 = vld [vmem:[#allocation6 + $0x11e8] sm:$0xff]  ;;  %v2049_v45 = vld [vmem:[#allocation6 + $0x16c0] sm:$0xff] }
 0x22d   :  { %2537 = vmatpush.msra.mxu2 %v1941_v47  ;;  %2572 = vmatpush.msrb.mxu0 %v1396_v49  ;;  %v1570_v47 = vld [vmem:[#allocation6 + $0x7c8] sm:$0xff]  ;;  %v1792_v49 = vld [vmem:[#allocation6 + $0xeb8] sm:$0xff] }
 0x22e   :  { %2592 = vmatpush.msrb.mxu1 %v1492_v11  ;;  %2478 = vmatpush.msrb.mxu3 %v1647_v12  ;;  %v1888_v11 = vld [vmem:[#allocation6 + $0x11b8] sm:$0xff]  ;;  %v2043_v12 = vld [vmem:[#allocation6 + $0x1690] sm:$0xff] }
 0x22f   :  { %2538 = vmatpush.msra.mxu2 %v1935_v50  ;;  %2573 = vmatpush.msrb.mxu0 %v1390_v51  ;;  %v1564_v50 = vld [vmem:[#allocation6 + $0x798] sm:$0xff]  ;;  %v1786_v51 = vld [vmem:[#allocation6 + $0xe88] sm:$0xff] }
 0x230   :  { %2593 = vmatpush.msrb.mxu1 %v1486_v53  ;;  %2479 = vmatpush.msrb.mxu3 %v1641_v54  ;;  %v1882_v53 = vld [vmem:[#allocation6 + $0x1188] sm:$0xff]  ;;  %v2037_v54 = vld [vmem:[#allocation6 + $0x1660] sm:$0xff] }
 0x231   :  { %2539 = vmatpush.msra.mxu2 %v1929_v56  ;;  %2574 = vmatpush.msrb.mxu0 %v1384_v57  ;;  %v1558_v56 = vld [vmem:[#allocation6 + $0x768] sm:$0xff]  ;;  %v1780_v57 = vld [vmem:[#allocation6 + $0xe58] sm:$0xff] }
 0x232   :  { %2594 = vmatpush.msrb.mxu1 %v1480_v58  ;;  %2480 = vmatpush.msrb.mxu3 %v1635_v60  ;;  %v1876_v58 = vld [vmem:[#allocation6 + $0x1158] sm:$0xff]  ;;  %v2031_v60 = vld [vmem:[#allocation6 + $0x1630] sm:$0xff] }
 0x233   :  { %2540 = vmatpush.msra.mxu2 %v1923_v61  ;;  %2575 = vmatpush.msrb.mxu0 %v1378_v62  ;;  %v1552_v61 = vld [vmem:[#allocation6 + $0x738] sm:$0xff]  ;;  %v1774_v62 = vld [vmem:[#allocation6 + $0xe28] sm:$0xff] }
 0x234   :  { %2595 = vmatpush.msrb.mxu1 %v1474_v21  ;;  %2481 = vmatpush.msrb.mxu3 %v1629_v22  ;;  %v1870_v21 = vld [vmem:[#allocation6 + $0x1128] sm:$0xff]  ;;  %v2025_v22 = vld [vmem:[#allocation6 + $0x1600] sm:$0xff] }
 0x235   :  { %2541 = vmatpush.msra.mxu2 %v1917_v63  ;;  %2576 = vmatpush.msrb.mxu0 %v1372_v0  ;;  %v1546_v63 = vld [vmem:[#allocation6 + $0x708] sm:$0xff]  ;;  %v1768_v0 = vld [vmem:[#allocation6 + $0xdf8] sm:$0xff] }
 0x236   :  { %2596 = vmatpush.msrb.mxu1 %v1468_v2  ;;  %2482 = vmatpush.msrb.mxu3 %v1623_v3  ;;  %v1864_v2 = vld [vmem:[#allocation6 + $0x10f8] sm:$0xff]  ;;  %v2019_v3 = vld [vmem:[#allocation6 + $0x15d0] sm:$0xff] }
 0x237   :  { %2542 = vmatpush.msra.mxu2 %v1911_v4  ;;  %2577 = vmatpush.msrb.mxu0 %v1366_v5  ;;  %v1540_v4 = vld [vmem:[#allocation6 + $0x6d8] sm:$0xff]  ;;  %v1762_v5 = vld [vmem:[#allocation6 + $0xdc8] sm:$0xff] }
 0x238   :  { %2597 = vmatpush.msrb.mxu1 %v1462_v6  ;;  %2483 = vmatpush.msrb.mxu3 %v1617_v7  ;;  %v1858_v6 = vld [vmem:[#allocation6 + $0x10c8] sm:$0xff]  ;;  %v2013_v7 = vld [vmem:[#allocation6 + $0x15a0] sm:$0xff] }
 0x239   :  { %2543 = vmatpush.msra.mxu2 %v1905_v8  ;;  %2578 = vmatpush.msrb.mxu0 %v1360_v13  ;;  %v1534_v8 = vld [vmem:[#allocation6 + $0x6a8] sm:$0xff]  ;;  %v1756_v13 = vld [vmem:[#allocation6 + $0xd98] sm:$0xff] }
 0x23a   :  { %2598 = vmatpush.msrb.mxu1 %v1456_v14  ;;  %2484 = vmatpush.msrb.mxu3 %v1611_v15  ;;  %v1852_v14 = vld [vmem:[#allocation6 + $0x1098] sm:$0xff]  ;;  %v2007_v15 = vld [vmem:[#allocation6 + $0x1570] sm:$0xff] }
 0x23b   :  { %2544 = vmatpush.msra.mxu2 %v1899_v16  ;;  %2485 = vmatmul.f32.vlgmr.msrb.gmra.mxu3 %v3274_v10  ;;  %v1528_v16 = vld [vmem:[#allocation6 + $0x678] sm:$0xff] }
 0x23c   :  { %2545 = vmatmul.f32.vlgmr.msra.gmra.mxu2 %v3286_v48  ;;  %2549 = vmatpush.msra.mxu3 %v2085_v17  ;;  %v1750_v17 = vld [vmem:[#allocation6 + $0xd68] sm:$0xff] }
 0x23d   :  { %2579 = vmatpush.msrb.mxu0 %v1354_v18  ;;  %2599 = vmatpush.msrb.mxu1 %v1450_v19  ;;  %v1846_v18 = vld [vmem:[#allocation6 + $0x1068] sm:$0xff]  ;;  %v2001_v19 = vld [vmem:[#allocation6 + $0x1540] sm:$0xff] }
 0x23e   :  { %2609 = vmatpush.msrb.mxu2 %v1606_v20  ;;  %2550 = vmatpush.msra.mxu3 %v2079_v23  ;;  %v1522_v20 = vld [vmem:[#allocation6 + $0x648] sm:$0xff]  ;;  %v1744_v23 = vld [vmem:[#allocation6 + $0xd38] sm:$0xff] }
 0x23f   :  { %2580 = vmatpush.msrb.mxu0 %v1348_v24  ;;  %2600 = vmatpush.msrb.mxu1 %v1444_v25  ;;  %v1840_v24 = vld [vmem:[#allocation6 + $0x1038] sm:$0xff]  ;;  %v1995_v25 = vld [vmem:[#allocation6 + $0x1510] sm:$0xff] }
 0x240   :  { %2610 = vmatpush.msrb.mxu2 %v1600_v26  ;;  %2551 = vmatpush.msra.mxu3 %v2073_v27  ;;  %v1516_v26 = vld [vmem:[#allocation6 + $0x618] sm:$0xff]  ;;  %v1702_v27 = vld [vmem:[#allocation6 + $0xbe8] sm:$0xff] }
 0x241   :  { %2581 = vmatpush.msrb.mxu0 %v1342_v28  ;;  %2601 = vmatpush.msrb.mxu1 %v1438_v29  ;;  %v1738_v28 = vld [vmem:[#allocation6 + $0xd08] sm:$0xff] }
 0x242   :  { %2611 = vmatpush.msrb.mxu2 %v1594_v30  ;;  %2552 = vmatpush.msra.mxu3 %v2067_v31  ;;  %v1834_v29 = vld [vmem:[#allocation6 + $0x1008] sm:$0xff]  ;;  %v1696_v31 = vld [vmem:[#allocation6 + $0xbb8] sm:$0xff] }
 0x243   :  { %2582 = vmatpush.msrb.mxu0 %v1336_v32  ;;  %2602 = vmatpush.msrb.mxu1 %v1432_v33  ;;  %v1990_v30 = vld [vmem:[#allocation6 + $0x14e8] sm:$0xff]  ;;  %v1732_v32 = vld [vmem:[#allocation6 + $0xcd8] sm:$0xff] }
 0x244   :  { %2612 = vmatpush.msrb.mxu2 %v1588_v34  ;;  %2553 = vmatpush.msra.mxu3 %v2061_v35  ;;  %v1828_v33 = vld [vmem:[#allocation6 + $0xfd8] sm:$0xff]  ;;  %v1690_v35 = vld [vmem:[#allocation6 + $0xb88] sm:$0xff] }
 0x245   :  { %2583 = vmatpush.msrb.mxu0 %v1330_v37  ;;  %2603 = vmatpush.msrb.mxu1 %v1426_v38  ;;  %v1984_v34 = vld [vmem:[#allocation6 + $0x14b8] sm:$0xff]  ;;  %v1726_v37 = vld [vmem:[#allocation6 + $0xca8] sm:$0xff] }
 0x246   :  { %2613 = vmatpush.msrb.mxu2 %v1582_v39  ;;  %2554 = vmatpush.msra.mxu3 %v2055_v40  ;;  %v1822_v38 = vld [vmem:[#allocation6 + $0xfa8] sm:$0xff]  ;;  %v1684_v40 = vld [vmem:[#allocation6 + $0xb58] sm:$0xff] }
 0x247   :  { %2584 = vmatpush.msrb.mxu0 %v1324_v41  ;;  %2604 = vmatpush.msrb.mxu1 %v1420_v42  ;;  %v1978_v39 = vld [vmem:[#allocation6 + $0x1488] sm:$0xff]  ;;  %v1720_v41 = vld [vmem:[#allocation6 + $0xc78] sm:$0xff] }
 0x248   :  { %2614 = vmatpush.msrb.mxu2 %v1576_v43  ;;  %2585 = vmatmul.f32.vlgmr.msrb.gmra.mxu0 %v3266_v52  ;;  %v1816_v42 = vld [vmem:[#allocation6 + $0xf78] sm:$0xff] }
 0x249   :  { %2605 = vmatmul.f32.vlgmr.msrb.gmra.mxu1 %v3268_v59  ;;  %2649 = vmatpush.msra.mxu0 %v1798_v44  ;;  %v1972_v43 = vld [vmem:[#allocation6 + $0x1458] sm:$0xff]  ;;  %v1678_v44 = vld [vmem:[#allocation6 + $0xb28] sm:$0xff] }
 0x24a   :  { %2669 = vmatpush.msra.mxu1 %v1894_v46  ;;  %2555 = vmatpush.msra.mxu3 %v2049_v45  ;;  %v1714_v46 = vld [vmem:[#allocation6 + $0xc48] sm:$0xff] }
 0x24b   :  { %2615 = vmatpush.msrb.mxu2 %v1570_v47  ;;  %2650 = vmatpush.msra.mxu0 %v1792_v49  ;;  %v1810_v45 = vld [vmem:[#allocation6 + $0xf48] sm:$0xff]  ;;  %v1672_v49 = vld [vmem:[#allocation6 + $0xaf8] sm:$0xff] }
 0x24c   :  { %2670 = vmatpush.msra.mxu1 %v1888_v11  ;;  %2556 = vmatpush.msra.mxu3 %v2043_v12  ;;  %v1966_v47 = vld [vmem:[#allocation6 + $0x1428] sm:$0xff]  ;;  %v1708_v11 = vld [vmem:[#allocation6 + $0xc18] sm:$0xff] }
 0x24d   :  { %2616 = vmatpush.msrb.mxu2 %v1564_v50  ;;  %2651 = vmatpush.msra.mxu0 %v1786_v51  ;;  %v1804_v12 = vld [vmem:[#allocation6 + $0xf18] sm:$0xff]  ;;  %v2106_v50 = vpop.f32.mrf.mxu0  ;;  %v2126_v51 = vpop.f32.mrf.mxu1 }
 0x24e   :  { %2671 = vmatpush.msra.mxu1 %v1882_v53  ;;  %2557 = vmatpush.msra.mxu3 %v2037_v54  ;;  %v1960_v53 = vld [vmem:[#allocation6 + $0x13f8] sm:$0xff]  ;;  %v1415_v54 = vld [vmem:[#allocation6 + $0x2f0] sm:$0xff] }
 0x24f   :  { %2617 = vmatpush.msrb.mxu2 %v1558_v56  ;;  %2652 = vmatpush.msra.mxu0 %v1780_v57  ;;  %v2146_v56 = vpop.f32.mrf.mxu2  ;;  %v1511_v57 = vld [vmem:[#allocation6 + $0x5f0] sm:$0xff] }
 0x250   :  { %2672 = vmatpush.msra.mxu1 %v1876_v58  ;;  %2558 = vmatpush.msra.mxu3 %v2031_v60  ;;  %v1666_v58 = vld [vmem:[#allocation6 + $0xac8] sm:$0xff]  ;;  %v2127_v60 = vadd.f32 %v2126_v51, %v2106_v50  ;;  %v1355_v51 = vld [vmem:[#allocation6 + $0x110] sm:$0xff] }
 0x251   :  { %2618 = vmatpush.msrb.mxu2 %v1552_v61  ;;  %2653 = vmatpush.msra.mxu0 %v1774_v62  ;;  %v1954_v61 = vld [vmem:[#allocation6 + $0x13c8] sm:$0xff]  ;;  %v1409_v62 = vld [vmem:[#allocation6 + $0x2c0] sm:$0xff] }
 0x252   :  { %2673 = vmatpush.msra.mxu1 %v1870_v21  ;;  %2559 = vmatpush.msra.mxu3 %v2025_v22  ;;  %v1505_v21 = vld [vmem:[#allocation6 + $0x5c0] sm:$0xff]  ;;  %v1660_v22 = vld [vmem:[#allocation6 + $0xa98] sm:$0xff]  ;;  %v2086_v50 = vld [vmem:[#allocation6 + $0x17e8] sm:$0xff] }
 0x253   :  { %2619 = vmatpush.msrb.mxu2 %v1546_v63  ;;  %2654 = vmatpush.msra.mxu0 %v1768_v0  ;;  %v2147_v63 = vadd.f32 %v2146_v56, %v2127_v60  ;;  %v1948_v0 = vld [vmem:[#allocation6 + $0x1398] sm:$0xff]  ;;  %v1445_v60 = vld [vmem:[#allocation6 + $0x3e0] sm:$0xff] }
 0x254   :  { %2674 = vmatpush.msra.mxu1 %v1864_v2  ;;  %2560 = vmatpush.msra.mxu3 %v2019_v3  ;;  %v1403_v2 = vld [vmem:[#allocation6 + $0x290] sm:$0xff]  ;;  %v2080_v56 = vld [vmem:[#allocation6 + $0x17b8] sm:$0xff] }
 0x255   :  { %2620 = vmatpush.msrb.mxu2 %v1540_v4  ;;  %2655 = vmatpush.msra.mxu0 %v1762_v5  ;;  %v1499_v3 = vld [vmem:[#allocation6 + $0x590] sm:$0xff]  ;;  %v1654_v4 = vld [vmem:[#allocation6 + $0xa68] sm:$0xff] }
 0x256   :  { %2675 = vmatpush.msra.mxu1 %v1858_v6  ;;  %2561 = vmatpush.msra.mxu3 %v2013_v7  ;;  %v1942_v5 = vld [vmem:[#allocation6 + $0x1368] sm:$0xff]  ;;  %v1397_v6 = vld [vmem:[#allocation6 + $0x260] sm:$0xff]  ;;  %v2166_v7 = vpop.f32.mrf.mxu3 }
 0x257   :  { %2621 = vmatpush.msrb.mxu2 %v1534_v8  ;;  %2656 = vmatpush.msra.mxu0 %v1756_v13  ;;  %v2186_v8 = vpop.f32.mrf.mxu0  ;;  %v1493_v13 = vld [vmem:[#allocation6 + $0x560] sm:$0xff] }
 0x258   :  { %2676 = vmatpush.msra.mxu1 %v1852_v14  ;;  %2562 = vmatpush.msra.mxu3 %v2007_v15  ;;  %v1648_v14 = vld [vmem:[#allocation6 + $0xa38] sm:$0xff]  ;;  %v2167_v15 = vadd.f32 %v2166_v7, %v2147_v63  ;;  %v1595_v63 = vld [vmem:[#allocation6 + $0x890] sm:$0xff] }
 0x259   :  { %2622 = vmatpush.msrb.mxu2 %v1528_v16  ;;  %2657 = vmatpush.msra.mxu0 %v1750_v17  ;;  %v1936_v16 = vld [vmem:[#allocation6 + $0x1338] sm:$0xff]  ;;  %v1391_v17 = vld [vmem:[#allocation6 + $0x230] sm:$0xff] }
 0x25a   :  { %2677 = vmatpush.msra.mxu1 %v1846_v18  ;;  %2563 = vmatpush.msra.mxu3 %v2001_v19  ;;  %v2206_v18 = vpop.f32.mrf.mxu1  ;;  %v1487_v19 = vld [vmem:[#allocation6 + $0x530] sm:$0xff] }
 0x25b   :  { %2623 = vmatpush.msrb.mxu2 %v1522_v20  ;;  %2658 = vmatpush.msra.mxu0 %v1744_v23  ;;  %v1642_v20 = vld [vmem:[#allocation6 + $0xa08] sm:$0xff]  ;;  %v2187_v23 = vadd.f32 %v2186_v8, %v2167_v15  ;;  %v1427_v7 = vld [vmem:[#allocation6 + $0x350] sm:$0xff] }
 0x25c   :  { %2678 = vmatpush.msra.mxu1 %v1840_v24  ;;  %2564 = vmatpush.msra.mxu3 %v1995_v25  ;;  %v1930_v24 = vld [vmem:[#allocation6 + $0x1308] sm:$0xff]  ;;  %v1385_v25 = vld [vmem:[#allocation6 + $0x200] sm:$0xff]  ;;  %v1583_v8 = vld [vmem:[#allocation6 + $0x830] sm:$0xff] }
 0x25d   :  { %2624 = vmatpush.msrb.mxu2 %v1516_v26  ;;  %2565 = vmatmul.f32.vlgmr.msra.gmra.mxu3 %v3292_v55  ;;  %v2226_v26 = vpop.f32.mrf.mxu2 }
 0x25e   :  { %2625 = vmatmul.f32.vlgmr.msrb.gmra.mxu2 %v3272_v9  ;;  %2629 = vmatpush.msrb.mxu3 %v1702_v27  ;;  %v1481_v27 = vld [vmem:[#allocation6 + $0x500] sm:$0xff] }
 0x25f   :  { %2659 = vmatpush.msra.mxu0 %v1738_v28  ;;  %2679 = vmatpush.msra.mxu1 %v1834_v29  ;;  %v1636_v28 = vld [vmem:[#allocation6 + $0x9d8] sm:$0xff]  ;;  %v2207_v29 = vadd.f32 %v2206_v18, %v2187_v23  ;;  %v1577_v18 = vld [vmem:[#allocation6 + $0x800] sm:$0xff] }
 0x260   :  { %2689 = vmatpush.msra.mxu2 %v1990_v30  ;;  %2630 = vmatpush.msrb.mxu3 %v1696_v31  ;;  %v1924_v30 = vld [vmem:[#allocation6 + $0x12d8] sm:$0xff]  ;;  %v1379_v31 = vld [vmem:[#allocation6 + $0x1d0] sm:$0xff] }
 0x261   :  { %2660 = vmatpush.msra.mxu0 %v1732_v32  ;;  %2680 = vmatpush.msra.mxu1 %v1828_v33  ;;  %v1475_v32 = vld [vmem:[#allocation6 + $0x4d0] sm:$0xff]  ;;  %v1630_v33 = vld [vmem:[#allocation6 + $0x9a8] sm:$0xff] }
 0x262   :  { %2690 = vmatpush.msra.mxu2 %v1984_v34  ;;  %2631 = vmatpush.msrb.mxu3 %v1690_v35  ;;  %v2227_v34 = vadd.f32 %v2226_v26, %v2207_v29  ;;  %v1918_v35 = vld [vmem:[#allocation6 + $0x12a8] sm:$0xff]  ;;  %v2286_v15 = vpop.f32.mrf.mxu1  ;;  %v1571_v26 = vld [vmem:[#allocation6 + $0x7d0] sm:$0xff] }
 0x263   :  { %2661 = vmatpush.msra.mxu0 %v1726_v37  ;;  %2681 = vmatpush.msra.mxu1 %v1822_v38  ;;  %v1373_v37 = vld [vmem:[#allocation6 + $0x1a0] sm:$0xff] }
 0x264   :  { %2691 = vmatpush.msra.mxu2 %v1978_v39  ;;  %2632 = vmatpush.msrb.mxu3 %v1684_v40  ;;  %v1469_v38 = vld [vmem:[#allocation6 + $0x4a0] sm:$0xff]  ;;  %v1624_v39 = vld [vmem:[#allocation6 + $0x978] sm:$0xff] }
 0x265   :  { %2662 = vmatpush.msra.mxu0 %v1720_v41  ;;  %2682 = vmatpush.msra.mxu1 %v1816_v42  ;;  %v1912_v41 = vld [vmem:[#allocation6 + $0x1278] sm:$0xff]  ;;  %v1367_v42 = vld [vmem:[#allocation6 + $0x170] sm:$0xff] }
 0x266   :  { %2692 = vmatpush.msra.mxu2 %v1972_v43  ;;  %2633 = vmatpush.msrb.mxu3 %v1678_v44  ;;  %v1463_v44 = vld [vmem:[#allocation6 + $0x470] sm:$0xff] }
 0x267   :  { %2663 = vmatpush.msra.mxu0 %v1714_v46  ;;  %2683 = vmatpush.msra.mxu1 %v1810_v45  ;;  %v1618_v46 = vld [vmem:[#allocation6 + $0x948] sm:$0xff] }
 0x268   :  { %2693 = vmatpush.msra.mxu2 %v1966_v47  ;;  %2634 = vmatpush.msrb.mxu3 %v1672_v49  ;;  %v1906_v45 = vld [vmem:[#allocation6 + $0x1248] sm:$0xff]  ;;  %v1361_v47 = vld [vmem:[#allocation6 + $0x140] sm:$0xff] }
 0x269   :  { %2664 = vmatpush.msra.mxu0 %v1708_v11  ;;  %2684 = vmatpush.msra.mxu1 %v1804_v12  ;;  %v1457_v49 = vld [vmem:[#allocation6 + $0x440] sm:$0xff]  ;;  %v1612_v11 = vld [vmem:[#allocation6 + $0x918] sm:$0xff] }
 0x26a   :  { %2694 = vmatpush.msra.mxu2 %v1960_v53  ;;  %2665 = vmatmul.f32.vlgmr.msra.gmra.mxu0 %v3278_v1  ;;  %v1900_v12 = vld [vmem:[#allocation6 + $0x1218] sm:$0xff]  ;;  %v1451_v53 = vld [vmem:[#allocation6 + $0x410] sm:$0xff] }
 0x26b   :  { %2685 = vmatmul.f32.vlgmr.msra.gmra.mxu1 %v3281_v36  ;;  %2729 = vmatpush.msrb.mxu0 %v1415_v54  ;;  %v1607_v54 = vld [vmem:[#allocation6 + $0x8f0] sm:$0xff] }
 0x26c   :  { %2749 = vmatpush.msrb.mxu1 %v1511_v57  ;;  %2635 = vmatpush.msrb.mxu3 %v1666_v58  ;;  %v1349_v58 = vld [vmem:[#allocation6 + $0xe0] sm:$0xff] }
 0x26d   :  { %2695 = vmatpush.msra.mxu2 %v1954_v61  ;;  %2730 = vmatpush.msrb.mxu0 %v1409_v62  ;;  %v1601_v61 = vld [vmem:[#allocation6 + $0x8c0] sm:$0xff]  ;;  %v2074_v62 = vld [vmem:[#allocation6 + $0x1788] sm:$0xff] }
 0x26e   :  { %2750 = vmatpush.msrb.mxu1 %v1505_v21  ;;  %2636 = vmatpush.msrb.mxu3 %v1660_v22  ;;  %v1343_v21 = vld [vmem:[#allocation6 + $0xb0] sm:$0xff] }
 0x26f   :  { %2696 = vmatpush.msra.mxu2 %v1948_v0  ;;  %2731 = vmatpush.msrb.mxu0 %v1403_v2  ;;  %v1439_v22 = vld [vmem:[#allocation6 + $0x3b0] sm:$0xff]  ;;  %v2068_v0 = vld [vmem:[#allocation6 + $0x1758] sm:$0xff]  ;;  %v1337_v2 = vld [vmem:[#allocation6 + $0x80] sm:$0xff] }
 0x270   :  { %2751 = vmatpush.msrb.mxu1 %v1499_v3  ;;  %2637 = vmatpush.msrb.mxu3 %v1654_v4  ;;  %v1433_v3 = vld [vmem:[#allocation6 + $0x380] sm:$0xff] }
 0x271   :  { %2697 = vmatpush.msra.mxu2 %v1942_v5  ;;  %2732 = vmatpush.msrb.mxu0 %v1397_v6  ;;  %v1589_v4 = vld [vmem:[#allocation6 + $0x860] sm:$0xff]  ;;  %v2062_v5 = vld [vmem:[#allocation6 + $0x1728] sm:$0xff]  ;;  %v1331_v6 = vld [vmem:[#allocation6 + $0x50] sm:$0xff] }
 0x272   :  { %2752 = vmatpush.msrb.mxu1 %v1493_v13  ;;  %2638 = vmatpush.msrb.mxu3 %v1648_v14  ;;  %v2056_v13 = vld [vmem:[#allocation6 + $0x16f8] sm:$0xff]  ;;  %v2266_v14 = vpop.f32.mrf.mxu0 }
 0x273   :  { %2698 = vmatpush.msra.mxu2 %v1936_v16  ;;  %2733 = vmatpush.msrb.mxu0 %v1391_v17  ;;  %v1325_v16 = vld [vmem:[#allocation6 + $0x20] sm:$0xff]  ;;  %v2287_v23 = vadd.f32 %v2286_v15, %v2266_v14 }
 0x274   :  { %2753 = vmatpush.msrb.mxu1 %v1487_v19  ;;  %2639 = vmatpush.msrb.mxu3 %v1642_v20  ;;  %v1421_v17 = vld [vmem:[#allocation6 + $0x320] sm:$0xff]  ;;  %v2306_v19 = vpop.f32.mrf.mxu2  ;;  %v1799_v20 = vld [vmem:[#allocation6 + $0xef0] sm:$0xff] }
 0x275   :  { %2699 = vmatpush.msra.mxu2 %v1930_v24  ;;  %2734 = vmatpush.msrb.mxu0 %v1385_v25  ;;  %v1895_v24 = vld [vmem:[#allocation6 + $0x11f0] sm:$0xff]  ;;  %v2050_v25 = vld [vmem:[#allocation6 + $0x16c8] sm:$0xff]  ;;  %v2307_v29 = vadd.f32 %v2306_v19, %v2287_v23  ;;  %v1517_v15 = vld [vmem:[#allocation6 + $0x620] sm:$0xff] }
 0x276   :  { %2754 = vmatpush.msrb.mxu1 %v1481_v27  ;;  %2640 = vmatpush.msrb.mxu3 %v1636_v28  ;;  %v1793_v27 = vld [vmem:[#allocation6 + $0xec0] sm:$0xff]  ;;  %v1991_v19 = vld [vmem:[#allocation6 + $0x14f0] sm:$0xff] }
 0x277   :  { %2700 = vmatpush.msra.mxu2 %v1924_v30  ;;  %2735 = vmatpush.msrb.mxu0 %v1379_v31  ;;  %v2246_v40 = vpop.f32.mrf.mxu3  ;;  %v1889_v30 = vld [vmem:[#allocation6 + $0x11c0] sm:$0xff]  ;;  %v2044_v31 = vld [vmem:[#allocation6 + $0x1698] sm:$0xff] }
 0x278   :  { %2755 = vmatpush.msrb.mxu1 %v1475_v32  ;;  %2641 = vmatpush.msrb.mxu3 %v1630_v33  ;;  %v2247_v43 = vadd.f32 %v2246_v40, %v2227_v34  ;;  %v1565_v32 = vld [vmem:[#allocation6 + $0x7a0] sm:$0xff]  ;;  %v1787_v33 = vld [vmem:[#allocation6 + $0xe90] sm:$0xff] }
 0x279   :  { %2701 = vmatpush.msra.mxu2 %v1918_v35  ;;  %2736 = vmatpush.msrb.mxu0 %v1373_v37  ;;  %v1883_v35 = vld [vmem:[#allocation6 + $0x1190] sm:$0xff]  ;;  %v2038_v37 = vld [vmem:[#allocation6 + $0x1668] sm:$0xff]  ;;  %v1877_v40 = vld [vmem:[#allocation6 + $0x1160] sm:$0xff] }
 0x27a   :  { %2756 = vmatpush.msrb.mxu1 %v1469_v38  ;;  %2642 = vmatpush.msrb.mxu3 %v1624_v39  ;;  %3080 = vtanh.f32 %v2247_v43  ;;  %v1559_v38 = vld [vmem:[#allocation6 + $0x770] sm:$0xff]  ;;  %v1781_v39 = vld [vmem:[#allocation6 + $0xe60] sm:$0xff] }
 0x27b   :  { %2702 = vmatpush.msra.mxu2 %v1912_v41  ;;  %2737 = vmatpush.msrb.mxu0 %v1367_v42  ;;  %v2032_v41 = vld [vmem:[#allocation6 + $0x1638] sm:$0xff]  ;;  %v2346_v42 = vpop.f32.mrf.mxu0  ;;  %v1553_v43 = vld [vmem:[#allocation6 + $0x740] sm:$0xff] }
 0x27c   :  { %2757 = vmatpush.msrb.mxu1 %v1463_v44  ;;  %2643 = vmatpush.msrb.mxu3 %v1618_v46  ;;  %v1775_v44 = vld [vmem:[#allocation6 + $0xe30] sm:$0xff]  ;;  %v1733_v23 = vld [vmem:[#allocation6 + $0xce0] sm:$0xff] }
 0x27d   :  { %2703 = vmatpush.msra.mxu2 %v1906_v45  ;;  %2738 = vmatpush.msrb.mxu0 %v1361_v47  ;;  %v1871_v45 = vld [vmem:[#allocation6 + $0x1130] sm:$0xff]  ;;  %v2026_v47 = vld [vmem:[#allocation6 + $0x1608] sm:$0xff] }
 0x27e   :  { %2758 = vmatpush.msrb.mxu1 %v1457_v49  ;;  %2644 = vmatpush.msrb.mxu3 %v1612_v11  ;;  %v1547_v49 = vld [vmem:[#allocation6 + $0x710] sm:$0xff]  ;;  %v1769_v11 = vld [vmem:[#allocation6 + $0xe00] sm:$0xff] }
 0x27f   :  { %2704 = vmatpush.msra.mxu2 %v1900_v12  ;;  %2645 = vmatmul.f32.vlgmr.msrb.gmra.mxu3 %v3274_v10  ;;  %v1865_v12 = vld [vmem:[#allocation6 + $0x1100] sm:$0xff] }
 0x280   :  { %v3081_v57 = vpop.eup %3080  ;;  %2705 = vmatmul.f32.vlgmr.msra.gmra.mxu2 %v3286_v48  ;;  %2709 = vmatpush.msra.mxu3 %v2086_v50  ;;  %v2020_v50 = vld [vmem:[#allocation6 + $0x15d8] sm:$0xff] }
 0x281   :  { %2739 = vmatpush.msrb.mxu0 %v1355_v51  ;;  %2759 = vmatpush.msrb.mxu1 %v1451_v53  ;;  %3055 = vst [vmem:[%s3352_s4] sm:$0xff] %v3081_v57  ;;  %v2326_v28 = vpop.f32.mrf.mxu3  ;;  %v2366_v51 = vpop.f32.mrf.mxu1  ;;  %v1541_v53 = vld [vmem:[#allocation6 + $0x6e0] sm:$0xff]  ;;  %v2014_v57 = vld [vmem:[#allocation6 + $0x15a8] sm:$0xff] }
 0x282   :  { %2769 = vmatpush.msrb.mxu2 %v1607_v54  ;;  %2710 = vmatpush.msra.mxu3 %v2080_v56  ;;  %v2327_v34 = vadd.f32 %v2326_v28, %v2307_v29  ;;  %v1763_v54 = vld [vmem:[#allocation6 + $0xdd0] sm:$0xff] }
 0x283   :  { %2740 = vmatpush.msrb.mxu0 %v1349_v58  ;;  %2760 = vmatpush.msrb.mxu1 %v1445_v60  ;;  %v1859_v56 = vld [vmem:[#allocation6 + $0x10d0] sm:$0xff] }
 0x284   :  { %2770 = vmatpush.msrb.mxu2 %v1601_v61  ;;  %2711 = vmatpush.msra.mxu3 %v2074_v62  ;;  %v2347_v46 = vadd.f32 %v2346_v42, %v2327_v34  ;;  %v1535_v60 = vld [vmem:[#allocation6 + $0x6b0] sm:$0xff]  ;;  %v1757_v61 = vld [vmem:[#allocation6 + $0xda0] sm:$0xff] }
 0x285   :  { %2741 = vmatpush.msrb.mxu0 %v1343_v21  ;;  %2761 = vmatpush.msrb.mxu1 %v1439_v22  ;;  %v1853_v62 = vld [vmem:[#allocation6 + $0x10a0] sm:$0xff]  ;;  %v2008_v21 = vld [vmem:[#allocation6 + $0x1578] sm:$0xff]  ;;  %v2386_v22 = vpop.f32.mrf.mxu2  ;;  %v1823_v28 = vld [vmem:[#allocation6 + $0xfb0] sm:$0xff] }
 0x286   :  { %2771 = vmatpush.msrb.mxu2 %v1595_v63  ;;  %2712 = vmatpush.msra.mxu3 %v2068_v0  ;;  %v2367_v58 = vadd.f32 %v2366_v51, %v2347_v46  ;;  %v1529_v63 = vld [vmem:[#allocation6 + $0x680] sm:$0xff]  ;;  %v1751_v0 = vld [vmem:[#allocation6 + $0xd70] sm:$0xff]  ;;  %v1512_v46 = vld [vmem:[#allocation6 + $0x5f8] sm:$0xff] }
 0x287   :  { %2742 = vmatpush.msrb.mxu0 %v1337_v2  ;;  %2762 = vmatpush.msrb.mxu1 %v1433_v3  ;;  %v1847_v2 = vld [vmem:[#allocation6 + $0x1070] sm:$0xff]  ;;  %v2002_v3 = vld [vmem:[#allocation6 + $0x1548] sm:$0xff]  ;;  %v1973_v34 = vld [vmem:[#allocation6 + $0x1460] sm:$0xff] }
 0x288   :  { %2772 = vmatpush.msrb.mxu2 %v1589_v4  ;;  %2713 = vmatpush.msra.mxu3 %v2062_v5  ;;  %v2387_v4 = vadd.f32 %v2386_v22, %v2367_v58  ;;  %v1523_v5 = vld [vmem:[#allocation6 + $0x650] sm:$0xff]  ;;  %v1805_v42 = vld [vmem:[#allocation6 + $0xf20] sm:$0xff]  ;;  %v1404_v51 = vld [vmem:[#allocation6 + $0x298] sm:$0xff] }
 0x289   :  { %2743 = vmatpush.msrb.mxu0 %v1331_v6  ;;  %2763 = vmatpush.msrb.mxu1 %v1427_v7  ;;  %v1745_v6 = vld [vmem:[#allocation6 + $0xd40] sm:$0xff]  ;;  %v1494_v58 = vld [vmem:[#allocation6 + $0x568] sm:$0xff]  ;;  %v1643_v22 = vld [vmem:[#allocation6 + $0xa10] sm:$0xff] }
 0x28a   :  { %2773 = vmatpush.msrb.mxu2 %v1583_v8  ;;  %2714 = vmatpush.msra.mxu3 %v2056_v13  ;;  %v1841_v8 = vld [vmem:[#allocation6 + $0x1040] sm:$0xff]  ;;  %v1996_v13 = vld [vmem:[#allocation6 + $0x1518] sm:$0xff] }
 0x28b   :  { %2744 = vmatpush.msrb.mxu0 %v1325_v16  ;;  %2764 = vmatpush.msrb.mxu1 %v1421_v17  ;;  %v1703_v16 = vld [vmem:[#allocation6 + $0xbf0] sm:$0xff] }
 0x28c   :  { %2774 = vmatpush.msrb.mxu2 %v1577_v18  ;;  %2745 = vmatmul.f32.vlgmr.msrb.gmra.mxu0 %v3266_v52  ;;  %v1739_v17 = vld [vmem:[#allocation6 + $0xd10] sm:$0xff] }
 0x28d   :  { %2765 = vmatmul.f32.vlgmr.msrb.gmra.mxu1 %v3268_v59  ;;  %2809 = vmatpush.msra.mxu0 %v1799_v20  ;;  %v1835_v18 = vld [vmem:[#allocation6 + $0x1010] sm:$0xff]  ;;  %v1697_v20 = vld [vmem:[#allocation6 + $0xbc0] sm:$0xff] }
 0x28e   :  { %2829 = vmatpush.msra.mxu1 %v1895_v24  ;;  %2715 = vmatpush.msra.mxu3 %v2050_v25  ;;  %v1829_v24 = vld [vmem:[#allocation6 + $0xfe0] sm:$0xff] }
 0x28f   :  { %2775 = vmatpush.msrb.mxu2 %v1571_v26  ;;  %2810 = vmatpush.msra.mxu0 %v1793_v27  ;;  %v1985_v25 = vld [vmem:[#allocation6 + $0x14c0] sm:$0xff]  ;;  %v1691_v26 = vld [vmem:[#allocation6 + $0xb90] sm:$0xff] }
 0x290   :  { %2830 = vmatpush.msra.mxu1 %v1889_v30  ;;  %2716 = vmatpush.msra.mxu3 %v2044_v31  ;;  %v1727_v27 = vld [vmem:[#allocation6 + $0xcb0] sm:$0xff]  ;;  %v1685_v31 = vld [vmem:[#allocation6 + $0xb60] sm:$0xff] }
 0x291   :  { %2776 = vmatpush.msrb.mxu2 %v1565_v32  ;;  %2811 = vmatpush.msra.mxu0 %v1787_v33  ;;  %v1979_v30 = vld [vmem:[#allocation6 + $0x1490] sm:$0xff]  ;;  %v1721_v32 = vld [vmem:[#allocation6 + $0xc80] sm:$0xff] }
 0x292   :  { %2831 = vmatpush.msra.mxu1 %v1883_v35  ;;  %2717 = vmatpush.msra.mxu3 %v2038_v37  ;;  %v1817_v33 = vld [vmem:[#allocation6 + $0xf80] sm:$0xff]  ;;  %v1679_v35 = vld [vmem:[#allocation6 + $0xb30] sm:$0xff] }
 0x293   :  { %2777 = vmatpush.msrb.mxu2 %v1559_v38  ;;  %2812 = vmatpush.msra.mxu0 %v1781_v39  ;;  %v1715_v37 = vld [vmem:[#allocation6 + $0xc50] sm:$0xff] }
 0x294   :  { %2832 = vmatpush.msra.mxu1 %v1877_v40  ;;  %2718 = vmatpush.msra.mxu3 %v2032_v41  ;;  %v1811_v38 = vld [vmem:[#allocation6 + $0xf50] sm:$0xff]  ;;  %v1673_v40 = vld [vmem:[#allocation6 + $0xb00] sm:$0xff] }
 0x295   :  { %2778 = vmatpush.msrb.mxu2 %v1553_v43  ;;  %2813 = vmatpush.msra.mxu0 %v1775_v44  ;;  %v1967_v39 = vld [vmem:[#allocation6 + $0x1430] sm:$0xff]  ;;  %v1709_v41 = vld [vmem:[#allocation6 + $0xc20] sm:$0xff]  ;;  %v1416_v44 = vld [vmem:[#allocation6 + $0x2f8] sm:$0xff] }
 0x296   :  { %2833 = vmatpush.msra.mxu1 %v1871_v45  ;;  %2719 = vmatpush.msra.mxu3 %v2026_v47  ;;  %v1961_v43 = vld [vmem:[#allocation6 + $0x1400] sm:$0xff]  ;;  %v1667_v45 = vld [vmem:[#allocation6 + $0xad0] sm:$0xff] }
 0x297   :  { %2779 = vmatpush.msrb.mxu2 %v1547_v49  ;;  %2814 = vmatpush.msra.mxu0 %v1769_v11  ;;  %v1955_v47 = vld [vmem:[#allocation6 + $0x13d0] sm:$0xff]  ;;  %v1410_v49 = vld [vmem:[#allocation6 + $0x2c8] sm:$0xff] }
 0x298   :  { %2834 = vmatpush.msra.mxu1 %v1865_v12  ;;  %2720 = vmatpush.msra.mxu3 %v2020_v50  ;;  %v1506_v11 = vld [vmem:[#allocation6 + $0x5c8] sm:$0xff]  ;;  %v1661_v12 = vld [vmem:[#allocation6 + $0xaa0] sm:$0xff] }
 0x299   :  { %2780 = vmatpush.msrb.mxu2 %v1541_v53  ;;  %2815 = vmatpush.msra.mxu0 %v1763_v54  ;;  %v1949_v50 = vld [vmem:[#allocation6 + $0x13a0] sm:$0xff]  ;;  %v1500_v53 = vld [vmem:[#allocation6 + $0x598] sm:$0xff]  ;;  %v1655_v54 = vld [vmem:[#allocation6 + $0xa70] sm:$0xff] }
 0x29a   :  { %2835 = vmatpush.msra.mxu1 %v1859_v56  ;;  %2721 = vmatpush.msra.mxu3 %v2014_v57  ;;  %v1943_v56 = vld [vmem:[#allocation6 + $0x1370] sm:$0xff]  ;;  %v1398_v57 = vld [vmem:[#allocation6 + $0x268] sm:$0xff] }
 0x29b   :  { %2781 = vmatpush.msrb.mxu2 %v1535_v60  ;;  %2816 = vmatpush.msra.mxu0 %v1757_v61  ;;  %v1649_v60 = vld [vmem:[#allocation6 + $0xa40] sm:$0xff] }
 0x29c   :  { %2836 = vmatpush.msra.mxu1 %v1853_v62  ;;  %2722 = vmatpush.msra.mxu3 %v2008_v21  ;;  %v2406_v7 = vpop.f32.mrf.mxu3  ;;  %v1937_v61 = vld [vmem:[#allocation6 + $0x1340] sm:$0xff]  ;;  %v1392_v62 = vld [vmem:[#allocation6 + $0x238] sm:$0xff] }
 0x29d   :  { %2782 = vmatpush.msrb.mxu2 %v1529_v63  ;;  %2817 = vmatpush.msra.mxu0 %v1751_v0  ;;  %v2407_v14 = vadd.f32 %v2406_v7, %v2387_v4  ;;  %v1488_v21 = vld [vmem:[#allocation6 + $0x538] sm:$0xff]  ;;  %v1931_v63 = vld [vmem:[#allocation6 + $0x1310] sm:$0xff]  ;;  %v1386_v0 = vld [vmem:[#allocation6 + $0x208] sm:$0xff] }
 0x29e   :  { %2837 = vmatpush.msra.mxu1 %v1847_v2  ;;  %2723 = vmatpush.msra.mxu3 %v2002_v3  ;;  %v1482_v2 = vld [vmem:[#allocation6 + $0x508] sm:$0xff]  ;;  %v1637_v3 = vld [vmem:[#allocation6 + $0x9e0] sm:$0xff]  ;;  %v1631_v7 = vld [vmem:[#allocation6 + $0x9b0] sm:$0xff] }
 0x29f   :  { %2783 = vmatpush.msrb.mxu2 %v1523_v5  ;;  %2818 = vmatpush.msra.mxu0 %v1745_v6  ;;  %3082 = vtanh.f32 %v2407_v14  ;;  %v1925_v4 = vld [vmem:[#allocation6 + $0x12e0] sm:$0xff]  ;;  %v1380_v5 = vld [vmem:[#allocation6 + $0x1d8] sm:$0xff]  ;;  %v1470_v14 = vld [vmem:[#allocation6 + $0x4a8] sm:$0xff] }
 0x2a0   :  { %2838 = vmatpush.msra.mxu1 %v1841_v8  ;;  %2724 = vmatpush.msra.mxu3 %v1996_v13  ;;  %v1476_v6 = vld [vmem:[#allocation6 + $0x4d8] sm:$0xff]  ;;  %v1919_v8 = vld [vmem:[#allocation6 + $0x12b0] sm:$0xff]  ;;  %v1374_v13 = vld [vmem:[#allocation6 + $0x1a8] sm:$0xff] }
 0x2a1   :  { %2784 = vmatpush.msrb.mxu2 %v1517_v15  ;;  %2725 = vmatmul.f32.vlgmr.msra.gmra.mxu3 %v3292_v55  ;;  %v1625_v15 = vld [vmem:[#allocation6 + $0x980] sm:$0xff] }
 0x2a2   :  { %2785 = vmatmul.f32.vlgmr.msrb.gmra.mxu2 %v3272_v9  ;;  %2789 = vmatpush.msrb.mxu3 %v1703_v16  ;;  %v1913_v16 = vld [vmem:[#allocation6 + $0x1280] sm:$0xff] }
 0x2a3   :  { %2819 = vmatpush.msra.mxu0 %v1739_v17  ;;  %2839 = vmatpush.msra.mxu1 %v1835_v18  ;;  %v1368_v17 = vld [vmem:[#allocation6 + $0x178] sm:$0xff] }
 0x2a4   :  { %2849 = vmatpush.msra.mxu2 %v1991_v19  ;;  %2790 = vmatpush.msrb.mxu3 %v1697_v20  ;;  %v1464_v18 = vld [vmem:[#allocation6 + $0x478] sm:$0xff]  ;;  %v1619_v19 = vld [vmem:[#allocation6 + $0x950] sm:$0xff] }
 0x2a5   :  { %v3083_v29 = vpop.eup %3082  ;;  %2820 = vmatpush.msra.mxu0 %v1733_v23  ;;  %2840 = vmatpush.msra.mxu1 %v1829_v24  ;;  %v1907_v20 = vld [vmem:[#allocation6 + $0x1250] sm:$0xff]  ;;  %v1362_v23 = vld [vmem:[#allocation6 + $0x148] sm:$0xff] }
 0x2a6   :  { %2850 = vmatpush.msra.mxu2 %v1985_v25  ;;  %2791 = vmatpush.msrb.mxu3 %v1691_v26  ;;  %3056 = vst [vmem:[%s3352_s4 + $0x8] sm:$0xff] %v3083_v29  ;;  %v1458_v24 = vld [vmem:[#allocation6 + $0x448] sm:$0xff]  ;;  %v1613_v25 = vld [vmem:[#allocation6 + $0x920] sm:$0xff]  ;;  %v1452_v29 = vld [vmem:[#allocation6 + $0x418] sm:$0xff] }
 0x2a7   :  { %2821 = vmatpush.msra.mxu0 %v1727_v27  ;;  %2841 = vmatpush.msra.mxu1 %v1823_v28  ;;  %v1901_v26 = vld [vmem:[#allocation6 + $0x1220] sm:$0xff]  ;;  %v2087_v27 = vld [vmem:[#allocation6 + $0x17f0] sm:$0xff]  ;;  %v1356_v28 = vld [vmem:[#allocation6 + $0x118] sm:$0xff] }
 0x2a8   :  { %2851 = vmatpush.msra.mxu2 %v1979_v30  ;;  %2792 = vmatpush.msrb.mxu3 %v1685_v31  ;;  %v1608_v30 = vld [vmem:[#allocation6 + $0x8f8] sm:$0xff]  ;;  %v2081_v31 = vld [vmem:[#allocation6 + $0x17c0] sm:$0xff] }
 0x2a9   :  { %2822 = vmatpush.msra.mxu0 %v1721_v32  ;;  %2842 = vmatpush.msra.mxu1 %v1817_v33  ;;  %v1350_v32 = vld [vmem:[#allocation6 + $0xe8] sm:$0xff] }
 0x2aa   :  { %2852 = vmatpush.msra.mxu2 %v1973_v34  ;;  %2793 = vmatpush.msrb.mxu3 %v1679_v35  ;;  %v1446_v33 = vld [vmem:[#allocation6 + $0x3e8] sm:$0xff]  ;;  %v2075_v35 = vld [vmem:[#allocation6 + $0x1790] sm:$0xff] }
 0x2ab   :  { %2823 = vmatpush.msra.mxu0 %v1715_v37  ;;  %2843 = vmatpush.msra.mxu1 %v1811_v38  ;;  %v1602_v34 = vld [vmem:[#allocation6 + $0x8c8] sm:$0xff]  ;;  %v1344_v37 = vld [vmem:[#allocation6 + $0xb8] sm:$0xff] }
 0x2ac   :  { %2853 = vmatpush.msra.mxu2 %v1967_v39  ;;  %2794 = vmatpush.msrb.mxu3 %v1673_v40  ;;  %v1440_v38 = vld [vmem:[#allocation6 + $0x3b8] sm:$0xff]  ;;  %v2069_v40 = vld [vmem:[#allocation6 + $0x1760] sm:$0xff] }
 0x2ad   :  { %2824 = vmatpush.msra.mxu0 %v1709_v41  ;;  %2844 = vmatpush.msra.mxu1 %v1805_v42  ;;  %v1596_v39 = vld [vmem:[#allocation6 + $0x898] sm:$0xff]  ;;  %v1338_v41 = vld [vmem:[#allocation6 + $0x88] sm:$0xff] }
 0x2ae   :  { %2854 = vmatpush.msra.mxu2 %v1961_v43  ;;  %2825 = vmatmul.f32.vlgmr.msra.gmra.mxu0 %v3278_v1  ;;  %v1434_v42 = vld [vmem:[#allocation6 + $0x388] sm:$0xff] }
 0x2af   :  { %2845 = vmatmul.f32.vlgmr.msra.gmra.mxu1 %v3281_v36  ;;  %2889 = vmatpush.msrb.mxu0 %v1416_v44  ;;  %v1590_v43 = vld [vmem:[#allocation6 + $0x868] sm:$0xff]  ;;  %v2063_v44 = vld [vmem:[#allocation6 + $0x1730] sm:$0xff] }
 0x2b0   :  { %2909 = vmatpush.msrb.mxu1 %v1512_v46  ;;  %2795 = vmatpush.msrb.mxu3 %v1667_v45  ;;  %v1332_v46 = vld [vmem:[#allocation6 + $0x58] sm:$0xff] }
 0x2b1   :  { %2855 = vmatpush.msra.mxu2 %v1955_v47  ;;  %2890 = vmatpush.msrb.mxu0 %v1410_v49  ;;  %v1428_v45 = vld [vmem:[#allocation6 + $0x358] sm:$0xff]  ;;  %v2057_v49 = vld [vmem:[#allocation6 + $0x1700] sm:$0xff] }
 0x2b2   :  { %2910 = vmatpush.msrb.mxu1 %v1506_v11  ;;  %2796 = vmatpush.msrb.mxu3 %v1661_v12  ;;  %v1584_v47 = vld [vmem:[#allocation6 + $0x838] sm:$0xff]  ;;  %v2426_v11 = vpop.f32.mrf.mxu0  ;;  %v2446_v12 = vpop.f32.mrf.mxu1 }
 0x2b3   :  { %2856 = vmatpush.msra.mxu2 %v1949_v50  ;;  %2891 = vmatpush.msrb.mxu0 %v1404_v51  ;;  %v1326_v50 = vld [vmem:[#allocation6 + $0x28] sm:$0xff] }
 0x2b4   :  { %2911 = vmatpush.msrb.mxu1 %v1500_v53  ;;  %2797 = vmatpush.msrb.mxu3 %v1655_v54  ;;  %v1422_v51 = vld [vmem:[#allocation6 + $0x328] sm:$0xff]  ;;  %v2466_v54 = vpop.f32.mrf.mxu2 }
 0x2b5   :  { %2857 = vmatpush.msra.mxu2 %v1943_v56  ;;  %2892 = vmatpush.msrb.mxu0 %v1398_v57  ;;  %v1578_v53 = vld [vmem:[#allocation6 + $0x808] sm:$0xff]  ;;  %v1800_v56 = vld [vmem:[#allocation6 + $0xef8] sm:$0xff]  ;;  %v2447_v57 = vadd.f32 %v2446_v12, %v2426_v11 }
 0x2b6   :  { %2912 = vmatpush.msrb.mxu1 %v1494_v58  ;;  %2798 = vmatpush.msrb.mxu3 %v1649_v60  ;;  %v1896_v58 = vld [vmem:[#allocation6 + $0x11f8] sm:$0xff]  ;;  %v2051_v60 = vld [vmem:[#allocation6 + $0x16d0] sm:$0xff] }
 0x2b7   :  { %2858 = vmatpush.msra.mxu2 %v1937_v61  ;;  %2893 = vmatpush.msrb.mxu0 %v1392_v62  ;;  %v1572_v62 = vld [vmem:[#allocation6 + $0x7d8] sm:$0xff] }
 0x2b8   :  { %2913 = vmatpush.msrb.mxu1 %v1488_v21  ;;  %2799 = vmatpush.msrb.mxu3 %v1643_v22  ;;  %v1794_v21 = vld [vmem:[#allocation6 + $0xec8] sm:$0xff]  ;;  %v2467_v22 = vadd.f32 %v2466_v54, %v2447_v57  ;;  %v1704_v11 = vld [vmem:[#allocation6 + $0xbf8] sm:$0xff] }
 0x2b9   :  { %2859 = vmatpush.msra.mxu2 %v1931_v63  ;;  %2894 = vmatpush.msrb.mxu0 %v1386_v0  ;;  %v1890_v63 = vld [vmem:[#allocation6 + $0x11c8] sm:$0xff]  ;;  %v2045_v0 = vld [vmem:[#allocation6 + $0x16a0] sm:$0xff]  ;;  %v1740_v12 = vld [vmem:[#allocation6 + $0xd18] sm:$0xff] }
 0x2ba   :  { %2914 = vmatpush.msrb.mxu1 %v1482_v2  ;;  %2800 = vmatpush.msrb.mxu3 %v1637_v3  ;;  %v1566_v2 = vld [vmem:[#allocation6 + $0x7a8] sm:$0xff]  ;;  %v1788_v3 = vld [vmem:[#allocation6 + $0xe98] sm:$0xff] }
 0x2bb   :  { %2860 = vmatpush.msra.mxu2 %v1925_v4  ;;  %2895 = vmatpush.msrb.mxu0 %v1380_v5  ;;  %v1884_v5 = vld [vmem:[#allocation6 + $0x1198] sm:$0xff]  ;;  %v1734_v54 = vld [vmem:[#allocation6 + $0xce8] sm:$0xff] }
 0x2bc   :  { %2915 = vmatpush.msrb.mxu1 %v1476_v6  ;;  %2801 = vmatpush.msrb.mxu3 %v1631_v7  ;;  %v2039_v6 = vld [vmem:[#allocation6 + $0x1670] sm:$0xff]  ;;  %v1782_v7 = vld [vmem:[#allocation6 + $0xe68] sm:$0xff] }
 0x2bd   :  { %2861 = vmatpush.msra.mxu2 %v1919_v8  ;;  %2896 = vmatpush.msrb.mxu0 %v1374_v13  ;;  %v1878_v8 = vld [vmem:[#allocation6 + $0x1168] sm:$0xff]  ;;  %v2506_v13 = vpop.f32.mrf.mxu0 }
 0x2be   :  { %2916 = vmatpush.msrb.mxu1 %v1470_v14  ;;  %2802 = vmatpush.msrb.mxu3 %v1625_v15  ;;  %v2486_v61 = vpop.f32.mrf.mxu3  ;;  %v1554_v14 = vld [vmem:[#allocation6 + $0x748] sm:$0xff]  ;;  %v1776_v15 = vld [vmem:[#allocation6 + $0xe38] sm:$0xff] }
 0x2bf   :  { %2862 = vmatpush.msra.mxu2 %v1913_v16  ;;  %2897 = vmatpush.msrb.mxu0 %v1368_v17  ;;  %v2487_v4 = vadd.f32 %v2486_v61, %v2467_v22  ;;  %v1872_v17 = vld [vmem:[#allocation6 + $0x1138] sm:$0xff]  ;;  %v1986_v57 = vld [vmem:[#allocation6 + $0x14c8] sm:$0xff] }
 0x2c0   :  { %2917 = vmatpush.msrb.mxu1 %v1464_v18  ;;  %2803 = vmatpush.msrb.mxu3 %v1619_v19  ;;  %v2027_v18 = vld [vmem:[#allocation6 + $0x1610] sm:$0xff]  ;;  %v1548_v19 = vld [vmem:[#allocation6 + $0x718] sm:$0xff]  ;;  %v1686_v22 = vld [vmem:[#allocation6 + $0xb68] sm:$0xff] }
 0x2c1   :  { %2863 = vmatpush.msra.mxu2 %v1907_v20  ;;  %2898 = vmatpush.msrb.mxu0 %v1362_v23  ;;  %v2507_v16 = vadd.f32 %v2506_v13, %v2487_v4  ;;  %v1770_v20 = vld [vmem:[#allocation6 + $0xe08] sm:$0xff]  ;;  %v1824_v61 = vld [vmem:[#allocation6 + $0xfb8] sm:$0xff] }
 0x2c2   :  { %2918 = vmatpush.msrb.mxu1 %v1458_v24  ;;  %2804 = vmatpush.msrb.mxu3 %v1613_v25  ;;  %v1866_v23 = vld [vmem:[#allocation6 + $0x1108] sm:$0xff]  ;;  %v2021_v24 = vld [vmem:[#allocation6 + $0x15e0] sm:$0xff]  ;;  %v2526_v25 = vpop.f32.mrf.mxu1  ;;  %v1812_v4 = vld [vmem:[#allocation6 + $0xf58] sm:$0xff] }
 0x2c3   :  { %2864 = vmatpush.msra.mxu2 %v1901_v26  ;;  %2805 = vmatmul.f32.vlgmr.msrb.gmra.mxu3 %v3274_v10  ;;  %v1542_v26 = vld [vmem:[#allocation6 + $0x6e8] sm:$0xff]  ;;  %v1956_v13 = vld [vmem:[#allocation6 + $0x13d8] sm:$0xff] }
 0x2c4   :  { %2865 = vmatmul.f32.vlgmr.msra.gmra.mxu2 %v3286_v48  ;;  %2869 = vmatpush.msra.mxu3 %v2087_v27  ;;  %v1764_v27 = vld [vmem:[#allocation6 + $0xdd8] sm:$0xff] }
 0x2c5   :  { %2899 = vmatpush.msrb.mxu0 %v1356_v28  ;;  %2919 = vmatpush.msrb.mxu1 %v1452_v29  ;;  %v2527_v28 = vadd.f32 %v2526_v25, %v2507_v16  ;;  %v1860_v29 = vld [vmem:[#allocation6 + $0x10d8] sm:$0xff] }
 0x2c6   :  { %2929 = vmatpush.msrb.mxu2 %v1608_v30  ;;  %2870 = vmatpush.msra.mxu3 %v2081_v31  ;;  %v2015_v30 = vld [vmem:[#allocation6 + $0x15b0] sm:$0xff]  ;;  %v1536_v31 = vld [vmem:[#allocation6 + $0x6b8] sm:$0xff] }
 0x2c7   :  { %2900 = vmatpush.msrb.mxu0 %v1350_v32  ;;  %2920 = vmatpush.msrb.mxu1 %v1446_v33  ;;  %v1758_v32 = vld [vmem:[#allocation6 + $0xda8] sm:$0xff]  ;;  %v1656_v16 = vld [vmem:[#allocation6 + $0xa78] sm:$0xff] }
 0x2c8   :  { %2930 = vmatpush.msrb.mxu2 %v1602_v34  ;;  %2871 = vmatpush.msra.mxu3 %v2075_v35  ;;  %v1854_v33 = vld [vmem:[#allocation6 + $0x10a8] sm:$0xff]  ;;  %v2009_v34 = vld [vmem:[#allocation6 + $0x1580] sm:$0xff]  ;;  %v2546_v35 = vpop.f32.mrf.mxu2  ;;  %v1920_v25 = vld [vmem:[#allocation6 + $0x12b8] sm:$0xff] }
 0x2c9   :  { %2901 = vmatpush.msrb.mxu0 %v1344_v37  ;;  %2921 = vmatpush.msrb.mxu1 %v1440_v38  ;;  %v1530_v37 = vld [vmem:[#allocation6 + $0x688] sm:$0xff]  ;;  %v1752_v38 = vld [vmem:[#allocation6 + $0xd78] sm:$0xff] }
 0x2ca   :  { %2931 = vmatpush.msrb.mxu2 %v1596_v39  ;;  %2872 = vmatpush.msra.mxu3 %v2069_v40  ;;  %v2547_v39 = vadd.f32 %v2546_v35, %v2527_v28  ;;  %v1848_v40 = vld [vmem:[#allocation6 + $0x1078] sm:$0xff]  ;;  %v2070_v35 = vld [vmem:[#allocation6 + $0x1768] sm:$0xff] }
 0x2cb   :  { %2902 = vmatpush.msrb.mxu0 %v1338_v41  ;;  %2922 = vmatpush.msrb.mxu1 %v1434_v42  ;;  %v2003_v41 = vld [vmem:[#allocation6 + $0x1550] sm:$0xff]  ;;  %v1524_v42 = vld [vmem:[#allocation6 + $0x658] sm:$0xff] }
 0x2cc   :  { %2932 = vmatpush.msrb.mxu2 %v1590_v43  ;;  %2873 = vmatpush.msra.mxu3 %v2063_v44  ;;  %v1746_v43 = vld [vmem:[#allocation6 + $0xd48] sm:$0xff]  ;;  %v1620_v28 = vld [vmem:[#allocation6 + $0x958] sm:$0xff] }
 0x2cd   :  { %2903 = vmatpush.msrb.mxu0 %v1332_v46  ;;  %2923 = vmatpush.msrb.mxu1 %v1428_v45  ;;  %v1842_v46 = vld [vmem:[#allocation6 + $0x1048] sm:$0xff]  ;;  %v1997_v45 = vld [vmem:[#allocation6 + $0x1520] sm:$0xff] }
 0x2ce   :  { %2933 = vmatpush.msrb.mxu2 %v1584_v47  ;;  %2874 = vmatpush.msra.mxu3 %v2057_v49  ;;  %v1518_v49 = vld [vmem:[#allocation6 + $0x628] sm:$0xff] }
 0x2cf   :  { %2904 = vmatpush.msrb.mxu0 %v1326_v50  ;;  %2924 = vmatpush.msrb.mxu1 %v1422_v51  ;;  %v1836_v50 = vld [vmem:[#allocation6 + $0x1018] sm:$0xff] }
 0x2d0   :  { %2934 = vmatpush.msrb.mxu2 %v1578_v53  ;;  %2905 = vmatmul.f32.vlgmr.msrb.gmra.mxu0 %v3266_v52  ;;  %v1560_v52 = vld [vmem:[#allocation6 + $0x778] sm:$0xff]  ;;  %v1698_v53 = vld [vmem:[#allocation6 + $0xbc8] sm:$0xff] }
 0x2d1   :  { %2925 = vmatmul.f32.vlgmr.msrb.gmra.mxu1 %v3268_v59  ;;  %2969 = vmatpush.msra.mxu0 %v1800_v56  ;;  %v2033_v59 = vld [vmem:[#allocation6 + $0x1640] sm:$0xff]  ;;  %v1992_v51 = vld [vmem:[#allocation6 + $0x14f8] sm:$0xff]  ;;  %v1830_v56 = vld [vmem:[#allocation6 + $0xfe8] sm:$0xff] }
 0x2d2   :  { %2989 = vmatpush.msra.mxu1 %v1896_v58  ;;  %2875 = vmatpush.msra.mxu3 %v2051_v60  ;;  %v1692_v58 = vld [vmem:[#allocation6 + $0xb98] sm:$0xff] }
 0x2d3   :  { %2935 = vmatpush.msrb.mxu2 %v1572_v62  ;;  %2970 = vmatpush.msra.mxu0 %v1794_v21  ;;  %v1728_v60 = vld [vmem:[#allocation6 + $0xcb8] sm:$0xff] }
 0x2d4   :  { %2990 = vmatpush.msra.mxu1 %v1890_v63  ;;  %2876 = vmatpush.msra.mxu3 %v2045_v0  ;;  %v1980_v21 = vld [vmem:[#allocation6 + $0x1498] sm:$0xff]  ;;  %v1722_v63 = vld [vmem:[#allocation6 + $0xc88] sm:$0xff] }
 0x2d5   :  { %2936 = vmatpush.msrb.mxu2 %v1566_v2  ;;  %2971 = vmatpush.msra.mxu0 %v1788_v3  ;;  %v1974_v0 = vld [vmem:[#allocation6 + $0x1468] sm:$0xff]  ;;  %v1680_v2 = vld [vmem:[#allocation6 + $0xb38] sm:$0xff] }
 0x2d6   :  { %2991 = vmatpush.msra.mxu1 %v1884_v5  ;;  %2877 = vmatpush.msra.mxu3 %v2039_v6  ;;  %v1716_v3 = vld [vmem:[#allocation6 + $0xc58] sm:$0xff]  ;;  %v1674_v6 = vld [vmem:[#allocation6 + $0xb08] sm:$0xff] }
 0x2d7   :  { %2937 = vmatpush.msrb.mxu2 %v1560_v52  ;;  %2972 = vmatpush.msra.mxu0 %v1782_v7  ;;  %v1968_v5 = vld [vmem:[#allocation6 + $0x1438] sm:$0xff]  ;;  %v1710_v52 = vld [vmem:[#allocation6 + $0xc28] sm:$0xff] }
 0x2d8   :  { %2992 = vmatpush.msra.mxu1 %v1878_v8  ;;  %2878 = vmatpush.msra.mxu3 %v2033_v59  ;;  %v1806_v7 = vld [vmem:[#allocation6 + $0xf28] sm:$0xff]  ;;  %v1668_v59 = vld [vmem:[#allocation6 + $0xad8] sm:$0xff] }
 0x2d9   :  { %2938 = vmatpush.msrb.mxu2 %v1554_v14  ;;  %2973 = vmatpush.msra.mxu0 %v1776_v15  ;;  %v1962_v8 = vld [vmem:[#allocation6 + $0x1408] sm:$0xff] }
 0x2da   :  { %2993 = vmatpush.msra.mxu1 %v1872_v17  ;;  %2879 = vmatpush.msra.mxu3 %v2027_v18  ;;  %v1662_v14 = vld [vmem:[#allocation6 + $0xaa8] sm:$0xff]  ;;  %v1944_v17 = vld [vmem:[#allocation6 + $0x1378] sm:$0xff] }
 0x2db   :  { %2939 = vmatpush.msrb.mxu2 %v1548_v19  ;;  %2974 = vmatpush.msra.mxu0 %v1770_v20  ;;  %v1950_v15 = vld [vmem:[#allocation6 + $0x13a8] sm:$0xff]  ;;  %v1644_v20 = vld [vmem:[#allocation6 + $0xa18] sm:$0xff] }
 0x2dc   :  { %2994 = vmatpush.msra.mxu1 %v1866_v23  ;;  %2880 = vmatpush.msra.mxu3 %v2021_v24  ;;  %v1650_v18 = vld [vmem:[#allocation6 + $0xa48] sm:$0xff]  ;;  %v1932_v23 = vld [vmem:[#allocation6 + $0x1318] sm:$0xff] }
 0x2dd   :  { %2940 = vmatpush.msrb.mxu2 %v1542_v26  ;;  %2975 = vmatpush.msra.mxu0 %v1764_v27  ;;  %v1938_v19 = vld [vmem:[#allocation6 + $0x1348] sm:$0xff] }
 0x2de   :  { %2995 = vmatpush.msra.mxu1 %v1860_v29  ;;  %2881 = vmatpush.msra.mxu3 %v2015_v30  ;;  %v1638_v24 = vld [vmem:[#allocation6 + $0x9e8] sm:$0xff]  ;;  %v1908_v29 = vld [vmem:[#allocation6 + $0x1258] sm:$0xff] }
 0x2df   :  { %2941 = vmatpush.msrb.mxu2 %v1536_v31  ;;  %2976 = vmatpush.msra.mxu0 %v1758_v32  ;;  %v1626_v26 = vld [vmem:[#allocation6 + $0x988] sm:$0xff]  ;;  %v2088_v32 = vld [vmem:[#allocation6 + $0x17f8] sm:$0xff] }
 0x2e0   :  { %2996 = vmatpush.msra.mxu1 %v1854_v33  ;;  %2882 = vmatpush.msra.mxu3 %v2009_v34  ;;  %v2566_v44 = vpop.f32.mrf.mxu3  ;;  %v1914_v27 = vld [vmem:[#allocation6 + $0x1288] sm:$0xff]  ;;  %v2076_v34 = vld [vmem:[#allocation6 + $0x1798] sm:$0xff] }
 0x2e1   :  { %2942 = vmatpush.msrb.mxu2 %v1530_v37  ;;  %2977 = vmatpush.msra.mxu0 %v1752_v38  ;;  %v2567_v47 = vadd.f32 %v2566_v44, %v2547_v39  ;;  %v1614_v30 = vld [vmem:[#allocation6 + $0x928] sm:$0xff]  ;;  %v2064_v37 = vld [vmem:[#allocation6 + $0x1738] sm:$0xff]  ;;  %v2586_v39 = vpop.f32.mrf.mxu0 }
 0x2e2   :  { %2997 = vmatpush.msra.mxu1 %v1848_v40  ;;  %2883 = vmatpush.msra.mxu3 %v2003_v41  ;;  %v1902_v31 = vld [vmem:[#allocation6 + $0x1228] sm:$0xff]  ;;  %v2606_v40 = vpop.f32.mrf.mxu1  ;;  %v2052_v41 = vld [vmem:[#allocation6 + $0x16d8] sm:$0xff] }
 0x2e3   :  { %2943 = vmatpush.msrb.mxu2 %v1524_v42  ;;  %2978 = vmatpush.msra.mxu0 %v1746_v43  ;;  %3084 = vtanh.f32 %v2567_v47  ;;  %v2082_v33 = vld [vmem:[#allocation6 + $0x17c8] sm:$0xff]  ;;  %v2626_v42 = vpop.f32.mrf.mxu2  ;;  %v2607_v44 = vadd.f32 %v2606_v40, %v2586_v39 }
 0x2e4   :  { %2998 = vmatpush.msra.mxu1 %v1842_v46  ;;  %2884 = vmatpush.msra.mxu3 %v1997_v45  ;;  %v2058_v38 = vld [vmem:[#allocation6 + $0x1708] sm:$0xff]  ;;  %v2040_v46 = vld [vmem:[#allocation6 + $0x1678] sm:$0xff] }
 0x2e5   :  { %2944 = vmatpush.msrb.mxu2 %v1518_v49  ;;  %2885 = vmatmul.f32.vlgmr.msra.gmra.mxu3 %v3292_v55  ;;  %v2046_v43 = vld [vmem:[#allocation6 + $0x16a8] sm:$0xff]  ;;  %v2028_v49 = vld [vmem:[#allocation6 + $0x1618] sm:$0xff] }
 0x2e6   :  { %2945 = vmatmul.f32.vlgmr.msrb.gmra.mxu2 %v3272_v9  ;;  %2949 = vmatpush.msrb.mxu3 %v1704_v11  ;;  %v1818_v9 = vld [vmem:[#allocation6 + $0xf88] sm:$0xff] }
 0x2e7   :  { %2979 = vmatpush.msra.mxu0 %v1740_v12  ;;  %2999 = vmatpush.msra.mxu1 %v1836_v50  ;;  %v2034_v45 = vld [vmem:[#allocation6 + $0x1648] sm:$0xff] }
 0x2e8   :  { %3009 = vmatpush.msra.mxu2 %v1992_v51  ;;  %2950 = vmatpush.msrb.mxu3 %v1698_v53  ;;  %v2022_v12 = vld [vmem:[#allocation6 + $0x15e8] sm:$0xff]  ;;  %v2016_v51 = vld [vmem:[#allocation6 + $0x15b8] sm:$0xff] }
 0x2e9   :  { %v3085_v62 = vpop.eup %3084  ;;  %2980 = vmatpush.msra.mxu0 %v1734_v54  ;;  %3000 = vmatpush.msra.mxu1 %v1830_v56  ;;  %v2666_v11 = vpop.f32.mrf.mxu0  ;;  %v2010_v54 = vld [vmem:[#allocation6 + $0x1588] sm:$0xff] }
 0x2ea   :  { %3010 = vmatpush.msra.mxu2 %v1986_v57  ;;  %2951 = vmatpush.msrb.mxu3 %v1692_v58  ;;  %3057 = vst [vmem:[%s3352_s4 + $0x10] sm:$0xff] %v3085_v62  ;;  %v2686_v53 = vpop.f32.mrf.mxu1  ;;  %v2004_v57 = vld [vmem:[#allocation6 + $0x1558] sm:$0xff] }
 0x2eb   :  { %2981 = vmatpush.msra.mxu0 %v1728_v60  ;;  %3001 = vmatpush.msra.mxu1 %v1824_v61  ;;  %v1998_v60 = vld [vmem:[#allocation6 + $0x1528] sm:$0xff] }
 0x2ec   :  { %3011 = vmatpush.msra.mxu2 %v1980_v21  ;;  %2952 = vmatpush.msrb.mxu3 %v1686_v22 }
 0x2ed   :  { %2982 = vmatpush.msra.mxu0 %v1722_v63  ;;  %3002 = vmatpush.msra.mxu1 %v1818_v9 }
 0x2ee   :  { %3012 = vmatpush.msra.mxu2 %v1974_v0  ;;  %2953 = vmatpush.msrb.mxu3 %v1680_v2 }
 0x2ef   :  { %2983 = vmatpush.msra.mxu0 %v1716_v3  ;;  %3003 = vmatpush.msra.mxu1 %v1812_v4 }
 0x2f0   :  { %3013 = vmatpush.msra.mxu2 %v1968_v5  ;;  %2954 = vmatpush.msrb.mxu3 %v1674_v6 }
 0x2f1   :  { %2984 = vmatpush.msra.mxu0 %v1710_v52  ;;  %3004 = vmatpush.msra.mxu1 %v1806_v7 }
 0x2f2   :  { %3014 = vmatpush.msra.mxu2 %v1962_v8  ;;  %2985 = vmatmul.f32.vlgmr.msra.gmra.mxu0 %v3278_v1  ;;  %v1926_v1 = vld [vmem:[#allocation6 + $0x12e8] sm:$0xff] }
 0x2f3   :  { %3005 = vmatmul.f32.vlgmr.msra.gmra.mxu1 %v3281_v36  ;;  %2955 = vmatpush.msrb.mxu3 %v1668_v59  ;;  %v1632_v36 = vld [vmem:[#allocation6 + $0x9b8] sm:$0xff] }
 0x2f4   :  { %3015 = vmatpush.msra.mxu2 %v1956_v13 }
 0x2f5   :  { %2956 = vmatpush.msrb.mxu3 %v1662_v14 }
 0x2f6   :  { %3016 = vmatpush.msra.mxu2 %v1950_v15 }
 0x2f7   :  { %2957 = vmatpush.msrb.mxu3 %v1656_v16 }
 0x2f8   :  { %3017 = vmatpush.msra.mxu2 %v1944_v17 }
 0x2f9   :  { %2958 = vmatpush.msrb.mxu3 %v1650_v18 }
 0x2fa   :  { %3018 = vmatpush.msra.mxu2 %v1938_v19 }
 0x2fb   :  { %2959 = vmatpush.msrb.mxu3 %v1644_v20 }
 0x2fc   :  { %3019 = vmatpush.msra.mxu2 %v1932_v23 }
 0x2fd   :  { %2960 = vmatpush.msrb.mxu3 %v1638_v24 }
 0x2fe   :  { %3020 = vmatpush.msra.mxu2 %v1926_v1 }
 0x2ff   :  { %2961 = vmatpush.msrb.mxu3 %v1632_v36 }
 0x300   :  { %3021 = vmatpush.msra.mxu2 %v1920_v25 }
 0x301   :  { %2962 = vmatpush.msrb.mxu3 %v1626_v26 }
 0x302   :  { %3022 = vmatpush.msra.mxu2 %v1914_v27 }
 0x303   :  { %2963 = vmatpush.msrb.mxu3 %v1620_v28  ;;  %v2706_v58 = vpop.f32.mrf.mxu2 }
 0x304   :  { %3023 = vmatpush.msra.mxu2 %v1908_v29 }
 0x305   :  { %2964 = vmatpush.msrb.mxu3 %v1614_v30 }
 0x306   :  { %3024 = vmatpush.msra.mxu2 %v1902_v31  ;;  %2965 = vmatmul.f32.vlgmr.msrb.gmra.mxu3 %v3274_v10  ;;  %v2646_v10 = vpop.f32.mrf.mxu3 }
 0x307   :  { %3025 = vmatmul.f32.vlgmr.msra.gmra.mxu2 %v3286_v48  ;;  %3029 = vmatpush.msra.mxu3 %v2088_v32  ;;  %v2627_v48 = vadd.f32 %v2626_v42, %v2607_v44 }
 0x309   :  { %3030 = vmatpush.msra.mxu3 %v2082_v33  ;;  %v2647_v47 = vadd.f32 %v2646_v10, %v2627_v48  ;;  %v2746_v63 = vpop.f32.mrf.mxu0 }
 0x30a   :  { %v2766_v9 = vpop.f32.mrf.mxu1 }
 0x30b   :  { %3031 = vmatpush.msra.mxu3 %v2076_v34  ;;  %v2667_v50 = vadd.f32 %v2666_v11, %v2647_v47  ;;  %v2767_v2 = vadd.f32 %v2766_v9, %v2746_v63 }
 0x30d   :  { %3032 = vmatpush.msra.mxu3 %v2070_v35  ;;  %v2687_v56 = vadd.f32 %v2686_v53, %v2667_v50 }
 0x30f   :  { %3033 = vmatpush.msra.mxu3 %v2064_v37  ;;  %v2707_v61 = vadd.f32 %v2706_v58, %v2687_v56 }
 0x311   :  { %3034 = vmatpush.msra.mxu3 %v2058_v38 }
 0x313   :  { %3035 = vmatpush.msra.mxu3 %v2052_v41 }
 0x315   :  { %3036 = vmatpush.msra.mxu3 %v2046_v43 }
 0x317   :  { %3037 = vmatpush.msra.mxu3 %v2040_v46 }
 0x319   :  { %3038 = vmatpush.msra.mxu3 %v2034_v45 }
 0x31b   :  { %3039 = vmatpush.msra.mxu3 %v2028_v49 }
 0x31d   :  { %3040 = vmatpush.msra.mxu3 %v2022_v12 }
 0x31f   :  { %3041 = vmatpush.msra.mxu3 %v2016_v51 }
 0x321   :  { %3042 = vmatpush.msra.mxu3 %v2010_v54 }
 0x323   :  { %3043 = vmatpush.msra.mxu3 %v2004_v57 }
 0x324   :  { %v2726_v62 = vpop.f32.mrf.mxu3 }
 0x325   :  { %3044 = vmatpush.msra.mxu3 %v1998_v60  ;;  %v2727_v21 = vadd.f32 %v2726_v62, %v2707_v61  ;;  %v2786_v0 = vpop.f32.mrf.mxu2 }
 0x326   :  { %3045 = vmatmul.f32.vlgmr.msra.gmra.mxu3 %v3292_v55  ;;  %v2787_v4 = vadd.f32 %v2786_v0, %v2767_v2 }
 0x327   :  { %3086 = vtanh.f32 %v2727_v21 }
 0x32b   :  { %v2826_v6 = vpop.f32.mrf.mxu0 }
 0x32c   :  { %v2846_v7 = vpop.f32.mrf.mxu1 }
 0x32d   :  { %v3087_v22 = vpop.eup %3086 }
 0x32e   :  { %3058 = vst [vmem:[%s3352_s4 + $0x18] sm:$0xff] %v3087_v22 }
 0x346   :  { %v2806_v3 = vpop.f32.mrf.mxu3 }
 0x347   :  { %v2807_v5 = vadd.f32 %v2806_v3, %v2787_v4  ;;  %v2866_v59 = vpop.f32.mrf.mxu2 }
 0x349   :  { %v2827_v52 = vadd.f32 %v2826_v6, %v2807_v5 }
 0x34b   :  { %v2847_v8 = vadd.f32 %v2846_v7, %v2827_v52 }
 0x34d   :  { %v2867_v13 = vadd.f32 %v2866_v59, %v2847_v8  ;;  %v2906_v16 = vpop.f32.mrf.mxu0 }
 0x34e   :  { %v2926_v17 = vpop.f32.mrf.mxu1 }
 0x34f   :  { %v2927_v19 = vadd.f32 %v2926_v17, %v2906_v16 }
 0x368   :  { %v2886_v55 = vpop.f32.mrf.mxu3 }
 0x369   :  { %v2887_v14 = vadd.f32 %v2886_v55, %v2867_v13  ;;  %v2946_v18 = vpop.f32.mrf.mxu2 }
 0x36a   :  { %v2947_v23 = vadd.f32 %v2946_v18, %v2927_v19 }
 0x36b   :  { %3088 = vtanh.f32 %v2887_v14 }
 0x36f   :  { %v2986_v1 = vpop.f32.mrf.mxu0 }
 0x370   :  { %v3006_v25 = vpop.f32.mrf.mxu1 }
 0x371   :  { %v3089_v15 = vpop.eup %3088 }
 0x372   :  { %3059 = vst [vmem:[%s3352_s4 + $0x20] sm:$0xff] %v3089_v15 }
 0x389   :  { %v2966_v20 = vpop.f32.mrf.mxu3 }
 0x38a   :  { %v2967_v24 = vadd.f32 %v2966_v20, %v2947_v23  ;;  %v3026_v27 = vpop.f32.mrf.mxu2 }
 0x38c   :  { %v2987_v36 = vadd.f32 %v2986_v1, %v2967_v24 }
 0x38e   :  { %v3007_v26 = vadd.f32 %v3006_v25, %v2987_v36 }
 0x390   :  { %v3027_v28 = vadd.f32 %v3026_v27, %v3007_v26 }
 0x3a9   :  { %v3046_v29 = vpop.f32.mrf.mxu3 }
 0x3aa   :  { %v3047_v30 = vadd.f32 %v3046_v29, %v3027_v28 }
 0x3ac   :  { %3090 = vtanh.f32 %v3047_v30 }
 0x3b2   :  { %v3091_v31 = vpop.eup %3090 }
 0x3b3   :  { %3060 = vst [vmem:[%s3352_s4 + $0x28] sm:$0xff] %v3091_v31 }
 0x3b4   :  { %3065 = vsyncpa [#allocation3], 1 }
 0x3b5   :  { %3066 = vsyncpa [#allocation5], 1 }

</bundles_post_ra>
